<compile_context>
chip_gen: v7x
topology: tpu7x:2x2x1
jax: 0.10.0
libtpu: 0.0.40
codegen_flags: <defaults>
</compile_context>

<pallas_src>
import jax
import jax.numpy as jnp
from jax import lax
from jax.experimental import pallas as pl
from jax.experimental.pallas import tpu as pltpu


# -----------------------------------------------------------------------------
# Kernel 1/3: a full stack of bidirectional GRU layers (+ optional out-projection)
# -----------------------------------------------------------------------------
_NW = 8  # per-layer weight refs: wih_cat, whh_f, whh_b, b_cat, bhn_f, bhn_b, gamma, beta


def _make_stack_kernel(num_layers, with_proj):
    def kernel(*refs):
        n_in = 1 + _NW * num_layers + (3 if with_proj else 0)
        x_ref = refs[0]
        layer_refs = [refs[1 + _NW * i: 1 + _NW * (i + 1)] for i in range(num_layers)]
        if with_proj:
            mask_ref, wout_ref, bout_ref = refs[1 + _NW * num_layers: n_in]
        out_ref = refs[n_in]
        xg_f, xg_b, fwd, bwd, act = refs[n_in + 1:]

        T, B, _ = x_ref.shape
        H = act.shape[-1]
        G = xg_f.shape[-1]                      # 3H rounded up to a 128-lane multiple

        def run_layer(src_ref, dst_ref, wih_ref, whhf_ref, whhb_ref, bcat_ref,
                      bhnf_ref, bhnb_ref, gamma_ref, beta_ref):
            Din = src_ref.shape[-1]
            # Fused fwd+bwd input-gate precompute: one (T*B,Din)@(Din,2G) dot.
            xg = (jnp.dot(src_ref[...].reshape(T * B, Din), wih_ref[...],
                          preferred_element_type=jnp.float32) + bcat_ref[...])
            xg_f[...] = xg[:, :G].reshape(T, B, G)      # vreg-aligned split
            xg_b[...] = xg[:, G:].reshape(T, B, G)

            whhf = whhf_ref[...]                         # (H, 3H), loop-invariant
            whhb = whhb_ref[...]
            bnf = jnp.broadcast_to(bhnf_ref[...], (B, H))   # hoisted broadcasts
            bnb = jnp.broadcast_to(bhnb_ref[...], (B, H))

            def gates(gi, gh, bhn, h):
                # PyTorch gate layout [r, z, n]; r/z hidden biases pre-folded into gi.
                r = jax.nn.sigmoid(gi[:, :H] + gh[:, :H])
                z = jax.nn.sigmoid(gi[:, H:2 * H] + gh[:, H:2 * H])
                n = jnp.tanh(gi[:, 2 * H:3 * H] + r * (gh[:, 2 * H:] + bhn))
                return (1.0 - z) * n + z * h

            def body(t, carry):
                # Fused step: forward at time t, backward at time T-1-t.
                h_f, h_b = carry
                tb = T - 1 - t
                gh_f = jnp.dot(h_f, whhf, preferred_element_type=jnp.float32)
                gh_b = jnp.dot(h_b, whhb, preferred_element_type=jnp.float32)
                h_f = gates(xg_f[t], gh_f, bnf, h_f)
                h_b = gates(xg_b[tb], gh_b, bnb, h_b)
                fwd[t] = h_f
                bwd[tb] = h_b
                return h_f, h_b

            h0 = jnp.zeros((B, H), jnp.float32)
            lax.fori_loop(0, T, body, (h0, h0))

            # sum of directions + LayerNorm(eps=1e-5)
            comb = fwd[...] + bwd[...]
            mean = jnp.mean(comb, axis=-1, keepdims=True)
            var = jnp.mean((comb - mean) ** 2, axis=-1, keepdims=True)
            y = (comb - mean) * lax.rsqrt(var + 1e-5)
            dst_ref[...] = y * gamma_ref[...] + beta_ref[...]

        src = x_ref
        for li in range(num_layers):
            last = li == num_layers - 1
            dst = act if (with_proj or not last) else out_ref
            run_layer(src, dst, *layer_refs[li])
            src = act

        if with_proj:
            F = out_ref.shape[-1]
            y = (jnp.dot(act[...].reshape(T * B, H), wout_ref[...],
                         preferred_element_type=jnp.float32) + bout_ref[...])
            out_ref[...] = y.reshape(T, B, F) * mask_ref[...]   # zero padded rows

    return kernel


def _prep_gru_layer(lp):
    """Pack one layer's PyTorch-layout weights into kernel-ready form."""
    H = lp["whh_f"].shape[1]
    G = ((3 * H + 127) // 128) * 128
    din = lp["wih_f"].shape[1]
    wih = jnp.zeros((din, 2 * G), jnp.float32)
    wih = wih.at[:, :3 * H].set(lp["wih_f"].T)
    wih = wih.at[:, G:G + 3 * H].set(lp["wih_b"].T)
    # fold the r/z hidden biases into the precomputed gate bias
    bf = jnp.concatenate([lp["bih_f"][:2 * H] + lp["bhh_f"][:2 * H], lp["bih_f"][2 * H:]])
    bb = jnp.concatenate([lp["bih_b"][:2 * H] + lp["bhh_b"][:2 * H], lp["bih_b"][2 * H:]])
    bcat = jnp.zeros((1, 2 * G), jnp.float32)
    bcat = bcat.at[0, :3 * H].set(bf)
    bcat = bcat.at[0, G:G + 3 * H].set(bb)
    return (wih, lp["whh_f"].T, lp["whh_b"].T, bcat,
            lp["bhh_f"][2 * H:][None, :], lp["bhh_b"][2 * H:][None, :],
            lp["gamma"][None, :], lp["beta"][None, :])


def gru_stack(x_tm, layers, proj=None, mask_tm=None):
    """x_tm: (T, B, Din) time-major -> (T, B, H) or, with proj, (T, B, F)."""
    T, B, _ = x_tm.shape
    H = layers[0]["whh_f"].shape[1]
    G = ((3 * H + 127) // 128) * 128
    num_layers = len(layers)
    with_proj = proj is not None

    args = [x_tm]
    for lp in layers:
        args.extend(_prep_gru_layer(lp))
    if with_proj:
        w_out, b_out = proj
        F = w_out.shape[0]
        args.extend([mask_tm, w_out.T, b_out[None, :]])
        out_shape = jax.ShapeDtypeStruct((T, B, F), jnp.float32)
    else:
        out_shape = jax.ShapeDtypeStruct((T, B, H), jnp.float32)

    return pl.pallas_call(
        _make_stack_kernel(num_layers, with_proj),
        out_shape=out_shape,
        scratch_shapes=[
            pltpu.VMEM((T, B, G), jnp.float32),   # xg_f
            pltpu.VMEM((T, B, G), jnp.float32),   # xg_b
            pltpu.VMEM((T, B, H), jnp.float32),   # fwd
            pltpu.VMEM((T, B, H), jnp.float32),   # bwd
            pltpu.VMEM((T, B, H), jnp.float32),   # act (inter-layer activation)
        ],
    )(*args)


# -----------------------------------------------------------------------------
# Kernel 2/3: masking + disentanglement + Post_Attn(x2) + fused classifiers
# -----------------------------------------------------------------------------
def _head_kernel(h_ref, mask_ref,
                 wd_ref, bd_ref,
                 wax_ref, war_ref, ba_ref,
                 wcls_ref, bsr_ref, bcr_ref,
                 cont_ref, sty_ref, spc_ref, sps_ref, pc_ref, ps_ref):
    T, B, H = h_ref.shape
    mask = mask_ref[...]                                   # (T, B, 1)
    h = h_ref[...] * mask                                  # encoder padded-row masking
    dw = jax.nn.sigmoid(
        jnp.dot(h.reshape(T * B, H), wd_ref[...], preferred_element_type=jnp.float32)
        + bd_ref[...]).reshape(T, B, H)
    sty = h * dw
    cont = h * (1.0 - dw)
    sty_ref[...] = sty
    cont_ref[...] = cont

    wax = wax_ref[...][None]                               # (1, 1, H)
    war = war_ref[...][None]
    ba = ba_ref[...]                                       # (1, 1)

    def post_attn(xv):
        root = mask * xv[0:1, :, :]                        # root[valid t] = xv[t=0]
        # attention logits via lane-reductions (no width-1 MXU dots)
        logit = (jnp.sum(xv * wax, axis=-1, keepdims=True)
                 + jnp.sum(root * war, axis=-1, keepdims=True) + ba)   # (T, B, 1)
        logit = logit * mask
        logit = jnp.where(logit == 0.0, -jnp.inf, logit)   # masked_fill_(attn == 0, -inf)
        m = jnp.max(logit, axis=0, keepdims=True)
        e = jnp.exp(logit - m)
        attn = e / jnp.sum(e, axis=0, keepdims=True)       # softmax over the sequence
        return jnp.sum(xv * attn, axis=0)                  # (B, H)

    sty_all = post_attn(sty)
    cont_all = post_attn(cont)

    # fused classifier projection: columns = [style(8) | style_rumor(2) | cont_rumor(2)]
    res_s = jnp.dot(sty_all, wcls_ref[...], preferred_element_type=jnp.float32)
    res_c = jnp.dot(cont_all, wcls_ref[...], preferred_element_type=jnp.float32)
    sps_ref[...] = jax.nn.sigmoid(res_s[:, :8])
    spc_ref[...] = jax.nn.sigmoid(res_c[:, :8])            # GRL is identity in forward
    ps_ref[...] = res_s[:, 8:10] + bsr_ref[...]
    pc_ref[...] = res_c[:, 10:12] + bcr_ref[...]


def head(h_tm, mask_tm, p):
    T, B, H = h_tm.shape
    wa = p["attn_w"]                                       # (1, 2H)
    wcls = jnp.concatenate([p["style_w"].T, p["sr_w"].T, p["cr_w"].T], axis=1)  # (H, 12)
    out_shapes = (
        jax.ShapeDtypeStruct((T, B, H), jnp.float32),      # cont (time-major)
        jax.ShapeDtypeStruct((T, B, H), jnp.float32),      # sty  (time-major)
        jax.ShapeDtypeStruct((B, 8), jnp.float32),         # stypred_cont
        jax.ShapeDtypeStruct((B, 8), jnp.float32),         # stypred_sty
        jax.ShapeDtypeStruct((B, 2), jnp.float32),         # pred_cont
        jax.ShapeDtypeStruct((B, 2), jnp.float32),         # pred_sty
    )
    return pl.pallas_call(_head_kernel, out_shape=out_shapes)(
        h_tm, mask_tm,
        p["dis_w"].T, p["dis_b"][None, :],
        wa[:, :H], wa[:, H:], p["attn_b"][None, :],
        wcls, p["sr_b"][None, :], p["cr_b"][None, :])


# -----------------------------------------------------------------------------
# Parameter init (deterministic, PyTorch-like uniform bounds)
# -----------------------------------------------------------------------------
def _unif(key, shape, bound):
    return jax.random.uniform(key, shape, jnp.float32, -bound, bound)


def init_gru_layer(key, din, h):
    ks = jax.random.split(key, 8)
    b = 1.0 / jnp.sqrt(h)
    return dict(
        wih_f=_unif(ks[0], (3 * h, din), b), whh_f=_unif(ks[1], (3 * h, h), b),
        bih_f=_unif(ks[2], (3 * h,), b), bhh_f=_unif(ks[3], (3 * h,), b),
        wih_b=_unif(ks[4], (3 * h, din), b), whh_b=_unif(ks[5], (3 * h, h), b),
        bih_b=_unif(ks[6], (3 * h,), b), bhh_b=_unif(ks[7], (3 * h,), b),
        gamma=jnp.ones((h,), jnp.float32), beta=jnp.zeros((h,), jnp.float32))


def init_params(key, f_in, f_hid, num_layers):
    keys = jax.random.split(key, 2 * num_layers + 8)
    it = iter(keys)
    enc = [init_gru_layer(next(it), f_in if i == 0 else f_hid, f_hid) for i in range(num_layers)]
    dec = [init_gru_layer(next(it), f_hid, f_hid) for i in range(num_layers)]
    bh = 1.0 / jnp.sqrt(f_hid)
    return dict(
        enc_gru=enc, dec_gru=dec,
        dis_w=_unif(next(it), (f_hid, f_hid), bh), dis_b=_unif(next(it), (f_hid,), bh),
        attn_w=_unif(next(it), (1, 2 * f_hid), 1.0 / jnp.sqrt(2 * f_hid)),
        attn_b=_unif(next(it), (1,), 1.0 / jnp.sqrt(2 * f_hid)),
        style_w=_unif(next(it), (8, f_hid), bh),
        sr_w=_unif(next(it), (2, f_hid), bh), sr_b=jnp.zeros((2,), jnp.float32),
        cr_w=_unif(next(it), (2, f_hid), bh), cr_b=jnp.zeros((2,), jnp.float32),
        dec_out_w=_unif(next(it), (f_in, f_hid), bh), dec_out_b=jnp.zeros((f_in,), jnp.float32))


# -----------------------------------------------------------------------------
# Full BIGRU_stymix forward (3 pallas_calls, time-major internally)
# -----------------------------------------------------------------------------
@jax.jit
def bigru_stymix_forward(x, p):
    # dense-mask equivalent of torch.nonzero(torch.sum(x, -1), as_tuple=True)
    mask_bt = (jnp.sum(x, axis=-1) != 0).astype(jnp.float32)         # (B, T)
    x_tm = jnp.transpose(x, (1, 0, 2))                               # single transpose in
    mask_tm = jnp.transpose(mask_bt)[:, :, None]                     # (T, B, 1)

    h_tm = gru_stack(x_tm, p["enc_gru"])                             # fused encoder
    cont_tm, sty_tm, spc, sps, pc, ps = head(h_tm, mask_tm, p)       # fused head
    x_rec_tm = gru_stack(cont_tm, p["dec_gru"],                      # fused decoder + out
                         proj=(p["dec_out_w"], p["dec_out_b"]), mask_tm=mask_tm)

    cont = jnp.transpose(cont_tm, (1, 0, 2))
    sty = jnp.transpose(sty_tm, (1, 0, 2))
    x_rec = jnp.transpose(x_rec_tm, (1, 0, 2))
    return cont, sty, spc, sps, pc, ps, x_rec


if __name__ == "__main__":
    B, T, F_IN, F_HID, NUM_LAYERS = 2, 8, 16, 32, 2
    key = jax.random.PRNGKey(0)
    kx, kp = jax.random.split(key)

    params = init_params(kp, F_IN, F_HID, NUM_LAYERS)

    x = jax.random.normal(kx, (B, T, F_IN), jnp.float32)
    # create some all-zero (padding) rows so the nonzero mask is exercised
    x = x.at[0, 6:, :].set(0.0)
    x = x.at[1, 5:, :].set(0.0)

    outs = bigru_stymix_forward(x, params)
    outs = jax.block_until_ready(outs)

    cont, sty, spc, sps, pc, ps, x_rec = outs
    assert cont.shape == (B, T, F_HID) and sty.shape == (B, T, F_HID)
    assert spc.shape == (B, 8) and sps.shape == (B, 8)
    assert pc.shape == (B, 2) and ps.shape == (B, 2)
    assert x_rec.shape == (B, T, F_IN)
    assert all(bool(jnp.all(jnp.isfinite(o))) for o in outs)
    print("KERNEL_OK")
</pallas_src>

<mosaic_0001>
module attributes {stable_mosaic.version = 11 : i64} {
  func.func @kernel(%arg0: memref<8x2x16xf32, #tpu.memory_space<vmem>>, %arg1: memref<16x256xf32, #tpu.memory_space<vmem>>, %arg2: memref<32x96xf32, #tpu.memory_space<vmem>>, %arg3: memref<32x96xf32, #tpu.memory_space<vmem>>, %arg4: memref<1x256xf32, #tpu.memory_space<vmem>>, %arg5: memref<1x32xf32, #tpu.memory_space<vmem>>, %arg6: memref<1x32xf32, #tpu.memory_space<vmem>>, %arg7: memref<1x32xf32, #tpu.memory_space<vmem>>, %arg8: memref<1x32xf32, #tpu.memory_space<vmem>>, %arg9: memref<32x256xf32, #tpu.memory_space<vmem>>, %arg10: memref<32x96xf32, #tpu.memory_space<vmem>>, %arg11: memref<32x96xf32, #tpu.memory_space<vmem>>, %arg12: memref<1x256xf32, #tpu.memory_space<vmem>>, %arg13: memref<1x32xf32, #tpu.memory_space<vmem>>, %arg14: memref<1x32xf32, #tpu.memory_space<vmem>>, %arg15: memref<1x32xf32, #tpu.memory_space<vmem>>, %arg16: memref<1x32xf32, #tpu.memory_space<vmem>>, %arg17: memref<8x2x32xf32, #tpu.memory_space<vmem>>, %arg18: memref<8x2x128xf32, #tpu.memory_space<vmem>>, %arg19: memref<8x2x128xf32, #tpu.memory_space<vmem>>, %arg20: memref<8x2x32xf32, #tpu.memory_space<vmem>>, %arg21: memref<8x2x32xf32, #tpu.memory_space<vmem>>, %arg22: memref<8x2x32xf32, #tpu.memory_space<vmem>>) attributes {dimension_semantics = [], scalar_prefetch = 0 : i64, scratch_operands = 5 : i64, tpu.core_type = #tpu.core_type<tc>} {
    %c0 = arith.constant 0 : index
    %c0_0 = arith.constant 0 : index
    %c0_1 = arith.constant 0 : index
    %0 = vector.load %arg0[%c0, %c0_0, %c0_1] : memref<8x2x16xf32, #tpu.memory_space<vmem>>, vector<8x2x16xf32>
    %1 = vector.shape_cast %0 : vector<8x2x16xf32> to vector<16x16xf32>
    %c0_2 = arith.constant 0 : index
    %c0_3 = arith.constant 0 : index
    %2 = vector.load %arg1[%c0_2, %c0_3] : memref<16x256xf32, #tpu.memory_space<vmem>>, vector<16x256xf32>
    %cst = arith.constant dense<0.000000e+00> : vector<16x256xf32>
    %3 = tpu.matmul %1, %2, %cst {dimension_numbers = #tpu.dot_dimension_numbers<[1], [0], [0], [1], [0, 0, 1, 1], [], []>} : vector<16x16xf32>, vector<16x256xf32>, vector<16x256xf32> -> vector<16x256xf32>
    %c0_4 = arith.constant 0 : index
    %c0_5 = arith.constant 0 : index
    %4 = vector.load %arg4[%c0_4, %c0_5] : memref<1x256xf32, #tpu.memory_space<vmem>>, vector<1x256xf32>
    %5 = vector.broadcast %4 : vector<1x256xf32> to vector<16x256xf32>
    %6 = arith.addf %3, %5 : vector<16x256xf32>
    %7 = vector.extract_strided_slice %6 {offsets = [0, 0], sizes = [16, 128], strides = [1, 1]} : vector<16x256xf32> to vector<16x128xf32>
    %8 = vector.shape_cast %7 : vector<16x128xf32> to vector<8x2x128xf32>
    %c0_6 = arith.constant 0 : index
    %c0_7 = arith.constant 0 : index
    %c0_8 = arith.constant 0 : index
    %9 = vector.load %arg18[%c0_6, %c0_7, %c0_8] : memref<8x2x128xf32, #tpu.memory_space<vmem>>, vector<8x2x128xf32>
    tpu.vector_store %arg18[%c0_6, %c0_7, %c0_8], %8 {strides = array<i32>} : memref<8x2x128xf32, #tpu.memory_space<vmem>>, vector<8x2x128xf32>,
    %10 = vector.extract_strided_slice %6 {offsets = [0, 128], sizes = [16, 128], strides = [1, 1]} : vector<16x256xf32> to vector<16x128xf32>
    %11 = vector.shape_cast %10 : vector<16x128xf32> to vector<8x2x128xf32>
    %c0_9 = arith.constant 0 : index
    %c0_10 = arith.constant 0 : index
    %c0_11 = arith.constant 0 : index
    %12 = vector.load %arg19[%c0_9, %c0_10, %c0_11] : memref<8x2x128xf32, #tpu.memory_space<vmem>>, vector<8x2x128xf32>
    tpu.vector_store %arg19[%c0_9, %c0_10, %c0_11], %11 {strides = array<i32>} : memref<8x2x128xf32, #tpu.memory_space<vmem>>, vector<8x2x128xf32>,
    %c0_12 = arith.constant 0 : index
    %c0_13 = arith.constant 0 : index
    %13 = vector.load %arg2[%c0_12, %c0_13] : memref<32x96xf32, #tpu.memory_space<vmem>>, vector<32x96xf32>
    %c0_14 = arith.constant 0 : index
    %c0_15 = arith.constant 0 : index
    %14 = vector.load %arg3[%c0_14, %c0_15] : memref<32x96xf32, #tpu.memory_space<vmem>>, vector<32x96xf32>
    %c0_16 = arith.constant 0 : index
    %c0_17 = arith.constant 0 : index
    %15 = vector.load %arg5[%c0_16, %c0_17] : memref<1x32xf32, #tpu.memory_space<vmem>>, vector<1x32xf32>
    %16 = vector.shape_cast %15 : vector<1x32xf32> to vector<1x32xf32>
    %17 = vector.broadcast %16 : vector<1x32xf32> to vector<2x32xf32>
    %c0_18 = arith.constant 0 : index
    %c0_19 = arith.constant 0 : index
    %18 = vector.load %arg6[%c0_18, %c0_19] : memref<1x32xf32, #tpu.memory_space<vmem>>, vector<1x32xf32>
    %19 = vector.shape_cast %18 : vector<1x32xf32> to vector<1x32xf32>
    %20 = vector.broadcast %19 : vector<1x32xf32> to vector<2x32xf32>
    %cst_20 = arith.constant 0.000000e+00 : f32
    %21 = vector.broadcast %cst_20 : f32 to vector<2x32xf32>
    %c0_i32 = arith.constant 0 : i32
    %c8_i32 = arith.constant 8 : i32
    %22 = arith.addi %c0_i32, %c8_i32 : i32
    %c1_i32 = arith.constant 1 : i32
    %23:2 = scf.for %arg23 = %c0_i32 to %22 step %c1_i32 iter_args(%arg24 = %21, %arg25 = %21) -> (vector<2x32xf32>, vector<2x32xf32>)  : i32 {
      %c7_i32 = arith.constant 7 : i32
      %108 = arith.subi %c7_i32, %arg23 : i32
      %cst_85 = arith.constant dense<0.000000e+00> : vector<2x96xf32>
      %109 = tpu.matmul %arg24, %13, %cst_85 {dimension_numbers = #tpu.dot_dimension_numbers<[1], [0], [0], [1], [0, 0, 1, 1], [], []>} : vector<2x32xf32>, vector<32x96xf32>, vector<2x96xf32> -> vector<2x96xf32>
      %cst_86 = arith.constant dense<0.000000e+00> : vector<2x96xf32>
      %110 = tpu.matmul %arg25, %14, %cst_86 {dimension_numbers = #tpu.dot_dimension_numbers<[1], [0], [0], [1], [0, 0, 1, 1], [], []>} : vector<2x32xf32>, vector<32x96xf32>, vector<2x96xf32> -> vector<2x96xf32>
      %111 = arith.index_cast %arg23 : i32 to index
      %c0_87 = arith.constant 0 : index
      %c0_88 = arith.constant 0 : index
      %112 = vector.load %arg18[%111, %c0_87, %c0_88] : memref<8x2x128xf32, #tpu.memory_space<vmem>>, vector<1x2x128xf32>
      %113 = vector.shape_cast %112 : vector<1x2x128xf32> to vector<2x128xf32>
      %114 = vector.extract_strided_slice %113 {offsets = [0, 0], sizes = [2, 32], strides = [1, 1]} : vector<2x128xf32> to vector<2x32xf32>
      %115 = vector.extract_strided_slice %109 {offsets = [0, 0], sizes = [2, 32], strides = [1, 1]} : vector<2x96xf32> to vector<2x32xf32>
      %116 = arith.addf %114, %115 : vector<2x32xf32>
      %117 = arith.negf %116 : vector<2x32xf32>
      %118 = math.exp %117 : vector<2x32xf32>
      %cst_89 = arith.constant 1.000000e+00 : f32
      %119 = vector.broadcast %cst_89 : f32 to vector<2x32xf32>
      %120 = arith.addf %119, %118 : vector<2x32xf32>
      %121 = arith.divf %119, %120 : vector<2x32xf32>
      %122 = vector.extract_strided_slice %113 {offsets = [0, 32], sizes = [2, 32], strides = [1, 1]} : vector<2x128xf32> to vector<2x32xf32>
      %123 = vector.extract_strided_slice %109 {offsets = [0, 32], sizes = [2, 32], strides = [1, 1]} : vector<2x96xf32> to vector<2x32xf32>
      %124 = arith.addf %122, %123 : vector<2x32xf32>
      %125 = arith.negf %124 : vector<2x32xf32>
      %126 = math.exp %125 : vector<2x32xf32>
      %cst_90 = arith.constant 1.000000e+00 : f32
      %127 = vector.broadcast %cst_90 : f32 to vector<2x32xf32>
      %128 = arith.addf %127, %126 : vector<2x32xf32>
      %129 = arith.divf %127, %128 : vector<2x32xf32>
      %130 = vector.extract_strided_slice %113 {offsets = [0, 64], sizes = [2, 32], strides = [1, 1]} : vector<2x128xf32> to vector<2x32xf32>
      %131 = vector.extract_strided_slice %109 {offsets = [0, 64], sizes = [2, 32], strides = [1, 1]} : vector<2x96xf32> to vector<2x32xf32>
      %132 = arith.addf %131, %17 : vector<2x32xf32>
      %133 = arith.mulf %121, %132 : vector<2x32xf32>
      %134 = arith.addf %130, %133 : vector<2x32xf32>
      %135 = math.tanh %134 : vector<2x32xf32>
      %cst_91 = arith.constant 1.000000e+00 : f32
      %136 = vector.broadcast %cst_91 : f32 to vector<2x32xf32>
      %137 = arith.subf %136, %129 : vector<2x32xf32>
      %138 = arith.mulf %137, %135 : vector<2x32xf32>
      %139 = arith.mulf %129, %arg24 : vector<2x32xf32>
      %140 = arith.addf %138, %139 : vector<2x32xf32>
      %141 = arith.index_cast %108 : i32 to index
      %c0_92 = arith.constant 0 : index
      %c0_93 = arith.constant 0 : index
      %142 = vector.load %arg19[%141, %c0_92, %c0_93] : memref<8x2x128xf32, #tpu.memory_space<vmem>>, vector<1x2x128xf32>
      %143 = vector.shape_cast %142 : vector<1x2x128xf32> to vector<2x128xf32>
      %144 = vector.extract_strided_slice %143 {offsets = [0, 0], sizes = [2, 32], strides = [1, 1]} : vector<2x128xf32> to vector<2x32xf32>
      %145 = vector.extract_strided_slice %110 {offsets = [0, 0], sizes = [2, 32], strides = [1, 1]} : vector<2x96xf32> to vector<2x32xf32>
      %146 = arith.addf %144, %145 : vector<2x32xf32>
      %147 = arith.negf %146 : vector<2x32xf32>
      %148 = math.exp %147 : vector<2x32xf32>
      %cst_94 = arith.constant 1.000000e+00 : f32
      %149 = vector.broadcast %cst_94 : f32 to vector<2x32xf32>
      %150 = arith.addf %149, %148 : vector<2x32xf32>
      %151 = arith.divf %149, %150 : vector<2x32xf32>
      %152 = vector.extract_strided_slice %143 {offsets = [0, 32], sizes = [2, 32], strides = [1, 1]} : vector<2x128xf32> to vector<2x32xf32>
      %153 = vector.extract_strided_slice %110 {offsets = [0, 32], sizes = [2, 32], strides = [1, 1]} : vector<2x96xf32> to vector<2x32xf32>
      %154 = arith.addf %152, %153 : vector<2x32xf32>
      %155 = arith.negf %154 : vector<2x32xf32>
      %156 = math.exp %155 : vector<2x32xf32>
      %cst_95 = arith.constant 1.000000e+00 : f32
      %157 = vector.broadcast %cst_95 : f32 to vector<2x32xf32>
      %158 = arith.addf %157, %156 : vector<2x32xf32>
      %159 = arith.divf %157, %158 : vector<2x32xf32>
      %160 = vector.extract_strided_slice %143 {offsets = [0, 64], sizes = [2, 32], strides = [1, 1]} : vector<2x128xf32> to vector<2x32xf32>
      %161 = vector.extract_strided_slice %110 {offsets = [0, 64], sizes = [2, 32], strides = [1, 1]} : vector<2x96xf32> to vector<2x32xf32>
      %162 = arith.addf %161, %20 : vector<2x32xf32>
      %163 = arith.mulf %151, %162 : vector<2x32xf32>
      %164 = arith.addf %160, %163 : vector<2x32xf32>
      %165 = math.tanh %164 : vector<2x32xf32>
      %cst_96 = arith.constant 1.000000e+00 : f32
      %166 = vector.broadcast %cst_96 : f32 to vector<2x32xf32>
      %167 = arith.subf %166, %159 : vector<2x32xf32>
      %168 = arith.mulf %167, %165 : vector<2x32xf32>
      %169 = arith.mulf %159, %arg25 : vector<2x32xf32>
      %170 = arith.addf %168, %169 : vector<2x32xf32>
      %171 = arith.index_cast %arg23 : i32 to index
      %c0_97 = arith.constant 0 : index
      %c0_98 = arith.constant 0 : index
      %172 = vector.load %arg20[%171, %c0_97, %c0_98] : memref<8x2x32xf32, #tpu.memory_space<vmem>>, vector<1x2x32xf32>
      %173 = vector.shape_cast %172 : vector<1x2x32xf32> to vector<2x32xf32>
      %174 = vector.shape_cast %140 : vector<2x32xf32> to vector<1x2x32xf32>
      tpu.vector_store %arg20[%171, %c0_97, %c0_98], %174 {strides = array<i32>} : memref<8x2x32xf32, #tpu.memory_space<vmem>>, vector<1x2x32xf32>,
      %175 = arith.index_cast %108 : i32 to index
      %c0_99 = arith.constant 0 : index
      %c0_100 = arith.constant 0 : index
      %176 = vector.load %arg21[%175, %c0_99, %c0_100] : memref<8x2x32xf32, #tpu.memory_space<vmem>>, vector<1x2x32xf32>
      %177 = vector.shape_cast %176 : vector<1x2x32xf32> to vector<2x32xf32>
      %178 = vector.shape_cast %170 : vector<2x32xf32> to vector<1x2x32xf32>
      tpu.vector_store %arg21[%175, %c0_99, %c0_100], %178 {strides = array<i32>} : memref<8x2x32xf32, #tpu.memory_space<vmem>>, vector<1x2x32xf32>,
      scf.yield %140, %170 : vector<2x32xf32>, vector<2x32xf32>
    }
    %c8_i32_21 = arith.constant 8 : i32
    %c0_22 = arith.constant 0 : index
    %c0_23 = arith.constant 0 : index
    %c0_24 = arith.constant 0 : index
    %24 = vector.load %arg20[%c0_22, %c0_23, %c0_24] : memref<8x2x32xf32, #tpu.memory_space<vmem>>, vector<8x2x32xf32>
    %c0_25 = arith.constant 0 : index
    %c0_26 = arith.constant 0 : index
    %c0_27 = arith.constant 0 : index
    %25 = vector.load %arg21[%c0_25, %c0_26, %c0_27] : memref<8x2x32xf32, #tpu.memory_space<vmem>>, vector<8x2x32xf32>
    %26 = arith.addf %24, %25 : vector<8x2x32xf32>
    %cst_28 = arith.constant dense<0.000000e+00> : vector<8x2xf32>
    %27 = vector.multi_reduction <add>, %26, %cst_28 [2] : vector<8x2x32xf32> to vector<8x2xf32>
    %28 = vector.shape_cast %27 : vector<8x2xf32> to vector<8x2x1xf32>
    %cst_29 = arith.constant 3.200000e+01 : f32
    %29 = vector.broadcast %cst_29 : f32 to vector<8x2x1xf32>
    %30 = arith.divf %28, %29 : vector<8x2x1xf32>
    %31 = vector.broadcast %30 : vector<8x2x1xf32> to vector<8x2x32xf32>
    %32 = arith.subf %26, %31 : vector<8x2x32xf32>
    %33 = arith.mulf %32, %32 : vector<8x2x32xf32>
    %cst_30 = arith.constant dense<0.000000e+00> : vector<8x2xf32>
    %34 = vector.multi_reduction <add>, %33, %cst_30 [2] : vector<8x2x32xf32> to vector<8x2xf32>
    %35 = vector.shape_cast %34 : vector<8x2xf32> to vector<8x2x1xf32>
    %cst_31 = arith.constant 3.200000e+01 : f32
    %36 = vector.broadcast %cst_31 : f32 to vector<8x2x1xf32>
    %37 = arith.divf %35, %36 : vector<8x2x1xf32>
    %38 = vector.broadcast %30 : vector<8x2x1xf32> to vector<8x2x32xf32>
    %39 = arith.subf %26, %38 : vector<8x2x32xf32>
    %cst_32 = arith.constant 9.99999974E-6 : f32
    %40 = vector.broadcast %cst_32 : f32 to vector<8x2x1xf32>
    %41 = arith.addf %37, %40 : vector<8x2x1xf32>
    %42 = math.rsqrt %41 : vector<8x2x1xf32>
    %43 = vector.broadcast %42 : vector<8x2x1xf32> to vector<8x2x32xf32>
    %44 = arith.mulf %39, %43 : vector<8x2x32xf32>
    %c0_33 = arith.constant 0 : index
    %c0_34 = arith.constant 0 : index
    %45 = vector.load %arg7[%c0_33, %c0_34] : memref<1x32xf32, #tpu.memory_space<vmem>>, vector<1x32xf32>
    %46 = vector.shape_cast %45 : vector<1x32xf32> to vector<1x1x32xf32>
    %47 = vector.broadcast %46 : vector<1x1x32xf32> to vector<8x2x32xf32>
    %48 = arith.mulf %44, %47 : vector<8x2x32xf32>
    %c0_35 = arith.constant 0 : index
    %c0_36 = arith.constant 0 : index
    %49 = vector.load %arg8[%c0_35, %c0_36] : memref<1x32xf32, #tpu.memory_space<vmem>>, vector<1x32xf32>
    %50 = vector.shape_cast %49 : vector<1x32xf32> to vector<1x1x32xf32>
    %51 = vector.broadcast %50 : vector<1x1x32xf32> to vector<8x2x32xf32>
    %52 = arith.addf %48, %51 : vector<8x2x32xf32>
    %c0_37 = arith.constant 0 : index
    %c0_38 = arith.constant 0 : index
    %c0_39 = arith.constant 0 : index
    %53 = vector.load %arg22[%c0_37, %c0_38, %c0_39] : memref<8x2x32xf32, #tpu.memory_space<vmem>>, vector<8x2x32xf32>
    tpu.vector_store %arg22[%c0_37, %c0_38, %c0_39], %52 {strides = array<i32>} : memref<8x2x32xf32, #tpu.memory_space<vmem>>, vector<8x2x32xf32>,
    %c0_40 = arith.constant 0 : index
    %c0_41 = arith.constant 0 : index
    %c0_42 = arith.constant 0 : index
    %54 = vector.load %arg22[%c0_40, %c0_41, %c0_42] : memref<8x2x32xf32, #tpu.memory_space<vmem>>, vector<8x2x32xf32>
    %55 = vector.shape_cast %54 : vector<8x2x32xf32> to vector<16x32xf32>
    %c0_43 = arith.constant 0 : index
    %c0_44 = arith.constant 0 : index
    %56 = vector.load %arg9[%c0_43, %c0_44] : memref<32x256xf32, #tpu.memory_space<vmem>>, vector<32x256xf32>
    %cst_45 = arith.constant dense<0.000000e+00> : vector<16x256xf32>
    %57 = tpu.matmul %55, %56, %cst_45 {dimension_numbers = #tpu.dot_dimension_numbers<[1], [0], [0], [1], [0, 0, 1, 1], [], []>} : vector<16x32xf32>, vector<32x256xf32>, vector<16x256xf32> -> vector<16x256xf32>
    %c0_46 = arith.constant 0 : index
    %c0_47 = arith.constant 0 : index
    %58 = vector.load %arg12[%c0_46, %c0_47] : memref<1x256xf32, #tpu.memory_space<vmem>>, vector<1x256xf32>
    %59 = vector.broadcast %58 : vector<1x256xf32> to vector<16x256xf32>
    %60 = arith.addf %57, %59 : vector<16x256xf32>
    %61 = vector.extract_strided_slice %60 {offsets = [0, 0], sizes = [16, 128], strides = [1, 1]} : vector<16x256xf32> to vector<16x128xf32>
    %62 = vector.shape_cast %61 : vector<16x128xf32> to vector<8x2x128xf32>
    %c0_48 = arith.constant 0 : index
    %c0_49 = arith.constant 0 : index
    %c0_50 = arith.constant 0 : index
    %63 = vector.load %arg18[%c0_48, %c0_49, %c0_50] : memref<8x2x128xf32, #tpu.memory_space<vmem>>, vector<8x2x128xf32>
    tpu.vector_store %arg18[%c0_48, %c0_49, %c0_50], %62 {strides = array<i32>} : memref<8x2x128xf32, #tpu.memory_space<vmem>>, vector<8x2x128xf32>,
    %64 = vector.extract_strided_slice %60 {offsets = [0, 128], sizes = [16, 128], strides = [1, 1]} : vector<16x256xf32> to vector<16x128xf32>
    %65 = vector.shape_cast %64 : vector<16x128xf32> to vector<8x2x128xf32>
    %c0_51 = arith.constant 0 : index
    %c0_52 = arith.constant 0 : index
    %c0_53 = arith.constant 0 : index
    %66 = vector.load %arg19[%c0_51, %c0_52, %c0_53] : memref<8x2x128xf32, #tpu.memory_space<vmem>>, vector<8x2x128xf32>
    tpu.vector_store %arg19[%c0_51, %c0_52, %c0_53], %65 {strides = array<i32>} : memref<8x2x128xf32, #tpu.memory_space<vmem>>, vector<8x2x128xf32>,
    %c0_54 = arith.constant 0 : index
    %c0_55 = arith.constant 0 : index
    %67 = vector.load %arg10[%c0_54, %c0_55] : memref<32x96xf32, #tpu.memory_space<vmem>>, vector<32x96xf32>
    %c0_56 = arith.constant 0 : index
    %c0_57 = arith.constant 0 : index
    %68 = vector.load %arg11[%c0_56, %c0_57] : memref<32x96xf32, #tpu.memory_space<vmem>>, vector<32x96xf32>
    %c0_58 = arith.constant 0 : index
    %c0_59 = arith.constant 0 : index
    %69 = vector.load %arg13[%c0_58, %c0_59] : memref<1x32xf32, #tpu.memory_space<vmem>>, vector<1x32xf32>
    %70 = vector.shape_cast %69 : vector<1x32xf32> to vector<1x32xf32>
    %71 = vector.broadcast %70 : vector<1x32xf32> to vector<2x32xf32>
    %c0_60 = arith.constant 0 : index
    %c0_61 = arith.constant 0 : index
    %72 = vector.load %arg14[%c0_60, %c0_61] : memref<1x32xf32, #tpu.memory_space<vmem>>, vector<1x32xf32>
    %73 = vector.shape_cast %72 : vector<1x32xf32> to vector<1x32xf32>
    %74 = vector.broadcast %73 : vector<1x32xf32> to vector<2x32xf32>
    %cst_62 = arith.constant 0.000000e+00 : f32
    %75 = vector.broadcast %cst_62 : f32 to vector<2x32xf32>
    %c0_i32_63 = arith.constant 0 : i32
    %c8_i32_64 = arith.constant 8 : i32
    %76 = arith.addi %c0_i32_63, %c8_i32_64 : i32
    %c1_i32_65 = arith.constant 1 : i32
    %77:2 = scf.for %arg23 = %c0_i32_63 to %76 step %c1_i32_65 iter_args(%arg24 = %75, %arg25 = %75) -> (vector<2x32xf32>, vector<2x32xf32>)  : i32 {
      %c7_i32 = arith.constant 7 : i32
      %108 = arith.subi %c7_i32, %arg23 : i32
      %cst_85 = arith.constant dense<0.000000e+00> : vector<2x96xf32>
      %109 = tpu.matmul %arg24, %67, %cst_85 {dimension_numbers = #tpu.dot_dimension_numbers<[1], [0], [0], [1], [0, 0, 1, 1], [], []>} : vector<2x32xf32>, vector<32x96xf32>, vector<2x96xf32> -> vector<2x96xf32>
      %cst_86 = arith.constant dense<0.000000e+00> : vector<2x96xf32>
      %110 = tpu.matmul %arg25, %68, %cst_86 {dimension_numbers = #tpu.dot_dimension_numbers<[1], [0], [0], [1], [0, 0, 1, 1], [], []>} : vector<2x32xf32>, vector<32x96xf32>, vector<2x96xf32> -> vector<2x96xf32>
      %111 = arith.index_cast %arg23 : i32 to index
      %c0_87 = arith.constant 0 : index
      %c0_88 = arith.constant 0 : index
      %112 = vector.load %arg18[%111, %c0_87, %c0_88] : memref<8x2x128xf32, #tpu.memory_space<vmem>>, vector<1x2x128xf32>
      %113 = vector.shape_cast %112 : vector<1x2x128xf32> to vector<2x128xf32>
      %114 = vector.extract_strided_slice %113 {offsets = [0, 0], sizes = [2, 32], strides = [1, 1]} : vector<2x128xf32> to vector<2x32xf32>
      %115 = vector.extract_strided_slice %109 {offsets = [0, 0], sizes = [2, 32], strides = [1, 1]} : vector<2x96xf32> to vector<2x32xf32>
      %116 = arith.addf %114, %115 : vector<2x32xf32>
      %117 = arith.negf %116 : vector<2x32xf32>
      %118 = math.exp %117 : vector<2x32xf32>
      %cst_89 = arith.constant 1.000000e+00 : f32
      %119 = vector.broadcast %cst_89 : f32 to vector<2x32xf32>
      %120 = arith.addf %119, %118 : vector<2x32xf32>
      %121 = arith.divf %119, %120 : vector<2x32xf32>
      %122 = vector.extract_strided_slice %113 {offsets = [0, 32], sizes = [2, 32], strides = [1, 1]} : vector<2x128xf32> to vector<2x32xf32>
      %123 = vector.extract_strided_slice %109 {offsets = [0, 32], sizes = [2, 32], strides = [1, 1]} : vector<2x96xf32> to vector<2x32xf32>
      %124 = arith.addf %122, %123 : vector<2x32xf32>
      %125 = arith.negf %124 : vector<2x32xf32>
      %126 = math.exp %125 : vector<2x32xf32>
      %cst_90 = arith.constant 1.000000e+00 : f32
      %127 = vector.broadcast %cst_90 : f32 to vector<2x32xf32>
      %128 = arith.addf %127, %126 : vector<2x32xf32>
      %129 = arith.divf %127, %128 : vector<2x32xf32>
      %130 = vector.extract_strided_slice %113 {offsets = [0, 64], sizes = [2, 32], strides = [1, 1]} : vector<2x128xf32> to vector<2x32xf32>
      %131 = vector.extract_strided_slice %109 {offsets = [0, 64], sizes = [2, 32], strides = [1, 1]} : vector<2x96xf32> to vector<2x32xf32>
      %132 = arith.addf %131, %71 : vector<2x32xf32>
      %133 = arith.mulf %121, %132 : vector<2x32xf32>
      %134 = arith.addf %130, %133 : vector<2x32xf32>
      %135 = math.tanh %134 : vector<2x32xf32>
      %cst_91 = arith.constant 1.000000e+00 : f32
      %136 = vector.broadcast %cst_91 : f32 to vector<2x32xf32>
      %137 = arith.subf %136, %129 : vector<2x32xf32>
      %138 = arith.mulf %137, %135 : vector<2x32xf32>
      %139 = arith.mulf %129, %arg24 : vector<2x32xf32>
      %140 = arith.addf %138, %139 : vector<2x32xf32>
      %141 = arith.index_cast %108 : i32 to index
      %c0_92 = arith.constant 0 : index
      %c0_93 = arith.constant 0 : index
      %142 = vector.load %arg19[%141, %c0_92, %c0_93] : memref<8x2x128xf32, #tpu.memory_space<vmem>>, vector<1x2x128xf32>
      %143 = vector.shape_cast %142 : vector<1x2x128xf32> to vector<2x128xf32>
      %144 = vector.extract_strided_slice %143 {offsets = [0, 0], sizes = [2, 32], strides = [1, 1]} : vector<2x128xf32> to vector<2x32xf32>
      %145 = vector.extract_strided_slice %110 {offsets = [0, 0], sizes = [2, 32], strides = [1, 1]} : vector<2x96xf32> to vector<2x32xf32>
      %146 = arith.addf %144, %145 : vector<2x32xf32>
      %147 = arith.negf %146 : vector<2x32xf32>
      %148 = math.exp %147 : vector<2x32xf32>
      %cst_94 = arith.constant 1.000000e+00 : f32
      %149 = vector.broadcast %cst_94 : f32 to vector<2x32xf32>
      %150 = arith.addf %149, %148 : vector<2x32xf32>
      %151 = arith.divf %149, %150 : vector<2x32xf32>
      %152 = vector.extract_strided_slice %143 {offsets = [0, 32], sizes = [2, 32], strides = [1, 1]} : vector<2x128xf32> to vector<2x32xf32>
      %153 = vector.extract_strided_slice %110 {offsets = [0, 32], sizes = [2, 32], strides = [1, 1]} : vector<2x96xf32> to vector<2x32xf32>
      %154 = arith.addf %152, %153 : vector<2x32xf32>
      %155 = arith.negf %154 : vector<2x32xf32>
      %156 = math.exp %155 : vector<2x32xf32>
      %cst_95 = arith.constant 1.000000e+00 : f32
      %157 = vector.broadcast %cst_95 : f32 to vector<2x32xf32>
      %158 = arith.addf %157, %156 : vector<2x32xf32>
      %159 = arith.divf %157, %158 : vector<2x32xf32>
      %160 = vector.extract_strided_slice %143 {offsets = [0, 64], sizes = [2, 32], strides = [1, 1]} : vector<2x128xf32> to vector<2x32xf32>
      %161 = vector.extract_strided_slice %110 {offsets = [0, 64], sizes = [2, 32], strides = [1, 1]} : vector<2x96xf32> to vector<2x32xf32>
      %162 = arith.addf %161, %74 : vector<2x32xf32>
      %163 = arith.mulf %151, %162 : vector<2x32xf32>
      %164 = arith.addf %160, %163 : vector<2x32xf32>
      %165 = math.tanh %164 : vector<2x32xf32>
      %cst_96 = arith.constant 1.000000e+00 : f32
      %166 = vector.broadcast %cst_96 : f32 to vector<2x32xf32>
      %167 = arith.subf %166, %159 : vector<2x32xf32>
      %168 = arith.mulf %167, %165 : vector<2x32xf32>
      %169 = arith.mulf %159, %arg25 : vector<2x32xf32>
      %170 = arith.addf %168, %169 : vector<2x32xf32>
      %171 = arith.index_cast %arg23 : i32 to index
      %c0_97 = arith.constant 0 : index
      %c0_98 = arith.constant 0 : index
      %172 = vector.load %arg20[%171, %c0_97, %c0_98] : memref<8x2x32xf32, #tpu.memory_space<vmem>>, vector<1x2x32xf32>
      %173 = vector.shape_cast %172 : vector<1x2x32xf32> to vector<2x32xf32>
      %174 = vector.shape_cast %140 : vector<2x32xf32> to vector<1x2x32xf32>
      tpu.vector_store %arg20[%171, %c0_97, %c0_98], %174 {strides = array<i32>} : memref<8x2x32xf32, #tpu.memory_space<vmem>>, vector<1x2x32xf32>,
      %175 = arith.index_cast %108 : i32 to index
      %c0_99 = arith.constant 0 : index
      %c0_100 = arith.constant 0 : index
      %176 = vector.load %arg21[%175, %c0_99, %c0_100] : memref<8x2x32xf32, #tpu.memory_space<vmem>>, vector<1x2x32xf32>
      %177 = vector.shape_cast %176 : vector<1x2x32xf32> to vector<2x32xf32>
      %178 = vector.shape_cast %170 : vector<2x32xf32> to vector<1x2x32xf32>
      tpu.vector_store %arg21[%175, %c0_99, %c0_100], %178 {strides = array<i32>} : memref<8x2x32xf32, #tpu.memory_space<vmem>>, vector<1x2x32xf32>,
      scf.yield %140, %170 : vector<2x32xf32>, vector<2x32xf32>
    }
    %c8_i32_66 = arith.constant 8 : i32
    %c0_67 = arith.constant 0 : index
    %c0_68 = arith.constant 0 : index
    %c0_69 = arith.constant 0 : index
    %78 = vector.load %arg20[%c0_67, %c0_68, %c0_69] : memref<8x2x32xf32, #tpu.memory_space<vmem>>, vector<8x2x32xf32>
    %c0_70 = arith.constant 0 : index
    %c0_71 = arith.constant 0 : index
    %c0_72 = arith.constant 0 : index
    %79 = vector.load %arg21[%c0_70, %c0_71, %c0_72] : memref<8x2x32xf32, #tpu.memory_space<vmem>>, vector<8x2x32xf32>
    %80 = arith.addf %78, %79 : vector<8x2x32xf32>
    %cst_73 = arith.constant dense<0.000000e+00> : vector<8x2xf32>
    %81 = vector.multi_reduction <add>, %80, %cst_73 [2] : vector<8x2x32xf32> to vector<8x2xf32>
    %82 = vector.shape_cast %81 : vector<8x2xf32> to vector<8x2x1xf32>
    %cst_74 = arith.constant 3.200000e+01 : f32
    %83 = vector.broadcast %cst_74 : f32 to vector<8x2x1xf32>
    %84 = arith.divf %82, %83 : vector<8x2x1xf32>
    %85 = vector.broadcast %84 : vector<8x2x1xf32> to vector<8x2x32xf32>
    %86 = arith.subf %80, %85 : vector<8x2x32xf32>
    %87 = arith.mulf %86, %86 : vector<8x2x32xf32>
    %cst_75 = arith.constant dense<0.000000e+00> : vector<8x2xf32>
    %88 = vector.multi_reduction <add>, %87, %cst_75 [2] : vector<8x2x32xf32> to vector<8x2xf32>
    %89 = vector.shape_cast %88 : vector<8x2xf32> to vector<8x2x1xf32>
    %cst_76 = arith.constant 3.200000e+01 : f32
    %90 = vector.broadcast %cst_76 : f32 to vector<8x2x1xf32>
    %91 = arith.divf %89, %90 : vector<8x2x1xf32>
    %92 = vector.broadcast %84 : vector<8x2x1xf32> to vector<8x2x32xf32>
    %93 = arith.subf %80, %92 : vector<8x2x32xf32>
    %cst_77 = arith.constant 9.99999974E-6 : f32
    %94 = vector.broadcast %cst_77 : f32 to vector<8x2x1xf32>
    %95 = arith.addf %91, %94 : vector<8x2x1xf32>
    %96 = math.rsqrt %95 : vector<8x2x1xf32>
    %97 = vector.broadcast %96 : vector<8x2x1xf32> to vector<8x2x32xf32>
    %98 = arith.mulf %93, %97 : vector<8x2x32xf32>
    %c0_78 = arith.constant 0 : index
    %c0_79 = arith.constant 0 : index
    %99 = vector.load %arg15[%c0_78, %c0_79] : memref<1x32xf32, #tpu.memory_space<vmem>>, vector<1x32xf32>
    %100 = vector.shape_cast %99 : vector<1x32xf32> to vector<1x1x32xf32>
    %101 = vector.broadcast %100 : vector<1x1x32xf32> to vector<8x2x32xf32>
    %102 = arith.mulf %98, %101 : vector<8x2x32xf32>
    %c0_80 = arith.constant 0 : index
    %c0_81 = arith.constant 0 : index
    %103 = vector.load %arg16[%c0_80, %c0_81] : memref<1x32xf32, #tpu.memory_space<vmem>>, vector<1x32xf32>
    %104 = vector.shape_cast %103 : vector<1x32xf32> to vector<1x1x32xf32>
    %105 = vector.broadcast %104 : vector<1x1x32xf32> to vector<8x2x32xf32>
    %106 = arith.addf %102, %105 : vector<8x2x32xf32>
    %c0_82 = arith.constant 0 : index
    %c0_83 = arith.constant 0 : index
    %c0_84 = arith.constant 0 : index
    %107 = vector.load %arg17[%c0_82, %c0_83, %c0_84] : memref<8x2x32xf32, #tpu.memory_space<vmem>>, vector<8x2x32xf32>
    tpu.vector_store %arg17[%c0_82, %c0_83, %c0_84], %106 {strides = array<i32>} : memref<8x2x32xf32, #tpu.memory_space<vmem>>, vector<8x2x32xf32>,
    return
  }
}

module attributes {stable_mosaic.version = 11 : i64} {
  func.func @_head_kernel(%arg0: memref<8x2x32xf32, #tpu.memory_space<vmem>>, %arg1: memref<8x2x1xf32, #tpu.memory_space<vmem>>, %arg2: memref<32x32xf32, #tpu.memory_space<vmem>>, %arg3: memref<1x32xf32, #tpu.memory_space<vmem>>, %arg4: memref<1x32xf32, #tpu.memory_space<vmem>>, %arg5: memref<1x32xf32, #tpu.memory_space<vmem>>, %arg6: memref<1x1xf32, #tpu.memory_space<vmem>>, %arg7: memref<32x12xf32, #tpu.memory_space<vmem>>, %arg8: memref<1x2xf32, #tpu.memory_space<vmem>>, %arg9: memref<1x2xf32, #tpu.memory_space<vmem>>, %arg10: memref<8x2x32xf32, #tpu.memory_space<vmem>>, %arg11: memref<8x2x32xf32, #tpu.memory_space<vmem>>, %arg12: memref<2x8xf32, #tpu.memory_space<vmem>>, %arg13: memref<2x8xf32, #tpu.memory_space<vmem>>, %arg14: memref<2x2xf32, #tpu.memory_space<vmem>>, %arg15: memref<2x2xf32, #tpu.memory_space<vmem>>) attributes {dimension_semantics = [], scalar_prefetch = 0 : i64, scratch_operands = 0 : i64, tpu.core_type = #tpu.core_type<tc>} {
    %c0 = arith.constant 0 : index
    %c0_0 = arith.constant 0 : index
    %c0_1 = arith.constant 0 : index
    %0 = vector.load %arg1[%c0, %c0_0, %c0_1] : memref<8x2x1xf32, #tpu.memory_space<vmem>>, vector<8x2x1xf32>
    %c0_2 = arith.constant 0 : index
    %c0_3 = arith.constant 0 : index
    %c0_4 = arith.constant 0 : index
    %1 = vector.load %arg0[%c0_2, %c0_3, %c0_4] : memref<8x2x32xf32, #tpu.memory_space<vmem>>, vector<8x2x32xf32>
    %2 = vector.broadcast %0 : vector<8x2x1xf32> to vector<8x2x32xf32>
    %3 = arith.mulf %1, %2 : vector<8x2x32xf32>
    %4 = vector.shape_cast %3 : vector<8x2x32xf32> to vector<16x32xf32>
    %c0_5 = arith.constant 0 : index
    %c0_6 = arith.constant 0 : index
    %5 = vector.load %arg2[%c0_5, %c0_6] : memref<32x32xf32, #tpu.memory_space<vmem>>, vector<32x32xf32>
    %cst = arith.constant dense<0.000000e+00> : vector<16x32xf32>
    %6 = tpu.matmul %4, %5, %cst {dimension_numbers = #tpu.dot_dimension_numbers<[1], [0], [0], [1], [0, 0, 1, 1], [], []>} : vector<16x32xf32>, vector<32x32xf32>, vector<16x32xf32> -> vector<16x32xf32>
    %c0_7 = arith.constant 0 : index
    %c0_8 = arith.constant 0 : index
    %7 = vector.load %arg3[%c0_7, %c0_8] : memref<1x32xf32, #tpu.memory_space<vmem>>, vector<1x32xf32>
    %8 = vector.broadcast %7 : vector<1x32xf32> to vector<16x32xf32>
    %9 = arith.addf %6, %8 : vector<16x32xf32>
    %10 = arith.negf %9 : vector<16x32xf32>
    %11 = math.exp %10 : vector<16x32xf32>
    %cst_9 = arith.constant 1.000000e+00 : f32
    %12 = vector.broadcast %cst_9 : f32 to vector<16x32xf32>
    %13 = arith.addf %12, %11 : vector<16x32xf32>
    %14 = arith.divf %12, %13 : vector<16x32xf32>
    %15 = vector.shape_cast %14 : vector<16x32xf32> to vector<8x2x32xf32>
    %16 = arith.mulf %3, %15 : vector<8x2x32xf32>
    %cst_10 = arith.constant 1.000000e+00 : f32
    %17 = vector.broadcast %cst_10 : f32 to vector<8x2x32xf32>
    %18 = arith.subf %17, %15 : vector<8x2x32xf32>
    %19 = arith.mulf %3, %18 : vector<8x2x32xf32>
    %c0_11 = arith.constant 0 : index
    %c0_12 = arith.constant 0 : index
    %c0_13 = arith.constant 0 : index
    %20 = vector.load %arg11[%c0_11, %c0_12, %c0_13] : memref<8x2x32xf32, #tpu.memory_space<vmem>>, vector<8x2x32xf32>
    tpu.vector_store %arg11[%c0_11, %c0_12, %c0_13], %16 {strides = array<i32>} : memref<8x2x32xf32, #tpu.memory_space<vmem>>, vector<8x2x32xf32>,
    %c0_14 = arith.constant 0 : index
    %c0_15 = arith.constant 0 : index
    %c0_16 = arith.constant 0 : index
    %21 = vector.load %arg10[%c0_14, %c0_15, %c0_16] : memref<8x2x32xf32, #tpu.memory_space<vmem>>, vector<8x2x32xf32>
    tpu.vector_store %arg10[%c0_14, %c0_15, %c0_16], %19 {strides = array<i32>} : memref<8x2x32xf32, #tpu.memory_space<vmem>>, vector<8x2x32xf32>,
    %c0_17 = arith.constant 0 : index
    %c0_18 = arith.constant 0 : index
    %22 = vector.load %arg4[%c0_17, %c0_18] : memref<1x32xf32, #tpu.memory_space<vmem>>, vector<1x32xf32>
    %23 = vector.shape_cast %22 : vector<1x32xf32> to vector<1x1x32xf32>
    %c0_19 = arith.constant 0 : index
    %c0_20 = arith.constant 0 : index
    %24 = vector.load %arg5[%c0_19, %c0_20] : memref<1x32xf32, #tpu.memory_space<vmem>>, vector<1x32xf32>
    %25 = vector.shape_cast %24 : vector<1x32xf32> to vector<1x1x32xf32>
    %c0_21 = arith.constant 0 : index
    %c0_22 = arith.constant 0 : index
    %26 = vector.load %arg6[%c0_21, %c0_22] : memref<1x1xf32, #tpu.memory_space<vmem>>, vector<1x1xf32>
    %27 = vector.extract_strided_slice %16 {offsets = [0, 0, 0], sizes = [1, 2, 32], strides = [1, 1, 1]} : vector<8x2x32xf32> to vector<1x2x32xf32>
    %28 = vector.broadcast %0 : vector<8x2x1xf32> to vector<8x2x32xf32>
    %29 = vector.broadcast %27 : vector<1x2x32xf32> to vector<8x2x32xf32>
    %30 = arith.mulf %28, %29 : vector<8x2x32xf32>
    %31 = vector.broadcast %23 : vector<1x1x32xf32> to vector<8x2x32xf32>
    %32 = arith.mulf %16, %31 : vector<8x2x32xf32>
    %cst_23 = arith.constant dense<0.000000e+00> : vector<8x2xf32>
    %33 = vector.multi_reduction <add>, %32, %cst_23 [2] : vector<8x2x32xf32> to vector<8x2xf32>
    %34 = vector.shape_cast %33 : vector<8x2xf32> to vector<8x2x1xf32>
    %35 = vector.broadcast %25 : vector<1x1x32xf32> to vector<8x2x32xf32>
    %36 = arith.mulf %30, %35 : vector<8x2x32xf32>
    %cst_24 = arith.constant dense<0.000000e+00> : vector<8x2xf32>
    %37 = vector.multi_reduction <add>, %36, %cst_24 [2] : vector<8x2x32xf32> to vector<8x2xf32>
    %38 = vector.shape_cast %37 : vector<8x2xf32> to vector<8x2x1xf32>
    %39 = arith.addf %34, %38 : vector<8x2x1xf32>
    %40 = vector.shape_cast %26 : vector<1x1xf32> to vector<1x1x1xf32>
    %41 = vector.broadcast %40 : vector<1x1x1xf32> to vector<8x2x1xf32>
    %42 = arith.addf %39, %41 : vector<8x2x1xf32>
    %43 = arith.mulf %42, %0 : vector<8x2x1xf32>
    %cst_25 = arith.constant 0.000000e+00 : f32
    %44 = vector.broadcast %cst_25 : f32 to vector<8x2x1xf32>
    %45 = arith.cmpf oeq, %43, %44 : vector<8x2x1xf32>
    %cst_26 = arith.constant 0xFF800000 : f32
    %46 = vector.broadcast %cst_26 : f32 to vector<8x2x1xf32>
    %47 = arith.select %45, %46, %43 : vector<8x2x1xi1>, vector<8x2x1xf32>
    %cst_27 = arith.constant dense<0xFF800000> : vector<2x1xf32>
    %48 = vector.multi_reduction <maximumf>, %47, %cst_27 [0] : vector<8x2x1xf32> to vector<2x1xf32>
    %49 = vector.shape_cast %48 : vector<2x1xf32> to vector<1x2x1xf32>
    %50 = vector.broadcast %49 : vector<1x2x1xf32> to vector<8x2x1xf32>
    %51 = arith.subf %47, %50 : vector<8x2x1xf32>
    %52 = math.exp %51 : vector<8x2x1xf32>
    %cst_28 = arith.constant dense<0.000000e+00> : vector<2x1xf32>
    %53 = vector.multi_reduction <add>, %52, %cst_28 [0] : vector<8x2x1xf32> to vector<2x1xf32>
    %54 = vector.shape_cast %53 : vector<2x1xf32> to vector<1x2x1xf32>
    %55 = vector.broadcast %54 : vector<1x2x1xf32> to vector<8x2x1xf32>
    %56 = arith.divf %52, %55 : vector<8x2x1xf32>
    %57 = vector.broadcast %56 : vector<8x2x1xf32> to vector<8x2x32xf32>
    %58 = arith.mulf %16, %57 : vector<8x2x32xf32>
    %cst_29 = arith.constant dense<0.000000e+00> : vector<2x32xf32>
    %59 = vector.multi_reduction <add>, %58, %cst_29 [0] : vector<8x2x32xf32> to vector<2x32xf32>
    %60 = vector.extract_strided_slice %19 {offsets = [0, 0, 0], sizes = [1, 2, 32], strides = [1, 1, 1]} : vector<8x2x32xf32> to vector<1x2x32xf32>
    %61 = vector.broadcast %0 : vector<8x2x1xf32> to vector<8x2x32xf32>
    %62 = vector.broadcast %60 : vector<1x2x32xf32> to vector<8x2x32xf32>
    %63 = arith.mulf %61, %62 : vector<8x2x32xf32>
    %64 = vector.broadcast %23 : vector<1x1x32xf32> to vector<8x2x32xf32>
    %65 = arith.mulf %19, %64 : vector<8x2x32xf32>
    %cst_30 = arith.constant dense<0.000000e+00> : vector<8x2xf32>
    %66 = vector.multi_reduction <add>, %65, %cst_30 [2] : vector<8x2x32xf32> to vector<8x2xf32>
    %67 = vector.shape_cast %66 : vector<8x2xf32> to vector<8x2x1xf32>
    %68 = vector.broadcast %25 : vector<1x1x32xf32> to vector<8x2x32xf32>
    %69 = arith.mulf %63, %68 : vector<8x2x32xf32>
    %cst_31 = arith.constant dense<0.000000e+00> : vector<8x2xf32>
    %70 = vector.multi_reduction <add>, %69, %cst_31 [2] : vector<8x2x32xf32> to vector<8x2xf32>
    %71 = vector.shape_cast %70 : vector<8x2xf32> to vector<8x2x1xf32>
    %72 = arith.addf %67, %71 : vector<8x2x1xf32>
    %73 = vector.shape_cast %26 : vector<1x1xf32> to vector<1x1x1xf32>
    %74 = vector.broadcast %73 : vector<1x1x1xf32> to vector<8x2x1xf32>
    %75 = arith.addf %72, %74 : vector<8x2x1xf32>
    %76 = arith.mulf %75, %0 : vector<8x2x1xf32>
    %cst_32 = arith.constant 0.000000e+00 : f32
    %77 = vector.broadcast %cst_32 : f32 to vector<8x2x1xf32>
    %78 = arith.cmpf oeq, %76, %77 : vector<8x2x1xf32>
    %cst_33 = arith.constant 0xFF800000 : f32
    %79 = vector.broadcast %cst_33 : f32 to vector<8x2x1xf32>
    %80 = arith.select %78, %79, %76 : vector<8x2x1xi1>, vector<8x2x1xf32>
    %cst_34 = arith.constant dense<0xFF800000> : vector<2x1xf32>
    %81 = vector.multi_reduction <maximumf>, %80, %cst_34 [0] : vector<8x2x1xf32> to vector<2x1xf32>
    %82 = vector.shape_cast %81 : vector<2x1xf32> to vector<1x2x1xf32>
    %83 = vector.broadcast %82 : vector<1x2x1xf32> to vector<8x2x1xf32>
    %84 = arith.subf %80, %83 : vector<8x2x1xf32>
    %85 = math.exp %84 : vector<8x2x1xf32>
    %cst_35 = arith.constant dense<0.000000e+00> : vector<2x1xf32>
    %86 = vector.multi_reduction <add>, %85, %cst_35 [0] : vector<8x2x1xf32> to vector<2x1xf32>
    %87 = vector.shape_cast %86 : vector<2x1xf32> to vector<1x2x1xf32>
    %88 = vector.broadcast %87 : vector<1x2x1xf32> to vector<8x2x1xf32>
    %89 = arith.divf %85, %88 : vector<8x2x1xf32>
    %90 = vector.broadcast %89 : vector<8x2x1xf32> to vector<8x2x32xf32>
    %91 = arith.mulf %19, %90 : vector<8x2x32xf32>
    %cst_36 = arith.constant dense<0.000000e+00> : vector<2x32xf32>
    %92 = vector.multi_reduction <add>, %91, %cst_36 [0] : vector<8x2x32xf32> to vector<2x32xf32>
    %c0_37 = arith.constant 0 : index
    %c0_38 = arith.constant 0 : index
    %93 = vector.load %arg7[%c0_37, %c0_38] : memref<32x12xf32, #tpu.memory_space<vmem>>, vector<32x12xf32>
    %cst_39 = arith.constant dense<0.000000e+00> : vector<2x12xf32>
    %94 = tpu.matmul %59, %93, %cst_39 {dimension_numbers = #tpu.dot_dimension_numbers<[1], [0], [0], [1], [0, 0, 1, 1], [], []>} : vector<2x32xf32>, vector<32x12xf32>, vector<2x12xf32> -> vector<2x12xf32>
    %c0_40 = arith.constant 0 : index
    %c0_41 = arith.constant 0 : index
    %95 = vector.load %arg7[%c0_40, %c0_41] : memref<32x12xf32, #tpu.memory_space<vmem>>, vector<32x12xf32>
    %cst_42 = arith.constant dense<0.000000e+00> : vector<2x12xf32>
    %96 = tpu.matmul %92, %95, %cst_42 {dimension_numbers = #tpu.dot_dimension_numbers<[1], [0], [0], [1], [0, 0, 1, 1], [], []>} : vector<2x32xf32>, vector<32x12xf32>, vector<2x12xf32> -> vector<2x12xf32>
    %97 = vector.extract_strided_slice %94 {offsets = [0, 0], sizes = [2, 8], strides = [1, 1]} : vector<2x12xf32> to vector<2x8xf32>
    %98 = arith.negf %97 : vector<2x8xf32>
    %99 = math.exp %98 : vector<2x8xf32>
    %cst_43 = arith.constant 1.000000e+00 : f32
    %100 = vector.broadcast %cst_43 : f32 to vector<2x8xf32>
    %101 = arith.addf %100, %99 : vector<2x8xf32>
    %102 = arith.divf %100, %101 : vector<2x8xf32>
    %c0_44 = arith.constant 0 : index
    %c0_45 = arith.constant 0 : index
    %103 = vector.load %arg13[%c0_44, %c0_45] : memref<2x8xf32, #tpu.memory_space<vmem>>, vector<2x8xf32>
    tpu.vector_store %arg13[%c0_44, %c0_45], %102 {strides = array<i32>} : memref<2x8xf32, #tpu.memory_space<vmem>>, vector<2x8xf32>,
    %104 = vector.extract_strided_slice %96 {offsets = [0, 0], sizes = [2, 8], strides = [1, 1]} : vector<2x12xf32> to vector<2x8xf32>
    %105 = arith.negf %104 : vector<2x8xf32>
    %106 = math.exp %105 : vector<2x8xf32>
    %cst_46 = arith.constant 1.000000e+00 : f32
    %107 = vector.broadcast %cst_46 : f32 to vector<2x8xf32>
    %108 = arith.addf %107, %106 : vector<2x8xf32>
    %109 = arith.divf %107, %108 : vector<2x8xf32>
    %c0_47 = arith.constant 0 : index
    %c0_48 = arith.constant 0 : index
    %110 = vector.load %arg12[%c0_47, %c0_48] : memref<2x8xf32, #tpu.memory_space<vmem>>, vector<2x8xf32>
    tpu.vector_store %arg12[%c0_47, %c0_48], %109 {strides = array<i32>} : memref<2x8xf32, #tpu.memory_space<vmem>>, vector<2x8xf32>,
    %111 = vector.extract_strided_slice %94 {offsets = [0, 8], sizes = [2, 2], strides = [1, 1]} : vector<2x12xf32> to vector<2x2xf32>
    %c0_49 = arith.constant 0 : index
    %c0_50 = arith.constant 0 : index
    %112 = vector.load %arg8[%c0_49, %c0_50] : memref<1x2xf32, #tpu.memory_space<vmem>>, vector<1x2xf32>
    %113 = vector.broadcast %112 : vector<1x2xf32> to vector<2x2xf32>
    %114 = arith.addf %111, %113 : vector<2x2xf32>
    %c0_51 = arith.constant 0 : index
    %c0_52 = arith.constant 0 : index
    %115 = vector.load %arg15[%c0_51, %c0_52] : memref<2x2xf32, #tpu.memory_space<vmem>>, vector<2x2xf32>
    tpu.vector_store %arg15[%c0_51, %c0_52], %114 {strides = array<i32>} : memref<2x2xf32, #tpu.memory_space<vmem>>, vector<2x2xf32>,
    %116 = vector.extract_strided_slice %96 {offsets = [0, 10], sizes = [2, 2], strides = [1, 1]} : vector<2x12xf32> to vector<2x2xf32>
    %c0_53 = arith.constant 0 : index
    %c0_54 = arith.constant 0 : index
    %117 = vector.load %arg9[%c0_53, %c0_54] : memref<1x2xf32, #tpu.memory_space<vmem>>, vector<1x2xf32>
    %118 = vector.broadcast %117 : vector<1x2xf32> to vector<2x2xf32>
    %119 = arith.addf %116, %118 : vector<2x2xf32>
    %c0_55 = arith.constant 0 : index
    %c0_56 = arith.constant 0 : index
    %120 = vector.load %arg14[%c0_55, %c0_56] : memref<2x2xf32, #tpu.memory_space<vmem>>, vector<2x2xf32>
    tpu.vector_store %arg14[%c0_55, %c0_56], %119 {strides = array<i32>} : memref<2x2xf32, #tpu.memory_space<vmem>>, vector<2x2xf32>,
    return
  }
}

module attributes {stable_mosaic.version = 11 : i64} {
  func.func @kernel(%arg0: memref<8x2x32xf32, #tpu.memory_space<vmem>>, %arg1: memref<32x256xf32, #tpu.memory_space<vmem>>, %arg2: memref<32x96xf32, #tpu.memory_space<vmem>>, %arg3: memref<32x96xf32, #tpu.memory_space<vmem>>, %arg4: memref<1x256xf32, #tpu.memory_space<vmem>>, %arg5: memref<1x32xf32, #tpu.memory_space<vmem>>, %arg6: memref<1x32xf32, #tpu.memory_space<vmem>>, %arg7: memref<1x32xf32, #tpu.memory_space<vmem>>, %arg8: memref<1x32xf32, #tpu.memory_space<vmem>>, %arg9: memref<32x256xf32, #tpu.memory_space<vmem>>, %arg10: memref<32x96xf32, #tpu.memory_space<vmem>>, %arg11: memref<32x96xf32, #tpu.memory_space<vmem>>, %arg12: memref<1x256xf32, #tpu.memory_space<vmem>>, %arg13: memref<1x32xf32, #tpu.memory_space<vmem>>, %arg14: memref<1x32xf32, #tpu.memory_space<vmem>>, %arg15: memref<1x32xf32, #tpu.memory_space<vmem>>, %arg16: memref<1x32xf32, #tpu.memory_space<vmem>>, %arg17: memref<8x2x1xf32, #tpu.memory_space<vmem>>, %arg18: memref<32x16xf32, #tpu.memory_space<vmem>>, %arg19: memref<1x16xf32, #tpu.memory_space<vmem>>, %arg20: memref<8x2x16xf32, #tpu.memory_space<vmem>>, %arg21: memref<8x2x128xf32, #tpu.memory_space<vmem>>, %arg22: memref<8x2x128xf32, #tpu.memory_space<vmem>>, %arg23: memref<8x2x32xf32, #tpu.memory_space<vmem>>, %arg24: memref<8x2x32xf32, #tpu.memory_space<vmem>>, %arg25: memref<8x2x32xf32, #tpu.memory_space<vmem>>) attributes {dimension_semantics = [], scalar_prefetch = 0 : i64, scratch_operands = 5 : i64, tpu.core_type = #tpu.core_type<tc>} {
    %c0 = arith.constant 0 : index
    %c0_0 = arith.constant 0 : index
    %c0_1 = arith.constant 0 : index
    %0 = vector.load %arg0[%c0, %c0_0, %c0_1] : memref<8x2x32xf32, #tpu.memory_space<vmem>>, vector<8x2x32xf32>
    %1 = vector.shape_cast %0 : vector<8x2x32xf32> to vector<16x32xf32>
    %c0_2 = arith.constant 0 : index
    %c0_3 = arith.constant 0 : index
    %2 = vector.load %arg1[%c0_2, %c0_3] : memref<32x256xf32, #tpu.memory_space<vmem>>, vector<32x256xf32>
    %cst = arith.constant dense<0.000000e+00> : vector<16x256xf32>
    %3 = tpu.matmul %1, %2, %cst {dimension_numbers = #tpu.dot_dimension_numbers<[1], [0], [0], [1], [0, 0, 1, 1], [], []>} : vector<16x32xf32>, vector<32x256xf32>, vector<16x256xf32> -> vector<16x256xf32>
    %c0_4 = arith.constant 0 : index
    %c0_5 = arith.constant 0 : index
    %4 = vector.load %arg4[%c0_4, %c0_5] : memref<1x256xf32, #tpu.memory_space<vmem>>, vector<1x256xf32>
    %5 = vector.broadcast %4 : vector<1x256xf32> to vector<16x256xf32>
    %6 = arith.addf %3, %5 : vector<16x256xf32>
    %7 = vector.extract_strided_slice %6 {offsets = [0, 0], sizes = [16, 128], strides = [1, 1]} : vector<16x256xf32> to vector<16x128xf32>
    %8 = vector.shape_cast %7 : vector<16x128xf32> to vector<8x2x128xf32>
    %c0_6 = arith.constant 0 : index
    %c0_7 = arith.constant 0 : index
    %c0_8 = arith.constant 0 : index
    %9 = vector.load %arg21[%c0_6, %c0_7, %c0_8] : memref<8x2x128xf32, #tpu.memory_space<vmem>>, vector<8x2x128xf32>
    tpu.vector_store %arg21[%c0_6, %c0_7, %c0_8], %8 {strides = array<i32>} : memref<8x2x128xf32, #tpu.memory_space<vmem>>, vector<8x2x128xf32>,
    %10 = vector.extract_strided_slice %6 {offsets = [0, 128], sizes = [16, 128], strides = [1, 1]} : vector<16x256xf32> to vector<16x128xf32>
    %11 = vector.shape_cast %10 : vector<16x128xf32> to vector<8x2x128xf32>
    %c0_9 = arith.constant 0 : index
    %c0_10 = arith.constant 0 : index
    %c0_11 = arith.constant 0 : index
    %12 = vector.load %arg22[%c0_9, %c0_10, %c0_11] : memref<8x2x128xf32, #tpu.memory_space<vmem>>, vector<8x2x128xf32>
    tpu.vector_store %arg22[%c0_9, %c0_10, %c0_11], %11 {strides = array<i32>} : memref<8x2x128xf32, #tpu.memory_space<vmem>>, vector<8x2x128xf32>,
    %c0_12 = arith.constant 0 : index
    %c0_13 = arith.constant 0 : index
    %13 = vector.load %arg2[%c0_12, %c0_13] : memref<32x96xf32, #tpu.memory_space<vmem>>, vector<32x96xf32>
    %c0_14 = arith.constant 0 : index
    %c0_15 = arith.constant 0 : index
    %14 = vector.load %arg3[%c0_14, %c0_15] : memref<32x96xf32, #tpu.memory_space<vmem>>, vector<32x96xf32>
    %c0_16 = arith.constant 0 : index
    %c0_17 = arith.constant 0 : index
    %15 = vector.load %arg5[%c0_16, %c0_17] : memref<1x32xf32, #tpu.memory_space<vmem>>, vector<1x32xf32>
    %16 = vector.shape_cast %15 : vector<1x32xf32> to vector<1x32xf32>
    %17 = vector.broadcast %16 : vector<1x32xf32> to vector<2x32xf32>
    %c0_18 = arith.constant 0 : index
    %c0_19 = arith.constant 0 : index
    %18 = vector.load %arg6[%c0_18, %c0_19] : memref<1x32xf32, #tpu.memory_space<vmem>>, vector<1x32xf32>
    %19 = vector.shape_cast %18 : vector<1x32xf32> to vector<1x32xf32>
    %20 = vector.broadcast %19 : vector<1x32xf32> to vector<2x32xf32>
    %cst_20 = arith.constant 0.000000e+00 : f32
    %21 = vector.broadcast %cst_20 : f32 to vector<2x32xf32>
    %c0_i32 = arith.constant 0 : i32
    %c8_i32 = arith.constant 8 : i32
    %22 = arith.addi %c0_i32, %c8_i32 : i32
    %c1_i32 = arith.constant 1 : i32
    %23:2 = scf.for %arg26 = %c0_i32 to %22 step %c1_i32 iter_args(%arg27 = %21, %arg28 = %21) -> (vector<2x32xf32>, vector<2x32xf32>)  : i32 {
      %c7_i32 = arith.constant 7 : i32
      %120 = arith.subi %c7_i32, %arg26 : i32
      %cst_99 = arith.constant dense<0.000000e+00> : vector<2x96xf32>
      %121 = tpu.matmul %arg27, %13, %cst_99 {dimension_numbers = #tpu.dot_dimension_numbers<[1], [0], [0], [1], [0, 0, 1, 1], [], []>} : vector<2x32xf32>, vector<32x96xf32>, vector<2x96xf32> -> vector<2x96xf32>
      %cst_100 = arith.constant dense<0.000000e+00> : vector<2x96xf32>
      %122 = tpu.matmul %arg28, %14, %cst_100 {dimension_numbers = #tpu.dot_dimension_numbers<[1], [0], [0], [1], [0, 0, 1, 1], [], []>} : vector<2x32xf32>, vector<32x96xf32>, vector<2x96xf32> -> vector<2x96xf32>
      %123 = arith.index_cast %arg26 : i32 to index
      %c0_101 = arith.constant 0 : index
      %c0_102 = arith.constant 0 : index
      %124 = vector.load %arg21[%123, %c0_101, %c0_102] : memref<8x2x128xf32, #tpu.memory_space<vmem>>, vector<1x2x128xf32>
      %125 = vector.shape_cast %124 : vector<1x2x128xf32> to vector<2x128xf32>
      %126 = vector.extract_strided_slice %125 {offsets = [0, 0], sizes = [2, 32], strides = [1, 1]} : vector<2x128xf32> to vector<2x32xf32>
      %127 = vector.extract_strided_slice %121 {offsets = [0, 0], sizes = [2, 32], strides = [1, 1]} : vector<2x96xf32> to vector<2x32xf32>
      %128 = arith.addf %126, %127 : vector<2x32xf32>
      %129 = arith.negf %128 : vector<2x32xf32>
      %130 = math.exp %129 : vector<2x32xf32>
      %cst_103 = arith.constant 1.000000e+00 : f32
      %131 = vector.broadcast %cst_103 : f32 to vector<2x32xf32>
      %132 = arith.addf %131, %130 : vector<2x32xf32>
      %133 = arith.divf %131, %132 : vector<2x32xf32>
      %134 = vector.extract_strided_slice %125 {offsets = [0, 32], sizes = [2, 32], strides = [1, 1]} : vector<2x128xf32> to vector<2x32xf32>
      %135 = vector.extract_strided_slice %121 {offsets = [0, 32], sizes = [2, 32], strides = [1, 1]} : vector<2x96xf32> to vector<2x32xf32>
      %136 = arith.addf %134, %135 : vector<2x32xf32>
      %137 = arith.negf %136 : vector<2x32xf32>
      %138 = math.exp %137 : vector<2x32xf32>
      %cst_104 = arith.constant 1.000000e+00 : f32
      %139 = vector.broadcast %cst_104 : f32 to vector<2x32xf32>
      %140 = arith.addf %139, %138 : vector<2x32xf32>
      %141 = arith.divf %139, %140 : vector<2x32xf32>
      %142 = vector.extract_strided_slice %125 {offsets = [0, 64], sizes = [2, 32], strides = [1, 1]} : vector<2x128xf32> to vector<2x32xf32>
      %143 = vector.extract_strided_slice %121 {offsets = [0, 64], sizes = [2, 32], strides = [1, 1]} : vector<2x96xf32> to vector<2x32xf32>
      %144 = arith.addf %143, %17 : vector<2x32xf32>
      %145 = arith.mulf %133, %144 : vector<2x32xf32>
      %146 = arith.addf %142, %145 : vector<2x32xf32>
      %147 = math.tanh %146 : vector<2x32xf32>
      %cst_105 = arith.constant 1.000000e+00 : f32
      %148 = vector.broadcast %cst_105 : f32 to vector<2x32xf32>
      %149 = arith.subf %148, %141 : vector<2x32xf32>
      %150 = arith.mulf %149, %147 : vector<2x32xf32>
      %151 = arith.mulf %141, %arg27 : vector<2x32xf32>
      %152 = arith.addf %150, %151 : vector<2x32xf32>
      %153 = arith.index_cast %120 : i32 to index
      %c0_106 = arith.constant 0 : index
      %c0_107 = arith.constant 0 : index
      %154 = vector.load %arg22[%153, %c0_106, %c0_107] : memref<8x2x128xf32, #tpu.memory_space<vmem>>, vector<1x2x128xf32>
      %155 = vector.shape_cast %154 : vector<1x2x128xf32> to vector<2x128xf32>
      %156 = vector.extract_strided_slice %155 {offsets = [0, 0], sizes = [2, 32], strides = [1, 1]} : vector<2x128xf32> to vector<2x32xf32>
      %157 = vector.extract_strided_slice %122 {offsets = [0, 0], sizes = [2, 32], strides = [1, 1]} : vector<2x96xf32> to vector<2x32xf32>
      %158 = arith.addf %156, %157 : vector<2x32xf32>
      %159 = arith.negf %158 : vector<2x32xf32>
      %160 = math.exp %159 : vector<2x32xf32>
      %cst_108 = arith.constant 1.000000e+00 : f32
      %161 = vector.broadcast %cst_108 : f32 to vector<2x32xf32>
      %162 = arith.addf %161, %160 : vector<2x32xf32>
      %163 = arith.divf %161, %162 : vector<2x32xf32>
      %164 = vector.extract_strided_slice %155 {offsets = [0, 32], sizes = [2, 32], strides = [1, 1]} : vector<2x128xf32> to vector<2x32xf32>
      %165 = vector.extract_strided_slice %122 {offsets = [0, 32], sizes = [2, 32], strides = [1, 1]} : vector<2x96xf32> to vector<2x32xf32>
      %166 = arith.addf %164, %165 : vector<2x32xf32>
      %167 = arith.negf %166 : vector<2x32xf32>
      %168 = math.exp %167 : vector<2x32xf32>
      %cst_109 = arith.constant 1.000000e+00 : f32
      %169 = vector.broadcast %cst_109 : f32 to vector<2x32xf32>
      %170 = arith.addf %169, %168 : vector<2x32xf32>
      %171 = arith.divf %169, %170 : vector<2x32xf32>
      %172 = vector.extract_strided_slice %155 {offsets = [0, 64], sizes = [2, 32], strides = [1, 1]} : vector<2x128xf32> to vector<2x32xf32>
      %173 = vector.extract_strided_slice %122 {offsets = [0, 64], sizes = [2, 32], strides = [1, 1]} : vector<2x96xf32> to vector<2x32xf32>
      %174 = arith.addf %173, %20 : vector<2x32xf32>
      %175 = arith.mulf %163, %174 : vector<2x32xf32>
      %176 = arith.addf %172, %175 : vector<2x32xf32>
      %177 = math.tanh %176 : vector<2x32xf32>
      %cst_110 = arith.constant 1.000000e+00 : f32
      %178 = vector.broadcast %cst_110 : f32 to vector<2x32xf32>
      %179 = arith.subf %178, %171 : vector<2x32xf32>
      %180 = arith.mulf %179, %177 : vector<2x32xf32>
      %181 = arith.mulf %171, %arg28 : vector<2x32xf32>
      %182 = arith.addf %180, %181 : vector<2x32xf32>
      %183 = arith.index_cast %arg26 : i32 to index
      %c0_111 = arith.constant 0 : index
      %c0_112 = arith.constant 0 : index
      %184 = vector.load %arg23[%183, %c0_111, %c0_112] : memref<8x2x32xf32, #tpu.memory_space<vmem>>, vector<1x2x32xf32>
      %185 = vector.shape_cast %184 : vector<1x2x32xf32> to vector<2x32xf32>
      %186 = vector.shape_cast %152 : vector<2x32xf32> to vector<1x2x32xf32>
      tpu.vector_store %arg23[%183, %c0_111, %c0_112], %186 {strides = array<i32>} : memref<8x2x32xf32, #tpu.memory_space<vmem>>, vector<1x2x32xf32>,
      %187 = arith.index_cast %120 : i32 to index
      %c0_113 = arith.constant 0 : index
      %c0_114 = arith.constant 0 : index
      %188 = vector.load %arg24[%187, %c0_113, %c0_114] : memref<8x2x32xf32, #tpu.memory_space<vmem>>, vector<1x2x32xf32>
      %189 = vector.shape_cast %188 : vector<1x2x32xf32> to vector<2x32xf32>
      %190 = vector.shape_cast %182 : vector<2x32xf32> to vector<1x2x32xf32>
      tpu.vector_store %arg24[%187, %c0_113, %c0_114], %190 {strides = array<i32>} : memref<8x2x32xf32, #tpu.memory_space<vmem>>, vector<1x2x32xf32>,
      scf.yield %152, %182 : vector<2x32xf32>, vector<2x32xf32>
    }
    %c8_i32_21 = arith.constant 8 : i32
    %c0_22 = arith.constant 0 : index
    %c0_23 = arith.constant 0 : index
    %c0_24 = arith.constant 0 : index
    %24 = vector.load %arg23[%c0_22, %c0_23, %c0_24] : memref<8x2x32xf32, #tpu.memory_space<vmem>>, vector<8x2x32xf32>
    %c0_25 = arith.constant 0 : index
    %c0_26 = arith.constant 0 : index
    %c0_27 = arith.constant 0 : index
    %25 = vector.load %arg24[%c0_25, %c0_26, %c0_27] : memref<8x2x32xf32, #tpu.memory_space<vmem>>, vector<8x2x32xf32>
    %26 = arith.addf %24, %25 : vector<8x2x32xf32>
    %cst_28 = arith.constant dense<0.000000e+00> : vector<8x2xf32>
    %27 = vector.multi_reduction <add>, %26, %cst_28 [2] : vector<8x2x32xf32> to vector<8x2xf32>
    %28 = vector.shape_cast %27 : vector<8x2xf32> to vector<8x2x1xf32>
    %cst_29 = arith.constant 3.200000e+01 : f32
    %29 = vector.broadcast %cst_29 : f32 to vector<8x2x1xf32>
    %30 = arith.divf %28, %29 : vector<8x2x1xf32>
    %31 = vector.broadcast %30 : vector<8x2x1xf32> to vector<8x2x32xf32>
    %32 = arith.subf %26, %31 : vector<8x2x32xf32>
    %33 = arith.mulf %32, %32 : vector<8x2x32xf32>
    %cst_30 = arith.constant dense<0.000000e+00> : vector<8x2xf32>
    %34 = vector.multi_reduction <add>, %33, %cst_30 [2] : vector<8x2x32xf32> to vector<8x2xf32>
    %35 = vector.shape_cast %34 : vector<8x2xf32> to vector<8x2x1xf32>
    %cst_31 = arith.constant 3.200000e+01 : f32
    %36 = vector.broadcast %cst_31 : f32 to vector<8x2x1xf32>
    %37 = arith.divf %35, %36 : vector<8x2x1xf32>
    %38 = vector.broadcast %30 : vector<8x2x1xf32> to vector<8x2x32xf32>
    %39 = arith.subf %26, %38 : vector<8x2x32xf32>
    %cst_32 = arith.constant 9.99999974E-6 : f32
    %40 = vector.broadcast %cst_32 : f32 to vector<8x2x1xf32>
    %41 = arith.addf %37, %40 : vector<8x2x1xf32>
    %42 = math.rsqrt %41 : vector<8x2x1xf32>
    %43 = vector.broadcast %42 : vector<8x2x1xf32> to vector<8x2x32xf32>
    %44 = arith.mulf %39, %43 : vector<8x2x32xf32>
    %c0_33 = arith.constant 0 : index
    %c0_34 = arith.constant 0 : index
    %45 = vector.load %arg7[%c0_33, %c0_34] : memref<1x32xf32, #tpu.memory_space<vmem>>, vector<1x32xf32>
    %46 = vector.shape_cast %45 : vector<1x32xf32> to vector<1x1x32xf32>
    %47 = vector.broadcast %46 : vector<1x1x32xf32> to vector<8x2x32xf32>
    %48 = arith.mulf %44, %47 : vector<8x2x32xf32>
    %c0_35 = arith.constant 0 : index
    %c0_36 = arith.constant 0 : index
    %49 = vector.load %arg8[%c0_35, %c0_36] : memref<1x32xf32, #tpu.memory_space<vmem>>, vector<1x32xf32>
    %50 = vector.shape_cast %49 : vector<1x32xf32> to vector<1x1x32xf32>
    %51 = vector.broadcast %50 : vector<1x1x32xf32> to vector<8x2x32xf32>
    %52 = arith.addf %48, %51 : vector<8x2x32xf32>
    %c0_37 = arith.constant 0 : index
    %c0_38 = arith.constant 0 : index
    %c0_39 = arith.constant 0 : index
    %53 = vector.load %arg25[%c0_37, %c0_38, %c0_39] : memref<8x2x32xf32, #tpu.memory_space<vmem>>, vector<8x2x32xf32>
    tpu.vector_store %arg25[%c0_37, %c0_38, %c0_39], %52 {strides = array<i32>} : memref<8x2x32xf32, #tpu.memory_space<vmem>>, vector<8x2x32xf32>,
    %c0_40 = arith.constant 0 : index
    %c0_41 = arith.constant 0 : index
    %c0_42 = arith.constant 0 : index
    %54 = vector.load %arg25[%c0_40, %c0_41, %c0_42] : memref<8x2x32xf32, #tpu.memory_space<vmem>>, vector<8x2x32xf32>
    %55 = vector.shape_cast %54 : vector<8x2x32xf32> to vector<16x32xf32>
    %c0_43 = arith.constant 0 : index
    %c0_44 = arith.constant 0 : index
    %56 = vector.load %arg9[%c0_43, %c0_44] : memref<32x256xf32, #tpu.memory_space<vmem>>, vector<32x256xf32>
    %cst_45 = arith.constant dense<0.000000e+00> : vector<16x256xf32>
    %57 = tpu.matmul %55, %56, %cst_45 {dimension_numbers = #tpu.dot_dimension_numbers<[1], [0], [0], [1], [0, 0, 1, 1], [], []>} : vector<16x32xf32>, vector<32x256xf32>, vector<16x256xf32> -> vector<16x256xf32>
    %c0_46 = arith.constant 0 : index
    %c0_47 = arith.constant 0 : index
    %58 = vector.load %arg12[%c0_46, %c0_47] : memref<1x256xf32, #tpu.memory_space<vmem>>, vector<1x256xf32>
    %59 = vector.broadcast %58 : vector<1x256xf32> to vector<16x256xf32>
    %60 = arith.addf %57, %59 : vector<16x256xf32>
    %61 = vector.extract_strided_slice %60 {offsets = [0, 0], sizes = [16, 128], strides = [1, 1]} : vector<16x256xf32> to vector<16x128xf32>
    %62 = vector.shape_cast %61 : vector<16x128xf32> to vector<8x2x128xf32>
    %c0_48 = arith.constant 0 : index
    %c0_49 = arith.constant 0 : index
    %c0_50 = arith.constant 0 : index
    %63 = vector.load %arg21[%c0_48, %c0_49, %c0_50] : memref<8x2x128xf32, #tpu.memory_space<vmem>>, vector<8x2x128xf32>
    tpu.vector_store %arg21[%c0_48, %c0_49, %c0_50], %62 {strides = array<i32>} : memref<8x2x128xf32, #tpu.memory_space<vmem>>, vector<8x2x128xf32>,
    %64 = vector.extract_strided_slice %60 {offsets = [0, 128], sizes = [16, 128], strides = [1, 1]} : vector<16x256xf32> to vector<16x128xf32>
    %65 = vector.shape_cast %64 : vector<16x128xf32> to vector<8x2x128xf32>
    %c0_51 = arith.constant 0 : index
    %c0_52 = arith.constant 0 : index
    %c0_53 = arith.constant 0 : index
    %66 = vector.load %arg22[%c0_51, %c0_52, %c0_53] : memref<8x2x128xf32, #tpu.memory_space<vmem>>, vector<8x2x128xf32>
    tpu.vector_store %arg22[%c0_51, %c0_52, %c0_53], %65 {strides = array<i32>} : memref<8x2x128xf32, #tpu.memory_space<vmem>>, vector<8x2x128xf32>,
    %c0_54 = arith.constant 0 : index
    %c0_55 = arith.constant 0 : index
    %67 = vector.load %arg10[%c0_54, %c0_55] : memref<32x96xf32, #tpu.memory_space<vmem>>, vector<32x96xf32>
    %c0_56 = arith.constant 0 : index
    %c0_57 = arith.constant 0 : index
    %68 = vector.load %arg11[%c0_56, %c0_57] : memref<32x96xf32, #tpu.memory_space<vmem>>, vector<32x96xf32>
    %c0_58 = arith.constant 0 : index
    %c0_59 = arith.constant 0 : index
    %69 = vector.load %arg13[%c0_58, %c0_59] : memref<1x32xf32, #tpu.memory_space<vmem>>, vector<1x32xf32>
    %70 = vector.shape_cast %69 : vector<1x32xf32> to vector<1x32xf32>
    %71 = vector.broadcast %70 : vector<1x32xf32> to vector<2x32xf32>
    %c0_60 = arith.constant 0 : index
    %c0_61 = arith.constant 0 : index
    %72 = vector.load %arg14[%c0_60, %c0_61] : memref<1x32xf32, #tpu.memory_space<vmem>>, vector<1x32xf32>
    %73 = vector.shape_cast %72 : vector<1x32xf32> to vector<1x32xf32>
    %74 = vector.broadcast %73 : vector<1x32xf32> to vector<2x32xf32>
    %cst_62 = arith.constant 0.000000e+00 : f32
    %75 = vector.broadcast %cst_62 : f32 to vector<2x32xf32>
    %c0_i32_63 = arith.constant 0 : i32
    %c8_i32_64 = arith.constant 8 : i32
    %76 = arith.addi %c0_i32_63, %c8_i32_64 : i32
    %c1_i32_65 = arith.constant 1 : i32
    %77:2 = scf.for %arg26 = %c0_i32_63 to %76 step %c1_i32_65 iter_args(%arg27 = %75, %arg28 = %75) -> (vector<2x32xf32>, vector<2x32xf32>)  : i32 {
      %c7_i32 = arith.constant 7 : i32
      %120 = arith.subi %c7_i32, %arg26 : i32
      %cst_99 = arith.constant dense<0.000000e+00> : vector<2x96xf32>
      %121 = tpu.matmul %arg27, %67, %cst_99 {dimension_numbers = #tpu.dot_dimension_numbers<[1], [0], [0], [1], [0, 0, 1, 1], [], []>} : vector<2x32xf32>, vector<32x96xf32>, vector<2x96xf32> -> vector<2x96xf32>
      %cst_100 = arith.constant dense<0.000000e+00> : vector<2x96xf32>
      %122 = tpu.matmul %arg28, %68, %cst_100 {dimension_numbers = #tpu.dot_dimension_numbers<[1], [0], [0], [1], [0, 0, 1, 1], [], []>} : vector<2x32xf32>, vector<32x96xf32>, vector<2x96xf32> -> vector<2x96xf32>
      %123 = arith.index_cast %arg26 : i32 to index
      %c0_101 = arith.constant 0 : index
      %c0_102 = arith.constant 0 : index
      %124 = vector.load %arg21[%123, %c0_101, %c0_102] : memref<8x2x128xf32, #tpu.memory_space<vmem>>, vector<1x2x128xf32>
      %125 = vector.shape_cast %124 : vector<1x2x128xf32> to vector<2x128xf32>
      %126 = vector.extract_strided_slice %125 {offsets = [0, 0], sizes = [2, 32], strides = [1, 1]} : vector<2x128xf32> to vector<2x32xf32>
      %127 = vector.extract_strided_slice %121 {offsets = [0, 0], sizes = [2, 32], strides = [1, 1]} : vector<2x96xf32> to vector<2x32xf32>
      %128 = arith.addf %126, %127 : vector<2x32xf32>
      %129 = arith.negf %128 : vector<2x32xf32>
      %130 = math.exp %129 : vector<2x32xf32>
      %cst_103 = arith.constant 1.000000e+00 : f32
      %131 = vector.broadcast %cst_103 : f32 to vector<2x32xf32>
      %132 = arith.addf %131, %130 : vector<2x32xf32>
      %133 = arith.divf %131, %132 : vector<2x32xf32>
      %134 = vector.extract_strided_slice %125 {offsets = [0, 32], sizes = [2, 32], strides = [1, 1]} : vector<2x128xf32> to vector<2x32xf32>
      %135 = vector.extract_strided_slice %121 {offsets = [0, 32], sizes = [2, 32], strides = [1, 1]} : vector<2x96xf32> to vector<2x32xf32>
      %136 = arith.addf %134, %135 : vector<2x32xf32>
      %137 = arith.negf %136 : vector<2x32xf32>
      %138 = math.exp %137 : vector<2x32xf32>
      %cst_104 = arith.constant 1.000000e+00 : f32
      %139 = vector.broadcast %cst_104 : f32 to vector<2x32xf32>
      %140 = arith.addf %139, %138 : vector<2x32xf32>
      %141 = arith.divf %139, %140 : vector<2x32xf32>
      %142 = vector.extract_strided_slice %125 {offsets = [0, 64], sizes = [2, 32], strides = [1, 1]} : vector<2x128xf32> to vector<2x32xf32>
      %143 = vector.extract_strided_slice %121 {offsets = [0, 64], sizes = [2, 32], strides = [1, 1]} : vector<2x96xf32> to vector<2x32xf32>
      %144 = arith.addf %143, %71 : vector<2x32xf32>
      %145 = arith.mulf %133, %144 : vector<2x32xf32>
      %146 = arith.addf %142, %145 : vector<2x32xf32>
      %147 = math.tanh %146 : vector<2x32xf32>
      %cst_105 = arith.constant 1.000000e+00 : f32
      %148 = vector.broadcast %cst_105 : f32 to vector<2x32xf32>
      %149 = arith.subf %148, %141 : vector<2x32xf32>
      %150 = arith.mulf %149, %147 : vector<2x32xf32>
      %151 = arith.mulf %141, %arg27 : vector<2x32xf32>
      %152 = arith.addf %150, %151 : vector<2x32xf32>
      %153 = arith.index_cast %120 : i32 to index
      %c0_106 = arith.constant 0 : index
      %c0_107 = arith.constant 0 : index
      %154 = vector.load %arg22[%153, %c0_106, %c0_107] : memref<8x2x128xf32, #tpu.memory_space<vmem>>, vector<1x2x128xf32>
      %155 = vector.shape_cast %154 : vector<1x2x128xf32> to vector<2x128xf32>
      %156 = vector.extract_strided_slice %155 {offsets = [0, 0], sizes = [2, 32], strides = [1, 1]} : vector<2x128xf32> to vector<2x32xf32>
      %157 = vector.extract_strided_slice %122 {offsets = [0, 0], sizes = [2, 32], strides = [1, 1]} : vector<2x96xf32> to vector<2x32xf32>
      %158 = arith.addf %156, %157 : vector<2x32xf32>
      %159 = arith.negf %158 : vector<2x32xf32>
      %160 = math.exp %159 : vector<2x32xf32>
      %cst_108 = arith.constant 1.000000e+00 : f32
      %161 = vector.broadcast %cst_108 : f32 to vector<2x32xf32>
      %162 = arith.addf %161, %160 : vector<2x32xf32>
      %163 = arith.divf %161, %162 : vector<2x32xf32>
      %164 = vector.extract_strided_slice %155 {offsets = [0, 32], sizes = [2, 32], strides = [1, 1]} : vector<2x128xf32> to vector<2x32xf32>
      %165 = vector.extract_strided_slice %122 {offsets = [0, 32], sizes = [2, 32], strides = [1, 1]} : vector<2x96xf32> to vector<2x32xf32>
      %166 = arith.addf %164, %165 : vector<2x32xf32>
      %167 = arith.negf %166 : vector<2x32xf32>
      %168 = math.exp %167 : vector<2x32xf32>
      %cst_109 = arith.constant 1.000000e+00 : f32
      %169 = vector.broadcast %cst_109 : f32 to vector<2x32xf32>
      %170 = arith.addf %169, %168 : vector<2x32xf32>
      %171 = arith.divf %169, %170 : vector<2x32xf32>
      %172 = vector.extract_strided_slice %155 {offsets = [0, 64], sizes = [2, 32], strides = [1, 1]} : vector<2x128xf32> to vector<2x32xf32>
      %173 = vector.extract_strided_slice %122 {offsets = [0, 64], sizes = [2, 32], strides = [1, 1]} : vector<2x96xf32> to vector<2x32xf32>
      %174 = arith.addf %173, %74 : vector<2x32xf32>
      %175 = arith.mulf %163, %174 : vector<2x32xf32>
      %176 = arith.addf %172, %175 : vector<2x32xf32>
      %177 = math.tanh %176 : vector<2x32xf32>
      %cst_110 = arith.constant 1.000000e+00 : f32
      %178 = vector.broadcast %cst_110 : f32 to vector<2x32xf32>
      %179 = arith.subf %178, %171 : vector<2x32xf32>
      %180 = arith.mulf %179, %177 : vector<2x32xf32>
      %181 = arith.mulf %171, %arg28 : vector<2x32xf32>
      %182 = arith.addf %180, %181 : vector<2x32xf32>
      %183 = arith.index_cast %arg26 : i32 to index
      %c0_111 = arith.constant 0 : index
      %c0_112 = arith.constant 0 : index
      %184 = vector.load %arg23[%183, %c0_111, %c0_112] : memref<8x2x32xf32, #tpu.memory_space<vmem>>, vector<1x2x32xf32>
      %185 = vector.shape_cast %184 : vector<1x2x32xf32> to vector<2x32xf32>
      %186 = vector.shape_cast %152 : vector<2x32xf32> to vector<1x2x32xf32>
      tpu.vector_store %arg23[%183, %c0_111, %c0_112], %186 {strides = array<i32>} : memref<8x2x32xf32, #tpu.memory_space<vmem>>, vector<1x2x32xf32>,
      %187 = arith.index_cast %120 : i32 to index
      %c0_113 = arith.constant 0 : index
      %c0_114 = arith.constant 0 : index
      %188 = vector.load %arg24[%187, %c0_113, %c0_114] : memref<8x2x32xf32, #tpu.memory_space<vmem>>, vector<1x2x32xf32>
      %189 = vector.shape_cast %188 : vector<1x2x32xf32> to vector<2x32xf32>
      %190 = vector.shape_cast %182 : vector<2x32xf32> to vector<1x2x32xf32>
      tpu.vector_store %arg24[%187, %c0_113, %c0_114], %190 {strides = array<i32>} : memref<8x2x32xf32, #tpu.memory_space<vmem>>, vector<1x2x32xf32>,
      scf.yield %152, %182 : vector<2x32xf32>, vector<2x32xf32>
    }
    %c8_i32_66 = arith.constant 8 : i32
    %c0_67 = arith.constant 0 : index
    %c0_68 = arith.constant 0 : index
    %c0_69 = arith.constant 0 : index
    %78 = vector.load %arg23[%c0_67, %c0_68, %c0_69] : memref<8x2x32xf32, #tpu.memory_space<vmem>>, vector<8x2x32xf32>
    %c0_70 = arith.constant 0 : index
    %c0_71 = arith.constant 0 : index
    %c0_72 = arith.constant 0 : index
    %79 = vector.load %arg24[%c0_70, %c0_71, %c0_72] : memref<8x2x32xf32, #tpu.memory_space<vmem>>, vector<8x2x32xf32>
    %80 = arith.addf %78, %79 : vector<8x2x32xf32>
    %cst_73 = arith.constant dense<0.000000e+00> : vector<8x2xf32>
    %81 = vector.multi_reduction <add>, %80, %cst_73 [2] : vector<8x2x32xf32> to vector<8x2xf32>
    %82 = vector.shape_cast %81 : vector<8x2xf32> to vector<8x2x1xf32>
    %cst_74 = arith.constant 3.200000e+01 : f32
    %83 = vector.broadcast %cst_74 : f32 to vector<8x2x1xf32>
    %84 = arith.divf %82, %83 : vector<8x2x1xf32>
    %85 = vector.broadcast %84 : vector<8x2x1xf32> to vector<8x2x32xf32>
    %86 = arith.subf %80, %85 : vector<8x2x32xf32>
    %87 = arith.mulf %86, %86 : vector<8x2x32xf32>
    %cst_75 = arith.constant dense<0.000000e+00> : vector<8x2xf32>
    %88 = vector.multi_reduction <add>, %87, %cst_75 [2] : vector<8x2x32xf32> to vector<8x2xf32>
    %89 = vector.shape_cast %88 : vector<8x2xf32> to vector<8x2x1xf32>
    %cst_76 = arith.constant 3.200000e+01 : f32
    %90 = vector.broadcast %cst_76 : f32 to vector<8x2x1xf32>
    %91 = arith.divf %89, %90 : vector<8x2x1xf32>
    %92 = vector.broadcast %84 : vector<8x2x1xf32> to vector<8x2x32xf32>
    %93 = arith.subf %80, %92 : vector<8x2x32xf32>
    %cst_77 = arith.constant 9.99999974E-6 : f32
    %94 = vector.broadcast %cst_77 : f32 to vector<8x2x1xf32>
    %95 = arith.addf %91, %94 : vector<8x2x1xf32>
    %96 = math.rsqrt %95 : vector<8x2x1xf32>
    %97 = vector.broadcast %96 : vector<8x2x1xf32> to vector<8x2x32xf32>
    %98 = arith.mulf %93, %97 : vector<8x2x32xf32>
    %c0_78 = arith.constant 0 : index
    %c0_79 = arith.constant 0 : index
    %99 = vector.load %arg15[%c0_78, %c0_79] : memref<1x32xf32, #tpu.memory_space<vmem>>, vector<1x32xf32>
    %100 = vector.shape_cast %99 : vector<1x32xf32> to vector<1x1x32xf32>
    %101 = vector.broadcast %100 : vector<1x1x32xf32> to vector<8x2x32xf32>
    %102 = arith.mulf %98, %101 : vector<8x2x32xf32>
    %c0_80 = arith.constant 0 : index
    %c0_81 = arith.constant 0 : index
    %103 = vector.load %arg16[%c0_80, %c0_81] : memref<1x32xf32, #tpu.memory_space<vmem>>, vector<1x32xf32>
    %104 = vector.shape_cast %103 : vector<1x32xf32> to vector<1x1x32xf32>
    %105 = vector.broadcast %104 : vector<1x1x32xf32> to vector<8x2x32xf32>
    %106 = arith.addf %102, %105 : vector<8x2x32xf32>
    %c0_82 = arith.constant 0 : index
    %c0_83 = arith.constant 0 : index
    %c0_84 = arith.constant 0 : index
    %107 = vector.load %arg25[%c0_82, %c0_83, %c0_84] : memref<8x2x32xf32, #tpu.memory_space<vmem>>, vector<8x2x32xf32>
    tpu.vector_store %arg25[%c0_82, %c0_83, %c0_84], %106 {strides = array<i32>} : memref<8x2x32xf32, #tpu.memory_space<vmem>>, vector<8x2x32xf32>,
    %c0_85 = arith.constant 0 : index
    %c0_86 = arith.constant 0 : index
    %c0_87 = arith.constant 0 : index
    %108 = vector.load %arg25[%c0_85, %c0_86, %c0_87] : memref<8x2x32xf32, #tpu.memory_space<vmem>>, vector<8x2x32xf32>
    %109 = vector.shape_cast %108 : vector<8x2x32xf32> to vector<16x32xf32>
    %c0_88 = arith.constant 0 : index
    %c0_89 = arith.constant 0 : index
    %110 = vector.load %arg18[%c0_88, %c0_89] : memref<32x16xf32, #tpu.memory_space<vmem>>, vector<32x16xf32>
    %cst_90 = arith.constant dense<0.000000e+00> : vector<16x16xf32>
    %111 = tpu.matmul %109, %110, %cst_90 {dimension_numbers = #tpu.dot_dimension_numbers<[1], [0], [0], [1], [0, 0, 1, 1], [], []>} : vector<16x32xf32>, vector<32x16xf32>, vector<16x16xf32> -> vector<16x16xf32>
    %c0_91 = arith.constant 0 : index
    %c0_92 = arith.constant 0 : index
    %112 = vector.load %arg19[%c0_91, %c0_92] : memref<1x16xf32, #tpu.memory_space<vmem>>, vector<1x16xf32>
    %113 = vector.broadcast %112 : vector<1x16xf32> to vector<16x16xf32>
    %114 = arith.addf %111, %113 : vector<16x16xf32>
    %115 = vector.shape_cast %114 : vector<16x16xf32> to vector<8x2x16xf32>
    %c0_93 = arith.constant 0 : index
    %c0_94 = arith.constant 0 : index
    %c0_95 = arith.constant 0 : index
    %116 = vector.load %arg17[%c0_93, %c0_94, %c0_95] : memref<8x2x1xf32, #tpu.memory_space<vmem>>, vector<8x2x1xf32>
    %117 = vector.broadcast %116 : vector<8x2x1xf32> to vector<8x2x16xf32>
    %118 = arith.mulf %115, %117 : vector<8x2x16xf32>
    %c0_96 = arith.constant 0 : index
    %c0_97 = arith.constant 0 : index
    %c0_98 = arith.constant 0 : index
    %119 = vector.load %arg20[%c0_96, %c0_97, %c0_98] : memref<8x2x16xf32, #tpu.memory_space<vmem>>, vector<8x2x16xf32>
    tpu.vector_store %arg20[%c0_96, %c0_97, %c0_98], %118 {strides = array<i32>} : memref<8x2x16xf32, #tpu.memory_space<vmem>>, vector<8x2x16xf32>,
    return
  }
}

</mosaic_0001>

<bundles_post_ra>
// kernel: bigru_stymix_forward.3
= control target key start
LH: loop header
LB: loop body
LE: loop exit
PB: predicated region body
PF: predicated region fallthrough
CT: control target
= control target key end

     0   :  { %v70_v0 = vlaneseq  ;;  %v1766_v4 = vmov 0.0   ;;  %v1767_v5 = vmov 1983009808   ;;  %vm122_vm0 = vcmask 130048   ;;  %s2367_s1 = inlined_call_operand.vmem [shape: f32[16,256], index: 1, kind: input, shape index: {}]   ;;  %s2368_s7 = inlined_call_operand.vmem [shape: f32[1,32], index: 7, kind: input, shape index: {}]   ;;  %s2369_s8 = inlined_call_operand.vmem [shape: f32[1,32], index: 8, kind: input, shape index: {}]   ;;  %s2370_s9 = inlined_call_operand.vmem [shape: f32[32,256], index: 9, kind: input, shape index: {}]   ;;  %s2371_s10 = inlined_call_operand.vmem [shape: f32[32,96], index: 10, kind: input, shape index: {}]   ;;  %s2372_s11 = inlined_call_operand.vmem [shape: f32[32,96], index: 11, kind: input, shape index: {}]   ;;  %s2373_s12 = inlined_call_operand.vmem [shape: f32[1,256], index: 12, kind: input, shape index: {}]   ;;  %s2374_s13 = inlined_call_operand.vmem [shape: f32[1,32], index: 13, kind: input, shape index: {}]   ;;  %s2375_s14 = inlined_call_operand.vmem [shape: f32[1,32], index: 14, kind: input, shape index: {}]   ;;  %s2376_s15 = inlined_call_operand.vmem [shape: f32[1,32], index: 15, kind: input, shape index: {}]   ;;  %s2377_s16 = inlined_call_operand.vmem [shape: f32[1,32], index: 16, kind: input, shape index: {}]   ;;  %s2378_s17 = inlined_call_operand.vmem [shape: f32[8,2,32], index: 17, kind: output, shape index: {}]   ;;  %s2379_s0 = inlined_call_operand.vmem [shape: f32[8,2,16], index: 0, kind: input, shape index: {}]   ;;  %s2380_s2 = inlined_call_operand.vmem [shape: f32[32,96], index: 2, kind: input, shape index: {}]   ;;  %s2381_s3 = inlined_call_operand.vmem [shape: f32[32,96], index: 3, kind: input, shape index: {}]   ;;  %s2382_s5 = inlined_call_operand.vmem [shape: f32[1,32], index: 5, kind: input, shape index: {}]   ;;  %s2383_s6 = inlined_call_operand.vmem [shape: f32[1,32], index: 6, kind: input, shape index: {}]   ;;  %s2384_s4 = inlined_call_operand.vmem [shape: f32[1,256], index: 4, kind: input, shape index: {}]  }
   0x1   :  { %2386 = sst [smem:[#allocation7_spill]] %s2367_s1  ;;  %191 = vmatprep.mubr.f32.mxu0 %v1766_v4  ;;  %197 = vmatprep.mubr.f32.mxu1 %v1766_v4  ;;  %v91_v6 = vunpack.c.l.s4 %v1767_v5  ;;  %v56_v9 = vld [vmem:[%s2379_s0] sm:$0x3]  ;;  %v57_v10 = vld [vmem:[%s2379_s0 + $0x2] sm:$0x3]  ;;  %v1923_v32 = vld [vmem:[%s2380_s2 + $0x8] sm:$0xff] }
   0x2   :  { %2387 = sst [smem:[#allocation8_spill]] %s2368_s7  ;;  %s2388_s26 = sld [smem:[#allocation7_spill]]  ;;  %v1888_v11 = vshrl.u32 %v70_v0, 7  ;;  %v58_v13 = vld [vmem:[%s2379_s0 + $0x4] sm:$0x3]  ;;  %v88_v15 = vcombine.low %v56_v9, %v57_v10  ;;  %v1928_v33 = vld [vmem:[%s2380_s2 + $0x10] sm:$0xff] }
   0x3   :  { %v59_v14 = vld [vmem:[%s2379_s0 + $0x6] sm:$0x3]  ;;  %v92_v16 = vunpack.c.0.s8 %v91_v6  ;;  %v60_v17 = vld [vmem:[%s2379_s0 + $0x8] sm:$0x3]  ;;  %v61_v19 = vld [vmem:[%s2379_s0 + $0xa] sm:$0x3] }
   0x4   :  { %v89_v18 = vcombine.low %v58_v13, %v59_v14  ;;  %v62_v20 = vld [vmem:[%s2379_s0 + $0xc] sm:$0x3]  ;;  %v63_v21 = vld [vmem:[%s2379_s0 + $0xe] sm:$0x3]  ;;  %v105_v23 = vcombine.low %v60_v17, %v61_v19  ;;  %v1918_v31 = vld [vmem:[%s2380_s2] sm:$0xff]  ;;  %v72_v41 = vsub.s32 0, %v1888_v11 }
   0x5   :  { %v1909_v22 = vsub.s32 %v92_v16, %v1888_v11  ;;  %v106_v24 = vcombine.low %v62_v20, %v63_v21  ;;  %v1933_v34 = vld [vmem:[%s2380_s2 + $0x18] sm:$0xff]  ;;  %v1938_v35 = vld [vmem:[%s2381_s3] sm:$0xff]  ;;  %v1943_v36 = vld [vmem:[%s2381_s3 + $0x8] sm:$0xff]  ;;  %v76_v43 = vsub.s32 1, %v1888_v11  ;;  %v1984_v13 = vmov 0.0  }
   0x6   :  { %v1948_v37 = vld [vmem:[%s2381_s3 + $0x10] sm:$0xff]  ;;  %v1953_v38 = vld [vmem:[%s2381_s3 + $0x18] sm:$0xff]  ;;  %v1958_v39 = vld [vmem:[%s2382_s5] ss:$0 sm:$0xff]  ;;  %s1986_s3 = smov 0  }
   0x7   :  { %v96_v25 = vrot.slane %v88_v15, %v1909_v22  ;;  %v103_v26 = vrot.slane %v89_v18, %v1909_v22  ;;  %v113_v27 = vrot.slane %v105_v23, %v1909_v22  ;;  %v120_v28 = vrot.slane %v106_v24, %v1909_v22  ;;  %v1963_v40 = vld [vmem:[%s2383_s6] ss:$0 sm:$0xff] }
   0x8   :  { %v65_v1 = vld [vmem:[%s2388_s26 + $0x8] sm:$0xff]  ;;  %v67_v2 = vld [vmem:[%s2388_s26 + $0x18] sm:$0xff]  ;;  %v64_v3 = vld [vmem:[%s2388_s26] sm:$0xff] }
   0x9   :  { %v1560_v7 = vpack.c.bf16 %v67_v2, %v65_v1  ;;  %v66_v8 = vld [vmem:[%s2388_s26 + $0x10] sm:$0xff]  ;;  %v104_v29 = vcombine.low %v96_v25, %v103_v26  ;;  %v121_v30 = vcombine.low %v113_v27, %v120_v28  ;;  %v68_v42 = vld [vmem:[%s2384_s4] sm:$0x3] }
   0xa   :  { %v1562_v12 = vpack.c.bf16 %v66_v8, %v64_v3  ;;  %v73_v44 = vrot.slane %v68_v42, %v72_v41  ;;  %v77_v45 = vrot.slane %v68_v42, %v76_v43 }
   0xb   :  { %1561 = vmatprep.subr.bf16.mxu0 %v1560_v7  ;;  %1596 = vmatprep.subr.bf16.mxu1 %v1560_v7 }
   0xc   :  { %1563 = vmatpush1.bf16.msra.mxu0 %v1562_v12  ;;  %1597 = vmatpush1.bf16.msra.mxu1 %v1562_v12  ;;  %v1982_v12 = vmov 0.0  }
   0xf   :  { %1456 = vmatmul.mubr.msk.f32.vlgmr.msra.gmra.mrb[0].mxu0 %vm122_vm0, %v104_v29  ;;  %1457 = vmatmul.mubr.msk.f32.vlgmr.msra.gmra.mrb[0].mxu1 %vm122_vm0, %v121_v30 }
  0xe2   :  { %v193_v46 = vpop.f32.mrb[0].mxu0  ;;  %v199_v47 = vpop.f32.mrb[0].mxu1 }
  0xe3   :  { %v194_v48 = vadd.f32 %v193_v46, %v73_v44  ;;  %v200_v49 = vadd.f32 %v199_v47, %v73_v44  ;;  %v195_v50 = vpop.f32.mrb[1].mxu0  ;;  %v201_v51 = vpop.f32.mrb[1].mxu1 }
  0xe4   :  { %v196_v52 = vadd.f32 %v195_v50, %v77_v45  ;;  %v202_v53 = vadd.f32 %v201_v51, %v77_v45 }
  0xe5   :  { %v206_v54 = vcombine.high %v194_v48, %v194_v48  ;;  %v213_v55 = vrot.slane %v194_v48, %v1909_v22  ;;  %1458 = vst.sshfl [vmem:[#allocation2] sm:$0x3 pattern:$0x76325410] %v194_v48  ;;  %v223_v56 = vcombine.high %v200_v49, %v200_v49  ;;  %v230_v57 = vrot.slane %v200_v49, %v1909_v22 }
  0xe6   :  { %1460 = vst.sshfl [vmem:[#allocation2 + $0x8] sm:$0x3 pattern:$0x76325410] %v200_v49  ;;  %v258_v58 = vcombine.high %v196_v52, %v196_v52  ;;  %v265_v59 = vrot.slane %v196_v52, %v1909_v22  ;;  %v275_v60 = vcombine.high %v202_v53, %v202_v53  ;;  %v282_v61 = vrot.slane %v202_v53, %v1909_v22 }
  0xe7   :  { %1462 = vst.sshfl [vmem:[#allocation3] sm:$0x3 pattern:$0x76325410] %v196_v52  ;;  %v220_v62 = vrot.slane %v206_v54, %v1909_v22  ;;  %v221_v63 = vcombine.high %v213_v55, %v213_v55  ;;  %v237_v0 = vrot.slane %v223_v56, %v1909_v22  ;;  %v238_v1 = vcombine.high %v230_v57, %v230_v57 }
  0xe8   :  { %1464 = vst.sshfl [vmem:[#allocation3 + $0x8] sm:$0x3 pattern:$0x76325410] %v202_v53  ;;  %v272_v2 = vrot.slane %v258_v58, %v1909_v22  ;;  %v273_v3 = vcombine.high %v265_v59, %v265_v59  ;;  %v289_v5 = vrot.slane %v275_v60, %v1909_v22  ;;  %v290_v6 = vcombine.high %v282_v61, %v282_v61 }
  0xe9   :  { %1459 = vst.sshfl [vmem:[#allocation2 + $0x4] sm:$0x3 pattern:$0x76325410] %v206_v54  ;;  %v222_v7 = vcombine.high %v220_v62, %v220_v62  ;;  %249 = vst [vmem:[#allocation2 + $0x2] sm:$0x3] %v221_v63  ;;  %v239_v8 = vcombine.high %v237_v0, %v237_v0 }
  0xea   :  { %1461 = vst.sshfl [vmem:[#allocation2 + $0xc] sm:$0x3 pattern:$0x76325410] %v223_v56  ;;  %253 = vst [vmem:[#allocation2 + $0xa] sm:$0x3] %v238_v1  ;;  %v274_v9 = vcombine.high %v272_v2, %v272_v2  ;;  %v291_v10 = vcombine.high %v289_v5, %v289_v5 }
  0xeb   :  { %1463 = vst.sshfl [vmem:[#allocation3 + $0x4] sm:$0x3 pattern:$0x76325410] %v258_v58  ;;  %301 = vst [vmem:[#allocation3 + $0x2] sm:$0x3] %v273_v3 }
  0xec   :  { %1465 = vst.sshfl [vmem:[#allocation3 + $0xc] sm:$0x3 pattern:$0x76325410] %v275_v60  ;;  %305 = vst [vmem:[#allocation3 + $0xa] sm:$0x3] %v290_v6 }
  0xed   :  { %251 = vst [vmem:[#allocation2 + $0x6] sm:$0x3] %v222_v7  ;;  %255 = vst [vmem:[#allocation2 + $0xe] sm:$0x3] %v239_v8 }
  0xee   :  { %303 = vst [vmem:[#allocation3 + $0x6] sm:$0x3] %v274_v9  ;;  %307 = vst [vmem:[#allocation3 + $0xe] sm:$0x3] %v291_v10 }
  0xef LB: > { %v1565_v14 = vpack.c.bf16 %v1923_v32, %v1918_v31  ;;  %v1768_v15 = vmov 0.0|0.0   ;;  %v1571_v16 = vpack.c.bf16 %v1943_v36, %v1938_v35  ;;  %s1769_s4 = smov 96   ;;  %v1568_v17 = vpack.c.bf16 %v1933_v34, %v1928_v33  ;;  %s1772_s5 = smov 64   ;;  %s1752_s3 = sphi %s1986_s3, %s333_s3   ;;  %v1748_v13 = vphi %v1984_v13, %v520_v13   ;;  %v1744_v12 = vphi %v1982_v12, %v553_v12  }
  0xf0   : > { %1564 = vmatprep.subr.bf16.mxu0 %v1768_v15  ;;  %1570 = vmatprep.subr.bf16.mxu1 %v1768_v15  ;;  %v1574_v18 = vpack.c.bf16 %v1953_v38, %v1948_v37  ;;  %vm1770_vm1 = vmmov 0   ;;  %v1771_v19 = vmov 0.0   ;;  %vm340_vm2 = vcmask 261120   ;;  %s1470_s6 = sshll.u32 %s1752_s3, 1  ;;  %s336_s23 = ssub.s32 7, %s1752_s3 }
  0xf1   : > { %338 = vrot.lane.b32.xlu0 %v1748_v13, %s1769_s4  ;;  %1566 = vmatpush3.bf16.msra.mxu0 %v1565_v14  ;;  %s2019_s24 = sshll.u32 %s336_s23, 1  ;;  %s489_s25 = scalar_lea.vmem [#allocation2], %s1470_s6  ;;  %vm559_vm3 = vcmask 254976  }
  0xf2   : > { %1567 = vmatprep.subr.bf16.mxu0 %v1768_v15  ;;  %1572 = vmatpush3.bf16.msra.mxu1 %v1571_v16  ;;  %s522_s26 = scalar_lea.vmem [#allocation3], %s2019_s24  ;;  %s558_s27 = scalar_lea.vmem [#allocation4], %s1470_s6 }
  0xf3   : > { %1524 = vmatprep.mubr.msk.f32.mxu0 %vm1770_vm1, %v1771_v19  ;;  %1573 = vmatprep.subr.bf16.mxu1 %v1768_v15  ;;  %s565_s28 = scalar_lea.vmem [#allocation5], %s2019_s24  ;;  %s333_s3 = sadd.s32 1, %s1752_s3  }
  0xf4   : > { %1535 = vmatprep.mubr.msk.f32.mxu1 %vm1770_vm1, %v1771_v19  ;;  %498 = vrot.lane.b32.xlu1 %v1958_v39, %s1772_s5  ;;  %v490_v42 = vld [vmem:[%s489_s25] sm:$0x3]  ;;  %p330_p0 = scmp.ge.s32.totalorder %s333_s3, 8  }
  0xf5   : > { %414 = vrot.lane.b32.xlu0 %v1744_v12, %s1769_s4  ;;  %1569 = vmatpush3.bf16.msra.mxu0 %v1568_v17  ;;  %v523_v45 = vld [vmem:[%s522_s26] sm:$0x3]  ;;  %s2389_s25 = sld [smem:[#allocation8_spill]] (%p330_p0) }
  0xf6   : > { %1575 = vmatpush3.bf16.msra.mxu1 %v1574_v18 }
  0xf8   : > { %531 = vrot.lane.b32.xlu1 %v1963_v40, %s1772_s5 }
 0x163   : > { %v339_v20 = vpop.permute.xlu0 %338 }
 0x164   : > { %1525 = vmatmul.mubr.msk.f32.vlgmr.msra.gmra.mrb[0].mxu0 %vm340_vm2, %v339_v20 }
 0x165   :  { %874 = vmatprep.mubr.f32.mxu0 (%p330_p0), %v1766_v4 }
 0x166   : > { %v499_v23 = vpop.permute.xlu1 %498 }
 0x167   : > { %v415_v21 = vpop.permute.xlu0 %414 }
 0x168   : > { %1536 = vmatmul.mubr.msk.f32.vlgmr.msra.gmra.mrb[0].mxu1 %vm340_vm2, %v415_v21 }
 0x169   :  { %880 = vmatprep.mubr.f32.mxu1 (%p330_p0), %v1766_v4 }
 0x16a   : > { %v532_v27 = vpop.permute.xlu1 %531 }
 0x237   : > { %v409_v24 = vpop.f32.mrb[0].mxu0 }
 0x238   : > { %v501_v25 = vadd.f32 %v499_v23, %v409_v24  ;;  %v1526_v26 = vpop.f32.mrb[1].mxu0  ;;  %v491_v44 = vadd.f32 %v490_v42, %v409_v24 }
 0x23a   : > { %503 = vrot.lane.b32.xlu0 %v501_v25, %s1772_s5  ;;  %v1471_v46 = vmul.f32 -1.442695, %v491_v44 }
 0x23b   : > { %v484_v28 = vpop.f32.mrb[0].mxu1 }
 0x23c   : > { %v534_v29 = vadd.f32 %v532_v27, %v484_v28  ;;  %v1537_v30 = vpop.f32.mrb[1].mxu1  ;;  %v524_v47 = vadd.f32 %v523_v45, %v484_v28  ;;  %1662 = vpow2.f32 %v1471_v46 }
 0x23e   : > { %536 = vrot.lane.b32.xlu1 %v534_v29, %s1772_s5  ;;  %v1473_v48 = vmul.f32 -1.442695, %v524_v47 }
 0x240   : > { %1664 = vpow2.f32 %v1473_v48 }
 0x246   : > { %v1663_v49 = vpop.eup %1662 }
 0x247   : > { %v495_v50 = vadd.f32 1.0, %v1663_v49 }
 0x249   : > { %1666 = vrcp.f32 %v495_v50 }
 0x24a   : > { %v1665_v51 = vpop.eup %1664 }
 0x24b   : > { %v528_v52 = vadd.f32 1.0, %v1665_v51 }
 0x24d   : > { %1668 = vrcp.f32 %v528_v52 }
 0x253   : > { %v1667_v53 = vpop.eup %1666 }
 0x254   : > { %v513_v1 = vsub.f32 1.0, %v1667_v53  ;;  %v519_v3 = vmul.f32 %v1748_v13, %v1667_v53 }
 0x257   : > { %v1669_v56 = vpop.eup %1668 }
 0x258   : > { %v546_v6 = vsub.f32 1.0, %v1669_v56  ;;  %v552_v8 = vmul.f32 %v1744_v12, %v1669_v56 }
 0x2ac   : > { %v504_v54 = vpop.permute.xlu0 %503 }
 0x2ad   : > { %v506_v55 = vmul.f32 %v1667_v53, %v504_v54 }
 0x2af   : > { %508 = vrot.lane.b32.xlu0 %v506_v55, %s1772_s5 }
 0x2b0   : > { %v537_v57 = vpop.permute.xlu1 %536 }
 0x2b1   : > { %v539_v58 = vmul.f32 %v1669_v56, %v537_v57 }
 0x2b3   : > { %541 = vrot.lane.b32.xlu1 %v539_v58, %s1772_s5 }
 0x321   : > { %v509_v59 = vpop.permute.xlu0 %508 }
 0x322   : > { %v511_v60 = vadd.f32 %v509_v59, %v490_v42 }
 0x324   : > { %1670 = vtanh.f32 %v511_v60 }
 0x325   : > { %v542_v61 = vpop.permute.xlu1 %541 }
 0x326   : > { %v544_v62 = vadd.f32 %v542_v61, %v523_v45 }
 0x328   : > { %1672 = vtanh.f32 %v544_v62 }
 0x32e   : > { %v1671_v63 = vpop.eup %1670 }
 0x32f   : > { %515 = vrot.lane.b32.xlu0 %v1671_v63, %s1769_s4 }
 0x332   : > { %v1673_v0 = vpop.eup %1672 }
 0x333   : > { %548 = vrot.lane.b32.xlu1 %v1673_v0, %s1769_s4 }
 0x3a1   : > { %v516_v2 = vpop.permute.xlu0 %515 }
 0x3a2   : > { %v518_v5 = vmul.f32 %v516_v2, %v513_v1 }
 0x3a4   : > { %v520_v13 = vadd.f32 %v519_v3, %v518_v5  }
 0x3a5   : > { %v549_v7 = vpop.permute.xlu1 %548 }
 0x3a6   : > { %v551_v9 = vmul.f32 %v549_v7, %v546_v6  ;;  %555 = vrot.lane.b32.xlu0 %v520_v13, %s1769_s4 }
 0x3a8   : > { %v553_v12 = vadd.f32 %v552_v8, %v551_v9  }
 0x3aa   : > { %562 = vrot.lane.b32.xlu1 %v553_v12, %s1769_s4 }
 0x417   :  { %332 = sbr.rel (!%p330_p0) target bundleno = 239 (0xef), region = 110 }
 0x418   : > { %v556_v10 = vpop.permute.xlu0 %555 }
 0x419   : > { %560 = vst.msk [vmem:[%s558_s27] sm:$0x3] %vm559_vm3, %v556_v10 }
 0x41c   : > { %v563_v14 = vpop.permute.xlu1 %562 }
 0x41d   : > { %566 = vst.msk [vmem:[%s565_s28] sm:$0x3] %vm559_vm3, %v563_v14 }
 0x420   :  { %v567_v15 = vld [vmem:[#allocation4] sm:$0x3]  ;;  %v569_v17 = vld [vmem:[#allocation4 + $0x4] sm:$0x3]  ;;  %v568_v20 = vld [vmem:[#allocation4 + $0x2] sm:$0x3] }
 0x421   :  { %v570_v25 = vld [vmem:[#allocation4 + $0x6] sm:$0x3]  ;;  %v571_v27 = vld [vmem:[#allocation4 + $0x8] sm:$0x3]  ;;  %v572_v31 = vld [vmem:[#allocation4 + $0xa] sm:$0x3] }
 0x422   :  { %v573_v37 = vld [vmem:[#allocation4 + $0xc] sm:$0x3]  ;;  %v574_v39 = vld [vmem:[#allocation4 + $0xe] sm:$0x3] }
 0x424   :  { %v575_v16 = vld [vmem:[#allocation5] sm:$0x3]  ;;  %v577_v19 = vld [vmem:[#allocation5 + $0x4] sm:$0x3]  ;;  %v576_v21 = vld [vmem:[#allocation5 + $0x2] sm:$0x3] }
 0x425   :  { %v583_v18 = vadd.f32 %v575_v16, %v567_v15  ;;  %v585_v23 = vadd.f32 %v577_v19, %v569_v17  ;;  %v584_v24 = vadd.f32 %v576_v21, %v568_v20  ;;  %v578_v26 = vld [vmem:[#allocation5 + $0x6] sm:$0x3]  ;;  %v579_v29 = vld [vmem:[#allocation5 + $0x8] sm:$0x3]  ;;  %v580_v33 = vld [vmem:[#allocation5 + $0xa] sm:$0x3] }
 0x426   :  { %v586_v28 = vadd.f32 %v578_v26, %v570_v25  ;;  %v587_v34 = vadd.f32 %v579_v29, %v571_v27  ;;  %v588_v36 = vadd.f32 %v580_v33, %v572_v31  ;;  %v581_v38 = vld [vmem:[#allocation5 + $0xc] sm:$0x3]  ;;  %v582_v40 = vld [vmem:[#allocation5 + $0xe] sm:$0x3]  ;;  %v743_v31 = vld [vmem:[%s2370_s9] sm:$0xff] }
 0x427   :  { %v592_v13 = vsel %vm559_vm3, %v583_v18, 0.0  ;;  %v598_v32 = vsel %vm559_vm3, %v585_v23, 0.0  ;;  %v595_v4 = vsel %vm559_vm3, %v584_v24, 0.0  ;;  %v589_v30 = vadd.f32 %v581_v38, %v573_v37  ;;  %v749_v37 = vld [vmem:[%s2370_s9 + $0x30] sm:$0xff] }
 0x428   :  { %593 = vadd.xlane.f32.xlu0 %v592_v13  ;;  %599 = vadd.xlane.f32.xlu1 %v598_v32  ;;  %v601_v35 = vsel %vm559_vm3, %v586_v28, 0.0  ;;  %v604_v12 = vsel %vm559_vm3, %v587_v34, 0.0  ;;  %v607_v42 = vsel %vm559_vm3, %v588_v36, 0.0  ;;  %v590_v44 = vadd.f32 %v582_v40, %v574_v39  ;;  %v744_v13 = vld [vmem:[%s2370_s9 + $0x8] sm:$0xff]  ;;  %v745_v32 = vld [vmem:[%s2370_s9 + $0x10] sm:$0xff] }
 0x429   :  { %v610_v45 = vsel %vm559_vm3, %v589_v30, 0.0  ;;  %v1578_v33 = vpack.c.bf16 %v745_v32, %v743_v31 }
 0x42a   :  { %v613_v46 = vsel %vm559_vm3, %v590_v44, 0.0 }
 0x42c   :  { %596 = vadd.xlane.f32.xlu0 %v595_v4  ;;  %602 = vadd.xlane.f32.xlu1 %v601_v35  ;;  %v748_v4 = vld [vmem:[%s2370_s9 + $0x28] sm:$0xff]  ;;  %v747_v35 = vld [vmem:[%s2370_s9 + $0x20] sm:$0xff] }
 0x42d   :  { %v1582_v38 = vpack.c.bf16 %v749_v37, %v747_v35 }
 0x430   :  { %605 = vadd.xlane.f32.xlu0 %v604_v12  ;;  %608 = vadd.xlane.f32.xlu1 %v607_v42 }
 0x434   :  { %611 = vadd.xlane.f32.xlu0 %v610_v45  ;;  %614 = vadd.xlane.f32.xlu1 %v613_v46 }
 0x4b5   :  { %v594_v47 = vpop.xlane.xlu0 %593  ;;  %v600_v49 = vpop.xlane.xlu1 %599 }
 0x4b6   :  { %v617_v48 = vmul.f32 0.03125, %v594_v47  ;;  %v619_v50 = vmul.f32 0.03125, %v600_v49 }
 0x4b8   :  { %v2054_v51 = vsub.f32 %v583_v18, %v617_v48  ;;  %v2056_v52 = vsub.f32 %v585_v23, %v619_v50 }
 0x4b9   :  { %v597_v53 = vpop.xlane.xlu0 %596  ;;  %v603_v55 = vpop.xlane.xlu1 %602 }
 0x4ba   :  { %v618_v54 = vmul.f32 0.03125, %v597_v53  ;;  %v633_v56 = vmul.f32 %v2054_v51, %v2054_v51  ;;  %v620_v57 = vmul.f32 0.03125, %v603_v55  ;;  %v635_v58 = vmul.f32 %v2056_v52, %v2056_v52 }
 0x4bc   :  { %v2062_v59 = vsub.f32 %v584_v24, %v618_v54  ;;  %v641_v60 = vsel %vm559_vm3, %v633_v56, 0.0  ;;  %v2065_v61 = vsub.f32 %v586_v28, %v620_v57  ;;  %v647_v1 = vsel %vm559_vm3, %v635_v58, 0.0  ;;  %v746_v28 = vld [vmem:[%s2370_s9 + $0x18] sm:$0xff] }
 0x4bd   :  { %642 = vadd.xlane.f32.xlu0 %v641_v60  ;;  %v606_v62 = vpop.xlane.xlu0 %605  ;;  %v609_v0 = vpop.xlane.xlu1 %608  ;;  %v1576_v29 = vpack.c.bf16 %v746_v28, %v744_v13 }
 0x4be   :  { %v621_v63 = vmul.f32 0.03125, %v606_v62  ;;  %v634_v2 = vmul.f32 %v2062_v59, %v2062_v59  ;;  %v622_v3 = vmul.f32 0.03125, %v609_v0  ;;  %v636_v5 = vmul.f32 %v2065_v61, %v2065_v61 }
 0x4bf   :  { %1577 = vmatprep.subr.bf16.mxu0 %v1576_v29  ;;  %1598 = vmatprep.subr.bf16.mxu1 %v1576_v29 }
 0x4c0   :  { %v2072_v6 = vsub.f32 %v587_v34, %v621_v63  ;;  %v644_v7 = vsel %vm559_vm3, %v634_v2, 0.0  ;;  %v2075_v8 = vsub.f32 %v588_v36, %v622_v3  ;;  %v650_v15 = vsel %vm559_vm3, %v636_v5, 0.0  ;;  %1579 = vmatpush1.bf16.msra.mxu0 %v1578_v33  ;;  %v750_v34 = vld [vmem:[%s2370_s9 + $0x38] sm:$0xff]  ;;  %1600 = vmatpush1.bf16.msra.mxu1 %v1578_v33  ;;  %v1474_v63 = vld [vmem:[%s2389_s25] ss:$0 sm:$0xff] }
 0x4c1   :  { %648 = vadd.xlane.f32.xlu0 %v647_v1  ;;  %645 = vadd.xlane.f32.xlu1 %v644_v7  ;;  %v612_v9 = vpop.xlane.xlu0 %611  ;;  %v615_v14 = vpop.xlane.xlu1 %614  ;;  %v1580_v36 = vpack.c.bf16 %v750_v34, %v748_v4  ;;  %v1475_v5 = vld [vmem:[%s2369_s8] ss:$0 sm:$0xff] }
 0x4c2   :  { %v623_v10 = vmul.f32 0.03125, %v612_v9  ;;  %v637_v16 = vmul.f32 %v2072_v6, %v2072_v6  ;;  %v624_v17 = vmul.f32 0.03125, %v615_v14  ;;  %v638_v18 = vmul.f32 %v2075_v8, %v2075_v8 }
 0x4c3   :  { %1581 = vmatprep.subr.bf16.mxu0 %v1580_v36  ;;  %1599 = vmatprep.subr.bf16.mxu1 %v1580_v36 }
 0x4c4   :  { %v2082_v19 = vsub.f32 %v589_v30, %v623_v10  ;;  %v653_v20 = vsel %vm559_vm3, %v637_v16, 0.0  ;;  %v2085_v21 = vsub.f32 %v590_v44, %v624_v17  ;;  %v656_v23 = vsel %vm559_vm3, %v638_v18, 0.0  ;;  %1583 = vmatpush1.bf16.msra.mxu0 %v1582_v38  ;;  %1601 = vmatpush1.bf16.msra.mxu1 %v1582_v38 }
 0x4c5   :  { %651 = vadd.xlane.f32.xlu1 %v650_v15  ;;  %654 = vadd.xlane.f32.xlu0 %v653_v20 }
 0x4c6   :  { %v639_v24 = vmul.f32 %v2082_v19, %v2082_v19  ;;  %v640_v25 = vmul.f32 %v2085_v21, %v2085_v21 }
 0x4c8   :  { %v659_v26 = vsel %vm559_vm3, %v639_v24, 0.0  ;;  %v662_v27 = vsel %vm559_vm3, %v640_v25, 0.0 }
 0x4c9   :  { %657 = vadd.xlane.f32.xlu1 %v656_v23  ;;  %660 = vadd.xlane.f32.xlu0 %v659_v26 }
 0x4cd   :  { %663 = vadd.xlane.f32.xlu1 %v662_v27 }
 0x54a   :  { %v643_v39 = vpop.xlane.xlu0 %642 }
 0x54b   :  { %v665_v40 = vmul.f32 0.03125, %v643_v39 }
 0x54d   :  { %v673_v12 = vadd.f32 1e-05, %v665_v40 }
 0x54e   :  { %v646_v30 = vpop.xlane.xlu1 %645  ;;  %v649_v42 = vpop.xlane.xlu0 %648 }
 0x54f   :  { %1674 = vrsqrt.f32 %v673_v12  ;;  %v666_v44 = vmul.f32 0.03125, %v646_v30  ;;  %v667_v45 = vmul.f32 0.03125, %v649_v42 }
 0x551   :  { %v674_v46 = vadd.f32 1e-05, %v666_v44  ;;  %v675_v47 = vadd.f32 1e-05, %v667_v45 }
 0x552   :  { %v652_v48 = vpop.xlane.xlu1 %651  ;;  %v655_v49 = vpop.xlane.xlu0 %654 }
 0x553   :  { %1676 = vrsqrt.f32 %v674_v46  ;;  %v668_v50 = vmul.f32 0.03125, %v652_v48  ;;  %v669_v53 = vmul.f32 0.03125, %v655_v49 }
 0x554   :  { %1678 = vrsqrt.f32 %v675_v47 }
 0x555   :  { %v676_v54 = vadd.f32 1e-05, %v668_v50  ;;  %v677_v55 = vadd.f32 1e-05, %v669_v53 }
 0x556   :  { %v658_v56 = vpop.xlane.xlu1 %657  ;;  %v661_v57 = vpop.xlane.xlu0 %660 }
 0x557   :  { %1680 = vrsqrt.f32 %v676_v54  ;;  %v670_v58 = vmul.f32 0.03125, %v658_v56  ;;  %v671_v60 = vmul.f32 0.03125, %v661_v57  ;;  %v2149_v57 = vld [vmem:[%s2371_s10] sm:$0xff] }
 0x558   :  { %1682 = vrsqrt.f32 %v677_v55 }
 0x559   :  { %v1675_v62 = vpop.eup %1674  ;;  %v678_v0 = vadd.f32 1e-05, %v670_v58  ;;  %v679_v1 = vadd.f32 1e-05, %v671_v60  ;;  %v2154_v58 = vld [vmem:[%s2371_s10 + $0x8] sm:$0xff]  ;;  %v2159_v60 = vld [vmem:[%s2371_s10 + $0x10] sm:$0xff] }
 0x55a   :  { %v689_v2 = vmul.f32 %v1675_v62, %v2054_v51  ;;  %v664_v3 = vpop.xlane.xlu1 %663  ;;  %v2164_v62 = vld [vmem:[%s2371_s10 + $0x18] sm:$0xff] }
 0x55b   :  { %1684 = vrsqrt.f32 %v678_v0  ;;  %v672_v7 = vmul.f32 0.03125, %v664_v3  ;;  %v2174_v0 = vld [vmem:[%s2372_s11 + $0x8] sm:$0xff]  ;;  %v2189_v3 = vld [vmem:[%s2374_s13] ss:$0 sm:$0xff] }
 0x55c   :  { %v704_v9 = vmul.f32 %v1474_v63, %v689_v2  ;;  %1686 = vrsqrt.f32 %v679_v1  ;;  %v2179_v1 = vld [vmem:[%s2372_s11 + $0x10] sm:$0xff]  ;;  %v2184_v2 = vld [vmem:[%s2372_s11 + $0x18] sm:$0xff] }
 0x55d   :  { %v1677_v10 = vpop.eup %1676  ;;  %v680_v14 = vadd.f32 1e-05, %v672_v7  ;;  %v751_v7 = vld [vmem:[%s2373_s12] sm:$0x3] }
 0x55e   :  { %v1679_v15 = vpop.eup %1678  ;;  %v719_v16 = vadd.f32 %v1475_v5, %v704_v9  ;;  %v690_v17 = vmul.f32 %v1677_v10, %v2062_v59  ;;  %v756_v9 = vrot.slane %v751_v7, %v72_v41  ;;  %v760_v10 = vrot.slane %v751_v7, %v76_v43 }
 0x55f   :  { %v691_v18 = vmul.f32 %v1679_v15, %v2056_v52  ;;  %1688 = vrsqrt.f32 %v680_v14 }
 0x560   :  { %727 = vst.msk [vmem:[#allocation6] sm:$0x3] %vm559_vm3, %v719_v16  ;;  %v705_v51 = vmul.f32 %v1474_v63, %v690_v17 }
 0x561   :  { %v1681_v20 = vpop.eup %1680  ;;  %v706_v23 = vmul.f32 %v1474_v63, %v691_v18 }
 0x562   :  { %v1683_v24 = vpop.eup %1682  ;;  %v720_v25 = vadd.f32 %v1475_v5, %v705_v51  ;;  %v692_v26 = vmul.f32 %v1681_v20, %v2065_v61 }
 0x563   :  { %v721_v27 = vadd.f32 %v1475_v5, %v706_v23  ;;  %v693_v13 = vmul.f32 %v1683_v24, %v2072_v6 }
 0x564   :  { %728 = vst.msk [vmem:[#allocation6 + $0x2] sm:$0x3] %vm559_vm3, %v720_v25  ;;  %v707_v28 = vmul.f32 %v1474_v63, %v692_v26 }
 0x565   :  { %v1685_v29 = vpop.eup %1684  ;;  %729 = vst.msk [vmem:[#allocation6 + $0x4] sm:$0x3] %vm559_vm3, %v721_v27  ;;  %v708_v52 = vmul.f32 %v1474_v63, %v693_v13 }
 0x566   :  { %v1687_v59 = vpop.eup %1686  ;;  %v722_v31 = vadd.f32 %v1475_v5, %v707_v28  ;;  %v694_v32 = vmul.f32 %v1685_v29, %v2075_v8 }
 0x567   :  { %v723_v33 = vadd.f32 %v1475_v5, %v708_v52  ;;  %v695_v4 = vmul.f32 %v1687_v59, %v2082_v19  ;;  %v735_v8 = vld [vmem:[#allocation6] sm:$0x3] }
 0x568   :  { %730 = vst.msk [vmem:[#allocation6 + $0x6] sm:$0x3] %vm559_vm3, %v722_v31  ;;  %v709_v61 = vmul.f32 %v1474_v63, %v694_v32 }
 0x569   :  { %v1689_v34 = vpop.eup %1688  ;;  %731 = vst.msk [vmem:[#allocation6 + $0x8] sm:$0x3] %vm559_vm3, %v723_v33  ;;  %v710_v6 = vmul.f32 %v1474_v63, %v695_v4 }
 0x56a   :  { %v724_v35 = vadd.f32 %v1475_v5, %v709_v61  ;;  %v696_v36 = vmul.f32 %v1689_v34, %v2085_v21 }
 0x56b   :  { %v725_v37 = vadd.f32 %v1475_v5, %v710_v6  ;;  %v736_v38 = vld [vmem:[#allocation6 + $0x2] sm:$0x3] }
 0x56c   :  { %732 = vst.msk [vmem:[#allocation6 + $0xa] sm:$0x3] %vm559_vm3, %v724_v35  ;;  %v711_v39 = vmul.f32 %v1474_v63, %v696_v36  ;;  %v771_v19 = vcombine.low %v735_v8, %v736_v38  ;;  %v737_v12 = vld [vmem:[#allocation6 + $0x4] sm:$0x3]  ;;  %v2211_v36 = vmov 0.0  }
 0x56d   :  { %733 = vst.msk [vmem:[#allocation6 + $0xc] sm:$0x3] %vm559_vm3, %v725_v37  ;;  %v2169_v63 = vld [vmem:[%s2372_s11] sm:$0xff]  ;;  %v2213_v37 = vmov 0.0   ;;  %s2215_s11 = smov 0  }
 0x56e   :  { %v726_v40 = vadd.f32 %v1475_v5, %v711_v39  ;;  %v779_v44 = vrot.slane %v771_v19, %v1909_v22  ;;  %v2194_v5 = vld [vmem:[%s2375_s14] ss:$0 sm:$0xff] }
 0x56f   :  { %v738_v30 = vld [vmem:[#allocation6 + $0x6] sm:$0x3] }
 0x570   :  { %734 = vst.msk [vmem:[#allocation6 + $0xe] sm:$0x3] %vm559_vm3, %v726_v40  ;;  %v772_v42 = vcombine.low %v737_v12, %v738_v30  ;;  %v739_v47 = vld [vmem:[#allocation6 + $0x8] sm:$0x3] }
 0x572   :  { %v786_v45 = vrot.slane %v772_v42, %v1909_v22 }
 0x573   :  { %v740_v21 = vld [vmem:[#allocation6 + $0xa] sm:$0x3] }
 0x574   :  { %v787_v46 = vcombine.low %v779_v44, %v786_v45  ;;  %v788_v48 = vcombine.low %v739_v47, %v740_v21  ;;  %v741_v49 = vld [vmem:[#allocation6 + $0xc] sm:$0x3] }
 0x576   :  { %1476 = vmatmul.mubr.msk.f32.vlgmr.msra.gmra.mrb[0].mxu0 %vm340_vm2, %v787_v46  ;;  %v796_v54 = vrot.slane %v788_v48, %v1909_v22 }
 0x577   :  { %v742_v50 = vld [vmem:[#allocation6 + $0xe] sm:$0x3] }
 0x578   :  { %v789_v53 = vcombine.low %v741_v49, %v742_v50 }
 0x57a   :  { %v803_v55 = vrot.slane %v789_v53, %v1909_v22 }
 0x57c   :  { %v804_v56 = vcombine.low %v796_v54, %v803_v55 }
 0x57e   :  { %1477 = vmatmul.mubr.msk.f32.vlgmr.msra.gmra.mrb[0].mxu1 %vm340_vm2, %v804_v56 }
 0x649   :  { %v876_v14 = vpop.f32.mrb[0].mxu0 }
 0x64a   :  { %v877_v15 = vadd.f32 %v876_v14, %v756_v9  ;;  %v878_v16 = vpop.f32.mrb[1].mxu0 }
 0x64b   :  { %v879_v17 = vadd.f32 %v878_v16, %v760_v10 }
 0x64c   :  { %v889_v18 = vcombine.high %v877_v15, %v877_v15  ;;  %v896_v51 = vrot.slane %v877_v15, %v1909_v22  ;;  %1478 = vst.sshfl [vmem:[#allocation2] sm:$0x3 pattern:$0x76325410] %v877_v15 }
 0x64d   :  { %v941_v20 = vcombine.high %v879_v17, %v879_v17  ;;  %v948_v23 = vrot.slane %v879_v17, %v1909_v22  ;;  %1482 = vst.sshfl [vmem:[#allocation3] sm:$0x3 pattern:$0x76325410] %v879_v17 }
 0x64e   :  { %v903_v24 = vrot.slane %v889_v18, %v1909_v22  ;;  %v904_v25 = vcombine.high %v896_v51, %v896_v51  ;;  %1479 = vst.sshfl [vmem:[#allocation2 + $0x4] sm:$0x3 pattern:$0x76325410] %v889_v18 }
 0x64f   :  { %v955_v41 = vrot.slane %v941_v20, %v1909_v22  ;;  %v956_v11 = vcombine.high %v948_v23, %v948_v23  ;;  %1483 = vst.sshfl [vmem:[#allocation3 + $0x4] sm:$0x3 pattern:$0x76325410] %v941_v20 }
 0x650   :  { %v905_v43 = vcombine.high %v903_v24, %v903_v24  ;;  %932 = vst [vmem:[#allocation2 + $0x2] sm:$0x3] %v904_v25 }
 0x651   :  { %v957_v26 = vcombine.high %v955_v41, %v955_v41  ;;  %984 = vst [vmem:[#allocation3 + $0x2] sm:$0x3] %v956_v11  ;;  %v882_v27 = vpop.f32.mrb[0].mxu1 }
 0x652   :  { %934 = vst [vmem:[#allocation2 + $0x6] sm:$0x3] %v905_v43  ;;  %v883_v13 = vadd.f32 %v882_v27, %v756_v9  ;;  %v884_v28 = vpop.f32.mrb[1].mxu1 }
 0x653   :  { %986 = vst [vmem:[#allocation3 + $0x6] sm:$0x3] %v957_v26  ;;  %v885_v29 = vadd.f32 %v884_v28, %v760_v10 }
 0x654   :  { %v906_v52 = vcombine.high %v883_v13, %v883_v13  ;;  %v913_v59 = vrot.slane %v883_v13, %v1909_v22  ;;  %1480 = vst.sshfl [vmem:[#allocation2 + $0x8] sm:$0x3 pattern:$0x76325410] %v883_v13 }
 0x655   :  { %v958_v31 = vcombine.high %v885_v29, %v885_v29  ;;  %v965_v32 = vrot.slane %v885_v29, %v1909_v22  ;;  %1484 = vst.sshfl [vmem:[#allocation3 + $0x8] sm:$0x3 pattern:$0x76325410] %v885_v29 }
 0x656   :  { %v920_v33 = vrot.slane %v906_v52, %v1909_v22  ;;  %v921_v4 = vcombine.high %v913_v59, %v913_v59  ;;  %1481 = vst.sshfl [vmem:[#allocation2 + $0xc] sm:$0x3 pattern:$0x76325410] %v906_v52 }
 0x657   :  { %v972_v61 = vrot.slane %v958_v31, %v1909_v22  ;;  %v973_v34 = vcombine.high %v965_v32, %v965_v32  ;;  %1485 = vst.sshfl [vmem:[#allocation3 + $0xc] sm:$0x3 pattern:$0x76325410] %v958_v31 }
 0x658   :  { %v922_v6 = vcombine.high %v920_v33, %v920_v33  ;;  %936 = vst [vmem:[#allocation2 + $0xa] sm:$0x3] %v921_v4 }
 0x659   :  { %v974_v35 = vcombine.high %v972_v61, %v972_v61  ;;  %988 = vst [vmem:[#allocation3 + $0xa] sm:$0x3] %v973_v34 }
 0x65a   :  { %938 = vst [vmem:[#allocation2 + $0xe] sm:$0x3] %v922_v6 }
 0x65b   :  { %990 = vst [vmem:[#allocation3 + $0xe] sm:$0x3] %v974_v35 }
 0x65c LB: > { %v1585_v22 = vpack.c.bf16 %v2154_v58, %v2149_v57  ;;  %v1773_v38 = vmov 0.0|0.0   ;;  %v1591_v39 = vpack.c.bf16 %v2174_v0, %v2169_v63  ;;  %s1774_s12 = smov 96   ;;  %v1588_v8 = vpack.c.bf16 %v2164_v62, %v2159_v60  ;;  %s1777_s13 = smov 64   ;;  %s1764_s11 = sphi %s2215_s11, %s1016_s11   ;;  %v1760_v37 = vphi %v2213_v37, %v1202_v37   ;;  %v1756_v36 = vphi %v2211_v36, %v1235_v36  }
 0x65d   : > { %1584 = vmatprep.subr.bf16.mxu0 %v1773_v38  ;;  %1590 = vmatprep.subr.bf16.mxu1 %v1773_v38  ;;  %v1594_v40 = vpack.c.bf16 %v2184_v2, %v2179_v1  ;;  %vm1775_vm4 = vmmov 0   ;;  %v1776_v19 = vmov 0.0   ;;  %s1490_s14 = sshll.u32 %s1764_s11, 1  ;;  %s1019_s26 = ssub.s32 7, %s1764_s11 }
 0x65e   : > { %1021 = vrot.lane.b32.xlu0 %v1760_v37, %s1774_s12  ;;  %1586 = vmatpush3.bf16.msra.mxu0 %v1585_v22  ;;  %s2248_s27 = sshll.u32 %s1019_s26, 1  ;;  %s1171_s8 = scalar_lea.vmem [#allocation2], %s1490_s14 }
 0x65f   : > { %1587 = vmatprep.subr.bf16.mxu0 %v1773_v38  ;;  %1592 = vmatpush3.bf16.msra.mxu1 %v1591_v39  ;;  %s1204_s28 = scalar_lea.vmem [#allocation3], %s2248_s27  ;;  %s1240_s29 = scalar_lea.vmem [#allocation4], %s1490_s14 }
 0x660   : > { %1546 = vmatprep.mubr.msk.f32.mxu0 %vm1775_vm4, %v1776_v19  ;;  %1593 = vmatprep.subr.bf16.mxu1 %v1773_v38  ;;  %s1246_s1 = scalar_lea.vmem [#allocation5], %s2248_s27  ;;  %s1016_s11 = sadd.s32 1, %s1764_s11  }
 0x661   : > { %1557 = vmatprep.mubr.msk.f32.mxu1 %vm1775_vm4, %v1776_v19  ;;  %1180 = vrot.lane.b32.xlu1 %v2189_v3, %s1777_s13  ;;  %v1172_v50 = vld [vmem:[%s1171_s8] sm:$0x3]  ;;  %p1013_p1 = scmp.ge.s32.totalorder %s1016_s11, 8  }
 0x662   : > { %1096 = vrot.lane.b32.xlu0 %v1756_v36, %s1774_s12  ;;  %1589 = vmatpush3.bf16.msra.mxu0 %v1588_v8  ;;  %v1205_v54 = vld [vmem:[%s1204_s28] sm:$0x3] }
 0x663   : > { %1595 = vmatpush3.bf16.msra.mxu1 %v1594_v40 }
 0x665   : > { %1213 = vrot.lane.b32.xlu1 %v2194_v5, %s1777_s13 }
 0x6d0   : > { %v1022_v12 = vpop.permute.xlu0 %1021 }
 0x6d1   : > { %1547 = vmatmul.mubr.msk.f32.vlgmr.msra.gmra.mrb[0].mxu0 %vm340_vm2, %v1022_v12 }
 0x6d3   : > { %v1181_v42 = vpop.permute.xlu1 %1180 }
 0x6d4   : > { %v1097_v30 = vpop.permute.xlu0 %1096 }
 0x6d5   : > { %1558 = vmatmul.mubr.msk.f32.vlgmr.msra.gmra.mrb[0].mxu1 %vm340_vm2, %v1097_v30 }
 0x6d7   : > { %v1214_v46 = vpop.permute.xlu1 %1213 }
 0x7a4   : > { %v1091_v44 = vpop.f32.mrb[0].mxu0 }
 0x7a5   : > { %v1183_v45 = vadd.f32 %v1181_v42, %v1091_v44  ;;  %v1548_v21 = vpop.f32.mrb[1].mxu0  ;;  %v1173_v53 = vadd.f32 %v1172_v50, %v1091_v44 }
 0x7a7   : > { %1185 = vrot.lane.b32.xlu0 %v1183_v45, %s1777_s13  ;;  %v1491_v55 = vmul.f32 -1.442695, %v1173_v53 }
 0x7a8   : > { %v1166_v47 = vpop.f32.mrb[0].mxu1 }
 0x7a9   : > { %v1216_v48 = vadd.f32 %v1214_v46, %v1166_v47  ;;  %v1559_v49 = vpop.f32.mrb[1].mxu1  ;;  %v1206_v56 = vadd.f32 %v1205_v54, %v1166_v47  ;;  %1690 = vpow2.f32 %v1491_v55 }
 0x7ab   : > { %1218 = vrot.lane.b32.xlu1 %v1216_v48, %s1777_s13  ;;  %v1493_v7 = vmul.f32 -1.442695, %v1206_v56 }
 0x7ad   : > { %1692 = vpow2.f32 %v1493_v7 }
 0x7b3   : > { %v1691_v9 = vpop.eup %1690 }
 0x7b4   : > { %v1177_v10 = vadd.f32 1.0, %v1691_v9 }
 0x7b6   : > { %1694 = vrcp.f32 %v1177_v10 }
 0x7b7   : > { %v1693_v14 = vpop.eup %1692 }
 0x7b8   : > { %v1210_v15 = vadd.f32 1.0, %v1693_v14 }
 0x7ba   : > { %1696 = vrcp.f32 %v1210_v15 }
 0x7c0   : > { %v1695_v16 = vpop.eup %1694 }
 0x7c1   : > { %v1195_v27 = vsub.f32 1.0, %v1695_v16  ;;  %v1201_v28 = vmul.f32 %v1760_v37, %v1695_v16 }
 0x7c4   : > { %v1697_v51 = vpop.eup %1696 }
 0x7c5   : > { %v1228_v52 = vsub.f32 1.0, %v1697_v51  ;;  %v1234_v31 = vmul.f32 %v1756_v36, %v1697_v51 }
 0x819   : > { %v1186_v17 = vpop.permute.xlu0 %1185 }
 0x81a   : > { %v1188_v18 = vmul.f32 %v1695_v16, %v1186_v17 }
 0x81c   : > { %1190 = vrot.lane.b32.xlu0 %v1188_v18, %s1777_s13 }
 0x81d   : > { %v1219_v20 = vpop.permute.xlu1 %1218 }
 0x81e   : > { %v1221_v23 = vmul.f32 %v1697_v51, %v1219_v20 }
 0x820   : > { %1223 = vrot.lane.b32.xlu1 %v1221_v23, %s1777_s13 }
 0x88e   : > { %v1191_v24 = vpop.permute.xlu0 %1190 }
 0x88f   : > { %v1193_v25 = vadd.f32 %v1191_v24, %v1172_v50 }
 0x891   : > { %1698 = vtanh.f32 %v1193_v25 }
 0x892   : > { %v1224_v41 = vpop.permute.xlu1 %1223 }
 0x893   : > { %v1226_v11 = vadd.f32 %v1224_v41, %v1205_v54 }
 0x895   : > { %1700 = vtanh.f32 %v1226_v11 }
 0x89b   : > { %v1699_v43 = vpop.eup %1698 }
 0x89c   : > { %1197 = vrot.lane.b32.xlu0 %v1699_v43, %s1774_s12 }
 0x89f   : > { %v1701_v26 = vpop.eup %1700 }
 0x8a0   : > { %1230 = vrot.lane.b32.xlu1 %v1701_v26, %s1774_s12 }
 0x90e   : > { %v1198_v13 = vpop.permute.xlu0 %1197 }
 0x90f   : > { %v1200_v29 = vmul.f32 %v1198_v13, %v1195_v27 }
 0x911   : > { %v1202_v37 = vadd.f32 %v1201_v28, %v1200_v29  }
 0x912   : > { %v1231_v59 = vpop.permute.xlu1 %1230 }
 0x913   : > { %v1233_v32 = vmul.f32 %v1231_v59, %v1228_v52  ;;  %1237 = vrot.lane.b32.xlu0 %v1202_v37, %s1774_s12 }
 0x915   : > { %v1235_v36 = vadd.f32 %v1234_v31, %v1233_v32  }
 0x917   : > { %1243 = vrot.lane.b32.xlu1 %v1235_v36, %s1774_s12 }
 0x984   :  { %1015 = sbr.rel (!%p1013_p1) target bundleno = 1628 (0x65c), region = 121 }
 0x985   : > { %v1238_v33 = vpop.permute.xlu0 %1237 }
 0x986   : > { %1241 = vst.msk [vmem:[%s1240_s29] sm:$0x3] %vm559_vm3, %v1238_v33 }
 0x989   : > { %v1244_v4 = vpop.permute.xlu1 %1243 }
 0x98a   : > { %1247 = vst.msk [vmem:[%s1246_s1] sm:$0x3] %vm559_vm3, %v1244_v4 }
 0x98d   :  { %v1248_v61 = vld [vmem:[#allocation4] sm:$0x3]  ;;  %v1250_v6 = vld [vmem:[#allocation4 + $0x4] sm:$0x3]  ;;  %v1249_v38 = vld [vmem:[#allocation4 + $0x2] sm:$0x3] }
 0x98e   :  { %v1251_v19 = vld [vmem:[#allocation4 + $0x6] sm:$0x3]  ;;  %v1252_v30 = vld [vmem:[#allocation4 + $0x8] sm:$0x3]  ;;  %v1253_v37 = vld [vmem:[#allocation4 + $0xa] sm:$0x3] }
 0x98f   :  { %v1254_v0 = vld [vmem:[#allocation4 + $0xc] sm:$0x3]  ;;  %v1255_v2 = vld [vmem:[#allocation4 + $0xe] sm:$0x3] }
 0x991   :  { %v1256_v34 = vld [vmem:[#allocation5] sm:$0x3]  ;;  %v1258_v22 = vld [vmem:[#allocation5 + $0x4] sm:$0x3]  ;;  %v1257_v39 = vld [vmem:[#allocation5 + $0x2] sm:$0x3] }
 0x992   :  { %v1264_v35 = vadd.f32 %v1256_v34, %v1248_v61  ;;  %v1266_v8 = vadd.f32 %v1258_v22, %v1250_v6  ;;  %v1265_v40 = vadd.f32 %v1257_v39, %v1249_v38  ;;  %v1259_v12 = vld [vmem:[#allocation5 + $0x6] sm:$0x3]  ;;  %v1260_v45 = vld [vmem:[#allocation5 + $0x8] sm:$0x3]  ;;  %v1261_v57 = vld [vmem:[#allocation5 + $0xa] sm:$0x3] }
 0x993   :  { %v1267_v44 = vadd.f32 %v1259_v12, %v1251_v19  ;;  %v1268_v60 = vadd.f32 %v1260_v45, %v1252_v30  ;;  %v1269_v63 = vadd.f32 %v1261_v57, %v1253_v37  ;;  %v1262_v1 = vld [vmem:[#allocation5 + $0xc] sm:$0x3]  ;;  %v1263_v3 = vld [vmem:[#allocation5 + $0xe] sm:$0x3] }
 0x994   :  { %v1272_v42 = vsel %vm559_vm3, %v1264_v35, 0.0  ;;  %v1278_v21 = vsel %vm559_vm3, %v1266_v8, 0.0  ;;  %v1275_v58 = vsel %vm559_vm3, %v1265_v40, 0.0  ;;  %v1270_v36 = vadd.f32 %v1262_v1, %v1254_v0 }
 0x995   :  { %1273 = vadd.xlane.f32.xlu0 %v1272_v42  ;;  %1279 = vadd.xlane.f32.xlu1 %v1278_v21  ;;  %v1281_v62 = vsel %vm559_vm3, %v1267_v44, 0.0  ;;  %v1284_v5 = vsel %vm559_vm3, %v1268_v60, 0.0  ;;  %v1287_v46 = vsel %vm559_vm3, %v1269_v63, 0.0  ;;  %v1271_v47 = vadd.f32 %v1263_v3, %v1255_v2 }
 0x996   :  { %v1290_v48 = vsel %vm559_vm3, %v1270_v36, 0.0 }
 0x997   :  { %v1293_v49 = vsel %vm559_vm3, %v1271_v47, 0.0 }
 0x999   :  { %1276 = vadd.xlane.f32.xlu0 %v1275_v58  ;;  %1282 = vadd.xlane.f32.xlu1 %v1281_v62 }
 0x99d   :  { %1285 = vadd.xlane.f32.xlu0 %v1284_v5  ;;  %1288 = vadd.xlane.f32.xlu1 %v1287_v46  ;;  %v1494_v46 = vld [vmem:[%s2376_s15] ss:$0 sm:$0xff] }
 0x9a1   :  { %1291 = vadd.xlane.f32.xlu0 %v1290_v48  ;;  %1294 = vadd.xlane.f32.xlu1 %v1293_v49 }
 0xa22   :  { %v1274_v50 = vpop.xlane.xlu0 %1273  ;;  %v1280_v54 = vpop.xlane.xlu1 %1279 }
 0xa23   :  { %v1296_v53 = vmul.f32 0.03125, %v1274_v50  ;;  %v1298_v55 = vmul.f32 0.03125, %v1280_v54 }
 0xa25   :  { %v2281_v56 = vsub.f32 %v1264_v35, %v1296_v53  ;;  %v2283_v7 = vsub.f32 %v1266_v8, %v1298_v55  ;;  %v1495_v53 = vld [vmem:[%s2377_s16] ss:$0 sm:$0xff] }
 0xa26   :  { %v1277_v9 = vpop.xlane.xlu0 %1276  ;;  %v1283_v14 = vpop.xlane.xlu1 %1282 }
 0xa27   :  { %v1297_v10 = vmul.f32 0.03125, %v1277_v9  ;;  %v1312_v15 = vmul.f32 %v2281_v56, %v2281_v56  ;;  %v1299_v16 = vmul.f32 0.03125, %v1283_v14  ;;  %v1314_v17 = vmul.f32 %v2283_v7, %v2283_v7 }
 0xa29   :  { %v2289_v18 = vsub.f32 %v1265_v40, %v1297_v10  ;;  %v1320_v51 = vsel %vm559_vm3, %v1312_v15, 0.0  ;;  %v2292_v20 = vsub.f32 %v1267_v44, %v1299_v16  ;;  %v1326_v41 = vsel %vm559_vm3, %v1314_v17, 0.0 }
 0xa2a   :  { %1321 = vadd.xlane.f32.xlu0 %v1320_v51  ;;  %v1286_v23 = vpop.xlane.xlu0 %1285  ;;  %v1289_v25 = vpop.xlane.xlu1 %1288 }
 0xa2b   :  { %v1300_v24 = vmul.f32 0.03125, %v1286_v23  ;;  %v1313_v11 = vmul.f32 %v2289_v18, %v2289_v18  ;;  %v1301_v43 = vmul.f32 0.03125, %v1289_v25  ;;  %v1315_v26 = vmul.f32 %v2292_v20, %v2292_v20 }
 0xa2d   :  { %v2299_v27 = vsub.f32 %v1268_v60, %v1300_v24  ;;  %v1323_v13 = vsel %vm559_vm3, %v1313_v11, 0.0  ;;  %v2302_v28 = vsub.f32 %v1269_v63, %v1301_v43  ;;  %v1329_v31 = vsel %vm559_vm3, %v1315_v26, 0.0 }
 0xa2e   :  { %1327 = vadd.xlane.f32.xlu0 %v1326_v41  ;;  %1324 = vadd.xlane.f32.xlu1 %v1323_v13  ;;  %v1292_v29 = vpop.xlane.xlu0 %1291  ;;  %v1295_v59 = vpop.xlane.xlu1 %1294 }
 0xa2f   :  { %v1302_v52 = vmul.f32 0.03125, %v1292_v29  ;;  %v1316_v32 = vmul.f32 %v2299_v27, %v2299_v27  ;;  %v1303_v33 = vmul.f32 0.03125, %v1295_v59  ;;  %v1317_v4 = vmul.f32 %v2302_v28, %v2302_v28 }
 0xa31   :  { %v2309_v61 = vsub.f32 %v1270_v36, %v1302_v52  ;;  %v1332_v34 = vsel %vm559_vm3, %v1316_v32, 0.0  ;;  %v2312_v6 = vsub.f32 %v1271_v47, %v1303_v33  ;;  %v1335_v35 = vsel %vm559_vm3, %v1317_v4, 0.0 }
 0xa32   :  { %1330 = vadd.xlane.f32.xlu1 %v1329_v31  ;;  %1333 = vadd.xlane.f32.xlu0 %v1332_v34 }
 0xa33   :  { %v1318_v22 = vmul.f32 %v2309_v61, %v2309_v61  ;;  %v1319_v38 = vmul.f32 %v2312_v6, %v2312_v6 }
 0xa35   :  { %v1338_v39 = vsel %vm559_vm3, %v1318_v22, 0.0  ;;  %v1341_v8 = vsel %vm559_vm3, %v1319_v38, 0.0 }
 0xa36   :  { %1336 = vadd.xlane.f32.xlu1 %v1335_v35  ;;  %1339 = vadd.xlane.f32.xlu0 %v1338_v39 }
 0xa3a   :  { %1342 = vadd.xlane.f32.xlu1 %v1341_v8 }
 0xab7   :  { %v1322_v40 = vpop.xlane.xlu0 %1321 }
 0xab8   :  { %v1344_v19 = vmul.f32 0.03125, %v1322_v40 }
 0xaba   :  { %v1352_v12 = vadd.f32 1e-05, %v1344_v19 }
 0xabb   :  { %v1325_v30 = vpop.xlane.xlu1 %1324  ;;  %v1328_v42 = vpop.xlane.xlu0 %1327 }
 0xabc   :  { %1702 = vrsqrt.f32 %v1352_v12  ;;  %v1345_v44 = vmul.f32 0.03125, %v1325_v30  ;;  %v1346_v45 = vmul.f32 0.03125, %v1328_v42 }
 0xabe   :  { %v1353_v37 = vadd.f32 1e-05, %v1345_v44  ;;  %v1354_v21 = vadd.f32 1e-05, %v1346_v45 }
 0xabf   :  { %v1331_v57 = vpop.xlane.xlu1 %1330  ;;  %v1334_v58 = vpop.xlane.xlu0 %1333 }
 0xac0   :  { %1704 = vrsqrt.f32 %v1353_v37  ;;  %v1347_v60 = vmul.f32 0.03125, %v1331_v57  ;;  %v1348_v62 = vmul.f32 0.03125, %v1334_v58 }
 0xac1   :  { %1706 = vrsqrt.f32 %v1354_v21 }
 0xac2   :  { %v1355_v63 = vadd.f32 1e-05, %v1347_v60  ;;  %v1356_v0 = vadd.f32 1e-05, %v1348_v62 }
 0xac3   :  { %v1337_v1 = vpop.xlane.xlu1 %1336  ;;  %v1340_v2 = vpop.xlane.xlu0 %1339 }
 0xac4   :  { %1708 = vrsqrt.f32 %v1355_v63  ;;  %v1349_v3 = vmul.f32 0.03125, %v1337_v1  ;;  %v1350_v5 = vmul.f32 0.03125, %v1340_v2 }
 0xac5   :  { %1710 = vrsqrt.f32 %v1356_v0 }
 0xac6   :  { %v1703_v36 = vpop.eup %1702  ;;  %v1357_v47 = vadd.f32 1e-05, %v1349_v3  ;;  %v1358_v48 = vadd.f32 1e-05, %v1350_v5 }
 0xac7   :  { %v1368_v49 = vmul.f32 %v1703_v36, %v2281_v56  ;;  %v1343_v50 = vpop.xlane.xlu1 %1342 }
 0xac8   :  { %1712 = vrsqrt.f32 %v1357_v47  ;;  %v1351_v54 = vmul.f32 0.03125, %v1343_v50 }
 0xac9   :  { %v1383_v55 = vmul.f32 %v1494_v46, %v1368_v49  ;;  %1714 = vrsqrt.f32 %v1358_v48 }
 0xaca   :  { %v1705_v9 = vpop.eup %1704  ;;  %v1359_v10 = vadd.f32 1e-05, %v1351_v54 }
 0xacb   :  { %v1707_v14 = vpop.eup %1706  ;;  %v1398_v15 = vadd.f32 %v1495_v53, %v1383_v55  ;;  %v1369_v16 = vmul.f32 %v1705_v9, %v2289_v18 }
 0xacc   :  { %v1370_v17 = vmul.f32 %v1707_v14, %v2283_v7  ;;  %1716 = vrsqrt.f32 %v1359_v10 }
 0xacd   :  { %1406 = vst.msk [vmem:[%s2378_s17] sm:$0x3] %vm559_vm3, %v1398_v15  ;;  %v1384_v56 = vmul.f32 %v1494_v46, %v1369_v16 }
 0xace   :  { %v1709_v51 = vpop.eup %1708  ;;  %v1385_v23 = vmul.f32 %v1494_v46, %v1370_v17 }
 0xacf   :  { %v1711_v24 = vpop.eup %1710  ;;  %v1399_v25 = vadd.f32 %v1495_v53, %v1384_v56  ;;  %v1371_v41 = vmul.f32 %v1709_v51, %v2292_v20 }
 0xad0   :  { %v1400_v11 = vadd.f32 %v1495_v53, %v1385_v23  ;;  %v1372_v43 = vmul.f32 %v1711_v24, %v2299_v27 }
 0xad1   :  { %1407 = vst.msk [vmem:[%s2378_s17 + $0x2] sm:$0x3] %vm559_vm3, %v1399_v25  ;;  %v1386_v7 = vmul.f32 %v1494_v46, %v1371_v41 }
 0xad2   :  { %v1713_v18 = vpop.eup %1712  ;;  %1408 = vst.msk [vmem:[%s2378_s17 + $0x4] sm:$0x3] %vm559_vm3, %v1400_v11  ;;  %v1387_v26 = vmul.f32 %v1494_v46, %v1372_v43 }
 0xad3   :  { %v1715_v13 = vpop.eup %1714  ;;  %v1401_v29 = vadd.f32 %v1495_v53, %v1386_v7  ;;  %v1373_v20 = vmul.f32 %v1713_v18, %v2302_v28 }
 0xad4   :  { %v1402_v52 = vadd.f32 %v1495_v53, %v1387_v26  ;;  %v1374_v27 = vmul.f32 %v1715_v13, %v2309_v61 }
 0xad5   :  { %1409 = vst.msk [vmem:[%s2378_s17 + $0x6] sm:$0x3] %vm559_vm3, %v1401_v29  ;;  %v1388_v59 = vmul.f32 %v1494_v46, %v1373_v20 }
 0xad6   :  { %v1717_v31 = vpop.eup %1716  ;;  %1410 = vst.msk [vmem:[%s2378_s17 + $0x8] sm:$0x3] %vm559_vm3, %v1402_v52  ;;  %v1389_v32 = vmul.f32 %v1494_v46, %v1374_v27 }
 0xad7   :  { %v1403_v33 = vadd.f32 %v1495_v53, %v1388_v59  ;;  %v1375_v4 = vmul.f32 %v1717_v31, %v2312_v6 }
 0xad8   :  { %v1404_v28 = vadd.f32 %v1495_v53, %v1389_v32 }
 0xad9   :  { %1411 = vst.msk [vmem:[%s2378_s17 + $0xa] sm:$0x3] %vm559_vm3, %v1403_v33  ;;  %v1390_v61 = vmul.f32 %v1494_v46, %v1375_v4 }
 0xada   :  { %1412 = vst.msk [vmem:[%s2378_s17 + $0xc] sm:$0x3] %vm559_vm3, %v1404_v28 }
 0xadb   :  { %v1405_v34 = vadd.f32 %v1495_v53, %v1390_v61 }
 0xadd   :  { %1413 = vst.msk [vmem:[%s2378_s17 + $0xe] sm:$0x3] %vm559_vm3, %v1405_v34 }

// kernel: bigru_stymix_forward.4
= control target key start
LH: loop header
LB: loop body
LE: loop exit
PB: predicated region body
PF: predicated region fallthrough
CT: control target
= control target key end

     0   :  { %s2053_s0 = inlined_call_operand.vmem [shape: f32[8,2,32], index: 0, kind: input, shape index: {}]   ;;  %s2054_s1 = inlined_call_operand.vmem [shape: f32[8,2,1], index: 1, kind: input, shape index: {}]   ;;  %s2055_s2 = inlined_call_operand.vmem [shape: f32[32,32], index: 2, kind: input, shape index: {}]   ;;  %s2056_s3 = inlined_call_operand.vmem [shape: f32[1,32], index: 3, kind: input, shape index: {}]   ;;  %s2057_s4 = inlined_call_operand.vmem [shape: f32[1,32], index: 4, kind: input, shape index: {}]   ;;  %s2058_s5 = inlined_call_operand.vmem [shape: f32[1,32], index: 5, kind: input, shape index: {}]   ;;  %s2059_s6 = inlined_call_operand.<no memory space> [shape: f32[1,1], index: 6, kind: input, shape index: {}]   ;;  %s2060_s7 = inlined_call_operand.vmem [shape: f32[32,12], index: 7, kind: input, shape index: {}]   ;;  %s2061_s8 = inlined_call_operand.vmem [shape: f32[1,2], index: 8, kind: input, shape index: {}]   ;;  %s2062_s9 = inlined_call_operand.vmem [shape: f32[1,2], index: 9, kind: input, shape index: {}]   ;;  %s2063_s10 = inlined_call_operand.vmem [shape: f32[8,2,32], index: 10, kind: output, shape index: {0}]   ;;  %s2064_s11 = inlined_call_operand.vmem [shape: f32[8,2,32], index: 11, kind: output, shape index: {1}]   ;;  %s2065_s12 = inlined_call_operand.hbm [shape: f32[2,8], index: 12, kind: output, shape index: {2}]   ;;  %s2066_s13 = inlined_call_operand.hbm [shape: f32[2,8], index: 13, kind: output, shape index: {3}]   ;;  %s2067_s14 = inlined_call_operand.hbm [shape: f32[2,2], index: 14, kind: output, shape index: {4}]   ;;  %s2068_s15 = inlined_call_operand.hbm [shape: f32[2,2], index: 15, kind: output, shape index: {5}]  }
   0x1   :  { %v21_v0 = vstv %s2059_s6 }
   0x2   :  { %22 = vst [vmem:[#allocation2] sm:$0x1] %v21_v0 }
   0x3   :  { %23 = vsyncpa [#allocation4], 0 }
   0x4   :  { %24 = vsyncpa [#allocation6], 0  ;;  %v1440_v1 = vld [vmem:[%s2054_s1 + $0x4] sm:$0x3]  ;;  %v1445_v2 = vld [vmem:[%s2054_s1] sm:$0x3] }
   0x5   :  { %v1341_v3 = vmov 0   ;;  %v1452_v4 = vld [vmem:[%s2054_s1 + $0x6] sm:$0x3]  ;;  %v1457_v5 = vld [vmem:[%s2054_s1 + $0x2] sm:$0x3] }
   0x6   :  { %1194 = vset.pattern.permute.xlu1 %v1341_v3  ;;  %1193 = vset.pattern.permute.xlu0 %v1341_v3 }
   0x7   :  { %74 = vperm.xlu1 %1194, %v1440_v1   ;;  %64 = vperm.xlu0 %1193, %v1445_v2  }
   0x8   :  { %25 = vsyncpa [#allocation9], 0  ;;  %v1464_v6 = vld [vmem:[%s2054_s1 + $0xa] sm:$0x3]  ;;  %v1469_v7 = vld [vmem:[%s2054_s1 + $0x8] sm:$0x3]  ;;  %v134_v18 = vlaneseq }
   0x9   :  { %v1476_v8 = vld [vmem:[%s2054_s1 + $0xe] sm:$0x3]  ;;  %v1481_v9 = vld [vmem:[%s2054_s1 + $0xc] sm:$0x3]  ;;  %v110_v10 = vld [vmem:[%s2055_s2] sm:$0xff]  ;;  %vm163_vm0 = vcmask 261120  }
   0xa   :  { %v111_v11 = vld [vmem:[%s2055_s2 + $0x8] sm:$0xff]  ;;  %v112_v13 = vld [vmem:[%s2055_s2 + $0x10] sm:$0xff]  ;;  %v113_v14 = vld [vmem:[%s2055_s2 + $0x18] sm:$0xff]  ;;  %v1342_v16 = vmov 1983009808   ;;  %v135_v22 = vshrl.u32 %v134_v18, 7 }
   0xb   :  { %79 = vperm.xlu1 %1194, %v1452_v4   ;;  %69 = vperm.xlu0 %1193, %v1457_v5   ;;  %v1160_v12 = vpack.c.bf16 %v111_v11, %v110_v10  ;;  %v1164_v15 = vpack.c.bf16 %v113_v14, %v112_v13  ;;  %v132_v17 = vunpack.c.l.s4 %v1342_v16  ;;  %v56_v23 = vld [vmem:[%s2053_s0 + $0x4] sm:$0x3]  ;;  %v54_v24 = vld [vmem:[%s2053_s0] sm:$0x3]  ;;  %v57_v25 = vld [vmem:[%s2053_s0 + $0x6] sm:$0x3] }
   0xc   :  { %v55_v26 = vld [vmem:[%s2053_s0 + $0x2] sm:$0x3]  ;;  %v59_v34 = vld [vmem:[%s2053_s0 + $0xa] sm:$0x3]  ;;  %v58_v35 = vld [vmem:[%s2053_s0 + $0x8] sm:$0x3] }
   0xd   :  { %1161 = vmatprep.subr.bf16.mxu0 %v1160_v12  ;;  %v133_v21 = vunpack.c.0.s8 %v132_v17  ;;  %v61_v44 = vld [vmem:[%s2053_s0 + $0xe] sm:$0x3]  ;;  %v60_v45 = vld [vmem:[%s2053_s0 + $0xc] sm:$0x3]  ;;  %v1097_v56 = vld [vmem:[%s2056_s3] ss:$0 sm:$0xff] }
   0xe   :  { %1163 = vmatpush3.bf16.msra.mxu0 %v1160_v12  ;;  %vm323_vm1 = vcmask 254976   ;;  %v1574_v16 = vld [vmem:[%s2057_s4] ss:$0 sm:$0xff]  ;;  %vm473_vm9 = vcmask 1024   ;;  %s1346_s25 = smov 8   ;;  %s1347_s26 = smov 10  }
   0xf   :  { %89 = vperm.xlu1 %1194, %v1464_v6   ;;  %84 = vperm.xlu0 %1193, %v1469_v7   ;;  %v136_v29 = vsub.s32 %v133_v21, %v135_v22 }
  0x10   :  { %1165 = vmatprep.subr.bf16.mxu0 %v1164_v15 }
  0x12   :  { %1167 = vmatpush3.bf16.msra.mxu0 %v1164_v15 }
  0x13   :  { %99 = vperm.xlu1 %1194, %v1476_v8   ;;  %94 = vperm.xlu0 %1193, %v1481_v9  }
  0x86   :  { %v1497_v19 = vpop.permute.xlu1 %74  ;;  %v1499_v20 = vpop.permute.xlu0 %64 }
  0x87   :  { %v1518_v30 = vmul.f32 %v1497_v19, %v56_v23  ;;  %v1521_v31 = vmul.f32 %v1499_v20, %v54_v24 }
  0x8a   :  { %v1513_v27 = vpop.permute.xlu1 %79  ;;  %v1515_v28 = vpop.permute.xlu0 %69 }
  0x8b   :  { %v1524_v32 = vmul.f32 %v1513_v27, %v57_v25  ;;  %v1527_v33 = vmul.f32 %v1515_v28, %v55_v26 }
  0x8d   :  { %v129_v36 = vcombine.low %v1521_v31, %v1527_v33  ;;  %v130_v37 = vcombine.low %v1518_v30, %v1524_v32 }
  0x8e   :  { %v1539_v38 = vpop.permute.xlu1 %89  ;;  %v1541_v39 = vpop.permute.xlu0 %84 }
  0x8f   :  { %v1544_v40 = vmul.f32 %v1539_v38, %v59_v34  ;;  %v106_v41 = vmul.f32 %v1541_v39, %v58_v35  ;;  %v137_v42 = vrot.slane %v129_v36, %v136_v29  ;;  %v144_v43 = vrot.slane %v130_v37, %v136_v29 }
  0x91   :  { %v145_v46 = vcombine.low %v137_v42, %v144_v43  ;;  %v146_v49 = vcombine.low %v106_v41, %v1544_v40 }
  0x92   :  { %v1553_v47 = vpop.permute.xlu1 %99  ;;  %v1555_v48 = vpop.permute.xlu0 %94 }
  0x93   :  { %v1559_v50 = vmul.f32 %v1553_v47, %v61_v44  ;;  %v1562_v51 = vmul.f32 %v1555_v48, %v60_v45  ;;  %1135 = vmatprep.mubr.msk.f32.mxu0 %vm163_vm0, %v145_v46  ;;  %v154_v53 = vrot.slane %v146_v49, %v136_v29 }
  0x95   :  { %v147_v52 = vcombine.low %v1562_v51, %v1559_v50 }
  0x97   :  { %v161_v54 = vrot.slane %v147_v52, %v136_v29 }
  0x99   :  { %v162_v55 = vcombine.low %v154_v53, %v161_v54 }
  0x9b   :  { %1136 = vmatmul.mubr.msk.f32.vlgmr.msra.gmra.mrb[0].mxu0 %vm163_vm0, %v162_v55 }
 0x16e   :  { %v1137_v57 = vpop.f32.mrb[0].mxu0 }
 0x16f   :  { %v240_v58 = vadd.f32 %v1137_v57, %v1097_v56  ;;  %v234_v59 = vpop.f32.mrb[1].mxu0  ;;  %v1659_v57 = vld [vmem:[%s2058_s5] ss:$0 sm:$0xff] }
 0x170   :  { %v235_v60 = vadd.f32 %v1097_v56, %v234_v59 }
 0x171   :  { %v1101_v61 = vmul.f32 -1.442695, %v240_v58 }
 0x172   :  { %v1100_v62 = vmul.f32 -1.442695, %v235_v60 }
 0x173   :  { %1195 = vpow2.f32 %v1101_v61 }
 0x174   :  { %1197 = vpow2.f32 %v1100_v62 }
 0x17d   :  { %v1196_v63 = vpop.eup %1195 }
 0x17e   :  { %v1198_v0 = vpop.eup %1197  ;;  %v250_v3 = vadd.f32 1.0, %v1196_v63 }
 0x17f   :  { %v249_v10 = vadd.f32 1.0, %v1198_v0 }
 0x180   :  { %1199 = vrcp.f32 %v250_v3 }
 0x181   :  { %1201 = vrcp.f32 %v249_v10 }
 0x18a   :  { %v1200_v11 = vpop.eup %1199 }
 0x18b   :  { %v1202_v12 = vpop.eup %1201  ;;  %v281_v13 = vrot.slane %v1200_v11, %v136_v29  ;;  %v274_v14 = vcombine.high %v1200_v11, %v1200_v11 }
 0x18c   :  { %v264_v15 = vrot.slane %v1202_v12, %v136_v29  ;;  %v257_v17 = vcombine.high %v1202_v12, %v1202_v12 }
 0x18d   :  { %v1576_v18 = vmul.f32 %v281_v13, %v106_v41  ;;  %v288_v21 = vrot.slane %v274_v14, %v136_v29  ;;  %v289_v22 = vcombine.high %v281_v13, %v281_v13  ;;  %v311_v23 = vsub.f32 1.0, %v281_v13 }
 0x18e   :  { %v1579_v24 = vmul.f32 %v264_v15, %v1521_v31  ;;  %v307_v25 = vsub.f32 1.0, %v264_v15  ;;  %v271_v26 = vrot.slane %v257_v17, %v136_v29  ;;  %v272_v34 = vcombine.high %v264_v15, %v264_v15 }
 0x18f   :  { %v361_v35 = vmul.f32 %v1574_v16, %v1576_v18  ;;  %328 = vst.msk [vmem:[%s2064_s11 + $0x8] sm:$0x3] %vm323_vm1, %v1576_v18  ;;  %v1589_v36 = vmul.f32 %v288_v21, %v1562_v51  ;;  %v1592_v37 = vmul.f32 %v289_v22, %v1544_v40  ;;  %v1594_v42 = vmul.f32 %v311_v23, %v106_v41 }
 0x190   :  { %v1597_v29 = vmul.f32 %v307_v25, %v1521_v31  ;;  %324 = vst.msk [vmem:[%s2064_s11] sm:$0x3] %vm323_vm1, %v1579_v24  ;;  %v357_v43 = vmul.f32 %v1574_v16, %v1579_v24  ;;  %v1607_v44 = vmul.f32 %v271_v26, %v1518_v30  ;;  %v1610_v45 = vmul.f32 %v272_v34, %v1527_v33 }
 0x191   :  { %v377_v41 = vsel %vm323_vm1, %v361_v35, 0.0  ;;  %v363_v31 = vmul.f32 %v1574_v16, %v1589_v36  ;;  %330 = vst.msk [vmem:[%s2064_s11 + $0xc] sm:$0x3] %vm323_vm1, %v1589_v36  ;;  %329 = vst.msk [vmem:[%s2064_s11 + $0xa] sm:$0x3] %vm323_vm1, %v1592_v37  ;;  %v362_v49 = vmul.f32 %v1574_v16, %v1592_v37  ;;  %v612_v53 = vmul.f32 %v1574_v16, %v1594_v42 }
 0x192   :  { %336 = vst.msk [vmem:[%s2063_s10 + $0x8] sm:$0x3] %vm323_vm1, %v1594_v42  ;;  %332 = vst.msk [vmem:[%s2063_s10] sm:$0x3] %vm323_vm1, %v1597_v29  ;;  %378 = vadd.xlane.f32.xlu1 %v377_v41  ;;  %v365_v46 = vsel %vm323_vm1, %v357_v43, 0.0  ;;  %v359_v54 = vmul.f32 %v1574_v16, %v1607_v44  ;;  %v344_v56 = vmul.f32 %v1579_v24, %v1515_v28  ;;  %v312_v10 = vsub.f32 1.0, %v289_v22 }
 0x193   :  { %326 = vst.msk [vmem:[%s2064_s11 + $0x4] sm:$0x3] %vm323_vm1, %v1607_v44  ;;  %325 = vst.msk [vmem:[%s2064_s11 + $0x2] sm:$0x3] %vm323_vm1, %v1610_v45  ;;  %366 = vadd.xlane.f32.xlu0 %v365_v46  ;;  %v383_v52 = vsel %vm323_vm1, %v363_v31, 0.0  ;;  %v380_v55 = vsel %vm323_vm1, %v362_v49, 0.0  ;;  %v358_v58 = vmul.f32 %v1574_v16, %v1610_v45  ;;  %v343_v59 = vmul.f32 %v1579_v24, %v1499_v20 }
 0x194   :  { %v290_v60 = vcombine.high %v288_v21, %v288_v21  ;;  %v628_v61 = vsel %vm323_vm1, %v612_v53, 0.0  ;;  %v371_v62 = vsel %vm323_vm1, %v359_v54, 0.0  ;;  %v396_v63 = vmul.f32 %v1659_v57, %v344_v56 }
 0x195   :  { %v346_v0 = vmul.f32 %v1579_v24, %v1513_v27  ;;  %v313_v11 = vsub.f32 1.0, %v288_v21  ;;  %v273_v12 = vcombine.high %v271_v26, %v271_v26  ;;  %v309_v13 = vsub.f32 1.0, %v271_v26 }
 0x196   :  { %384 = vadd.xlane.f32.xlu1 %v383_v52  ;;  %v1671_v3 = vmul.f32 %v290_v60, %v1559_v50  ;;  %v368_v14 = vsel %vm323_vm1, %v358_v58, 0.0  ;;  %v395_v15 = vmul.f32 %v1659_v57, %v343_v59  ;;  %v1681_v17 = vmul.f32 %v312_v10, %v1544_v40 }
 0x197   :  { %381 = vadd.xlane.f32.xlu0 %v380_v55  ;;  %v308_v23 = vsub.f32 1.0, %v272_v34  ;;  %v345_v22 = vmul.f32 %v1579_v24, %v1497_v19  ;;  %v1686_v21 = vmul.f32 %v313_v11, %v1562_v51  ;;  %v1689_v25 = vmul.f32 %v273_v12, %v1524_v32 }
 0x198   :  { %331 = vst.msk [vmem:[%s2064_s11 + $0xe] sm:$0x3] %vm323_vm1, %v1671_v3  ;;  %v1692_v26 = vmul.f32 %v309_v13, %v1518_v30  ;;  %v406_v35 = vsel %vm323_vm1, %v396_v63, 0.0  ;;  %v398_v43 = vmul.f32 %v1659_v57, %v346_v0  ;;  %v348_v40 = vmul.f32 %v1579_v24, %v1539_v38  ;;  %337 = vst.msk [vmem:[%s2063_s10 + $0xa] sm:$0x3] %vm323_vm1, %v1681_v17 }
 0x199   :  { %v1704_v51 = vmul.f32 %v308_v23, %v1527_v33  ;;  %338 = vst.msk [vmem:[%s2063_s10 + $0xc] sm:$0x3] %vm323_vm1, %v1686_v21  ;;  %327 = vst.msk [vmem:[%s2064_s11 + $0x6] sm:$0x3] %vm323_vm1, %v1689_v25  ;;  %v403_v30 = vsel %vm323_vm1, %v395_v15, 0.0  ;;  %v397_v33 = vmul.f32 %v1659_v57, %v345_v22  ;;  %v347_v34 = vmul.f32 %v1579_v24, %v1541_v39 }
 0x19a   :  { %629 = vadd.xlane.f32.xlu1 %v628_v61  ;;  %334 = vst.msk [vmem:[%s2063_s10 + $0x4] sm:$0x3] %vm323_vm1, %v1692_v26  ;;  %v412_v41 = vsel %vm323_vm1, %v398_v43, 0.0  ;;  %v400_v31 = vmul.f32 %v1659_v57, %v348_v40  ;;  %v350_v46 = vmul.f32 %v1579_v24, %v1553_v47  ;;  %v314_v49 = vsub.f32 1.0, %v290_v60 }
 0x19b   :  { %372 = vadd.xlane.f32.xlu0 %v371_v62  ;;  %333 = vst.msk [vmem:[%s2063_s10 + $0x2] sm:$0x3] %vm323_vm1, %v1704_v51  ;;  %v310_v52 = vsub.f32 1.0, %v273_v12  ;;  %v349_v53 = vmul.f32 %v1579_v24, %v1555_v48  ;;  %v409_v54 = vsel %vm323_vm1, %v397_v33, 0.0  ;;  %v399_v55 = vmul.f32 %v1659_v57, %v347_v34 }
 0x19c   :  { %v1739_v56 = vmul.f32 %v314_v49, %v1559_v50  ;;  %v418_v59 = vsel %vm323_vm1, %v400_v31, 0.0  ;;  %v402_v61 = vmul.f32 %v1659_v57, %v350_v46  ;;  %v364_v62 = vmul.f32 %v1574_v16, %v1671_v3 }
 0x19d   :  { %v1742_v58 = vmul.f32 %v310_v52, %v1524_v32  ;;  %v415_v32 = vsel %vm323_vm1, %v399_v55, 0.0  ;;  %v401_v50 = vmul.f32 %v1659_v57, %v349_v53  ;;  %v608_v0 = vmul.f32 %v1574_v16, %v1597_v29 }
 0x19e   :  { %369 = vadd.xlane.f32.xlu1 %v368_v14  ;;  %2070 = vst [vmem:[#allocation13_spill] sm:$0xff] %v1739_v56  ;;  %339 = vst.msk [vmem:[%s2063_s10 + $0xe] sm:$0x3] %vm323_vm1, %v1739_v56  ;;  %v424_v60 = vsel %vm323_vm1, %v402_v61, 0.0  ;;  %v386_v10 = vsel %vm323_vm1, %v364_v62, 0.0  ;;  %v613_v11 = vmul.f32 %v1574_v16, %v1681_v17  ;;  %v614_v13 = vmul.f32 %v1574_v16, %v1686_v21 }
 0x19f   :  { %407 = vadd.xlane.f32.xlu0 %v406_v35  ;;  %335 = vst.msk [vmem:[%s2063_s10 + $0x6] sm:$0x3] %vm323_vm1, %v1742_v58  ;;  %v421_v63 = vsel %vm323_vm1, %v401_v50, 0.0  ;;  %v616_v12 = vsel %vm323_vm1, %v608_v0, 0.0  ;;  %v360_v15 = vmul.f32 %v1574_v16, %v1689_v25  ;;  %v610_v22 = vmul.f32 %v1574_v16, %v1692_v26 }
 0x1a0   :  { %v631_v14 = vsel %vm323_vm1, %v613_v11, 0.0  ;;  %v634_v23 = vsel %vm323_vm1, %v614_v13, 0.0  ;;  %v600_v35 = vmul.f32 %v1597_v29, %v1499_v20  ;;  %v609_v40 = vmul.f32 %v1574_v16, %v1704_v51 }
 0x1a1   :  { %v374_v43 = vsel %vm323_vm1, %v360_v15, 0.0  ;;  %v622_v33 = vsel %vm323_vm1, %v610_v22, 0.0  ;;  %v603_v46 = vmul.f32 %v1597_v29, %v1513_v27  ;;  %v604_v52 = vmul.f32 %v1597_v29, %v1541_v39 }
 0x1a2   :  { %404 = vadd.xlane.f32.xlu1 %v403_v30  ;;  %v601_v30 = vmul.f32 %v1597_v29, %v1515_v28  ;;  %v640_v34 = vmul.f32 %v1659_v57, %v600_v35  ;;  %v619_v20 = vsel %vm323_vm1, %v609_v40, 0.0  ;;  %v607_v0 = vmul.f32 %v1597_v29, %v1553_v47 }
 0x1a3   :  { %413 = vadd.xlane.f32.xlu0 %v412_v41  ;;  %v602_v41 = vmul.f32 %v1597_v29, %v1497_v19  ;;  %v643_v19 = vmul.f32 %v1659_v57, %v603_v46  ;;  %v644_v27 = vmul.f32 %v1659_v57, %v604_v52  ;;  %v1821_v46 = vld [vmem:[#allocation2] ss:$0 sm:$0xff] }
 0x1a4   :  { %v641_v31 = vmul.f32 %v1659_v57, %v601_v30  ;;  %v648_v49 = vsel %vm323_vm1, %v640_v34, 0.0  ;;  %v647_v11 = vmul.f32 %v1659_v57, %v607_v0 }
 0x1a5   :  { %v642_v28 = vmul.f32 %v1659_v57, %v602_v41  ;;  %v657_v61 = vsel %vm323_vm1, %v643_v19, 0.0 }
 0x1a6   :  { %410 = vadd.xlane.f32.xlu1 %v409_v54  ;;  %v651_v53 = vsel %vm323_vm1, %v641_v31, 0.0  ;;  %v605_v54 = vmul.f32 %v1597_v29, %v1539_v38 }
 0x1a7   :  { %419 = vadd.xlane.f32.xlu0 %v418_v59  ;;  %v654_v55 = vsel %vm323_vm1, %v642_v28, 0.0  ;;  %v606_v59 = vmul.f32 %v1597_v29, %v1555_v48 }
 0x1a8   :  { %v645_v39 = vmul.f32 %v1659_v57, %v605_v54 }
 0x1a9   :  { %v646_v50 = vmul.f32 %v1659_v57, %v606_v59 }
 0x1aa   :  { %416 = vadd.xlane.f32.xlu1 %v415_v32  ;;  %v660_v32 = vsel %vm323_vm1, %v644_v27, 0.0  ;;  %v663_v38 = vsel %vm323_vm1, %v645_v39, 0.0 }
 0x1ab   :  { %425 = vadd.xlane.f32.xlu0 %v424_v60  ;;  %v615_v60 = vmul.f32 %v1574_v16, %v1739_v56  ;;  %v666_v62 = vsel %vm323_vm1, %v646_v50, 0.0 }
 0x1ad   :  { %v637_v48 = vsel %vm323_vm1, %v615_v60, 0.0 }
 0x1ae   :  { %422 = vadd.xlane.f32.xlu1 %v421_v63  ;;  %v611_v63 = vmul.f32 %v1574_v16, %v1742_v58 }
 0x1af   :  { %387 = vadd.xlane.f32.xlu0 %v386_v10 }
 0x1b0   :  { %v625_v10 = vsel %vm323_vm1, %v611_v63, 0.0 }
 0x1b2   :  { %617 = vadd.xlane.f32.xlu1 %v616_v12  ;;  %v669_v12 = vsel %vm323_vm1, %v647_v11, 0.0 }
 0x1b3   :  { %632 = vadd.xlane.f32.xlu0 %v631_v14 }
 0x1b6   :  { %635 = vadd.xlane.f32.xlu1 %v634_v23 }
 0x1b7   :  { %375 = vadd.xlane.f32.xlu0 %v374_v43 }
 0x1ba   :  { %623 = vadd.xlane.f32.xlu1 %v622_v33 }
 0x1bb   :  { %620 = vadd.xlane.f32.xlu0 %v619_v20 }
 0x1be   :  { %649 = vadd.xlane.f32.xlu1 %v648_v49 }
 0x1bf   :  { %652 = vadd.xlane.f32.xlu0 %v651_v53 }
 0x1c2   :  { %655 = vadd.xlane.f32.xlu1 %v654_v55 }
 0x1c3   :  { %658 = vadd.xlane.f32.xlu0 %v657_v61 }
 0x1c6   :  { %661 = vadd.xlane.f32.xlu1 %v660_v32 }
 0x1c7   :  { %664 = vadd.xlane.f32.xlu0 %v663_v38 }
 0x1ca   :  { %667 = vadd.xlane.f32.xlu1 %v666_v62 }
 0x1cb   :  { %638 = vadd.xlane.f32.xlu0 %v637_v48 }
 0x1cf   :  { %626 = vadd.xlane.f32.xlu0 %v625_v10 }
 0x1d3   :  { %670 = vadd.xlane.f32.xlu0 %v669_v12 }
 0x21f   :  { %v379_v13 = vpop.xlane.xlu1 %378 }
 0x220   :  { %v367_v14 = vpop.xlane.xlu0 %366 }
 0x223   :  { %v385_v15 = vpop.xlane.xlu1 %384 }
 0x224   :  { %v382_v23 = vpop.xlane.xlu0 %381 }
 0x227   :  { %v1819_v22 = vpop.xlane.xlu1 %629 }
 0x228   :  { %v373_v35 = vpop.xlane.xlu0 %372 }
 0x22b   :  { %v370_v16 = vpop.xlane.xlu1 %369 }
 0x22c   :  { %v408_v43 = vpop.xlane.xlu0 %407 }
 0x22d   :  { %v428_v49 = vadd.f32 %v408_v43, %v370_v16 }
 0x22f   :  { %v405_v40 = vpop.xlane.xlu1 %404  ;;  %v442_v61 = vadd.f32 %v1821_v46, %v428_v49 }
 0x230   :  { %v414_v47 = vpop.xlane.xlu0 %413  ;;  %v427_v20 = vadd.f32 %v405_v40, %v367_v14 }
 0x231   :  { %v450_v10 = vmul.f32 %v442_v61, %v1457_v5 }
 0x232   :  { %v441_v55 = vadd.f32 %v1821_v46, %v427_v20 }
 0x233   :  { %v411_v30 = vpop.xlane.xlu1 %410  ;;  %vm458_vm6 = vcmp.eq.f32.partialorder %v450_v10, 0.0 }
 0x234   :  { %v420_v33 = vpop.xlane.xlu0 %419  ;;  %v429_v28 = vadd.f32 %v411_v30, %v373_v35  ;;  %v449_v48 = vmul.f32 %v441_v55, %v1445_v2 }
 0x235   :  { %v432_v31 = vadd.f32 %v420_v33, %v382_v23 }
 0x236   :  { %v443_v32 = vadd.f32 %v1821_v46, %v429_v28  ;;  %vm457_vm3 = vcmp.eq.f32.partialorder %v449_v48, 0.0 }
 0x237   :  { %v417_v34 = vpop.xlane.xlu1 %416  ;;  %v446_v27 = vadd.f32 %v1821_v46, %v432_v31  ;;  %v465_v43 = vsel %vm457_vm3, -inf, %v449_v48 }
 0x238   :  { %v431_v41 = vadd.f32 %v417_v34, %v379_v13  ;;  %v426_v57 = vpop.xlane.xlu0 %425  ;;  %v451_v11 = vmul.f32 %v443_v32, %v1440_v1  ;;  %v466_v34 = vsel %vm458_vm6, -inf, %v450_v10  ;;  %v474_v31 = vsel %vm473_vm9, %v465_v43, -inf }
 0x239   :  { %v454_v63 = vmul.f32 %v446_v27, %v1464_v6  ;;  %vm994_vm6 = vcmask 58368  }
 0x23a   :  { %v445_v52 = vadd.f32 %v1821_v46, %v431_v41  ;;  %vm459_vm7 = vcmp.eq.f32.partialorder %v451_v11, 0.0 }
 0x23b   :  { %v423_v53 = vpop.xlane.xlu1 %422  ;;  %vm462_vm4 = vcmp.eq.f32.partialorder %v454_v63, 0.0 }
 0x23c   :  { %v433_v19 = vadd.f32 %v423_v53, %v385_v15  ;;  %v388_v54 = vpop.xlane.xlu0 %387  ;;  %v453_v50 = vmul.f32 %v445_v52, %v1469_v7  ;;  %v1842_v40 = vsel %vm462_vm4, -inf, %v454_v63  ;;  %v475_v53 = vsel %vm473_vm9, %v466_v34, -inf }
 0x23d   :  { %v434_v59 = vadd.f32 %v426_v57, %v388_v54  ;;  %v467_v57 = vsel %vm459_vm7, -inf, %v451_v11  ;;  %v480_v49 = vsel %vm473_vm9, %v1842_v40, -inf }
 0x23e   :  { %v447_v39 = vadd.f32 %v1821_v46, %v433_v19  ;;  %vm461_vm2 = vcmp.eq.f32.partialorder %v453_v50, 0.0  ;;  %v476_v27 = vsel %vm473_vm9, %v467_v57, -inf  ;;  %v481_v32 = vmax.f32 %v475_v53, %v480_v49 }
 0x23f   :  { %v448_v38 = vadd.f32 %v1821_v46, %v434_v59  ;;  %v618_v60 = vpop.xlane.xlu1 %617  ;;  %v1839_v23 = vsel %vm461_vm2, -inf, %v453_v50 }
 0x240   :  { %v1831_v62 = vpop.xlane.xlu0 %632  ;;  %v455_v0 = vmul.f32 %v447_v39, %v1481_v9  ;;  %v478_v41 = vsel %vm473_vm9, %v1839_v23, -inf }
 0x241   :  { %v456_v12 = vmul.f32 %v448_v38, %v1476_v8  ;;  %v479_v19 = vmax.f32 %v474_v31, %v478_v41 }
 0x242   :  { %vm463_vm5 = vcmp.eq.f32.partialorder %v455_v0, 0.0 }
 0x243   :  { %v636_v13 = vpop.xlane.xlu1 %635  ;;  %vm464_vm8 = vcmp.eq.f32.partialorder %v456_v12, 0.0  ;;  %v1844_v30 = vsel %vm463_vm5, -inf, %v455_v0  ;;  %v486_v63 = vmax.f32 %v479_v19, %v481_v32  ;;  %vm1344_vm5 = vmmov 0  }
 0x244   :  { %v376_v14 = vpop.xlane.xlu0 %375  ;;  %v1849_v20 = vsel %vm464_vm8, -inf, %v456_v12  ;;  %v482_v28 = vsel %vm473_vm9, %v1844_v30, -inf }
 0x245   :  { %v430_v15 = vadd.f32 %v414_v47, %v376_v14  ;;  %v484_v59 = vsel %vm473_vm9, %v1849_v20, -inf  ;;  %v483_v50 = vmax.f32 %v476_v27, %v482_v28 }
 0x247   :  { %v444_v35 = vadd.f32 %v1821_v46, %v430_v15  ;;  %v624_v16 = vpop.xlane.xlu1 %623 }
 0x248   :  { %v621_v33 = vpop.xlane.xlu0 %620 }
 0x249   :  { %v452_v47 = vmul.f32 %v444_v35, %v1452_v4 }
 0x24b   :  { %vm460_vm10 = vcmp.eq.f32.partialorder %v452_v47, 0.0  ;;  %v650_v52 = vpop.xlane.xlu1 %649 }
 0x24c   :  { %v468_v54 = vsel %vm460_vm10, -inf, %v452_v47  ;;  %v653_v55 = vpop.xlane.xlu0 %652  ;;  %v672_v39 = vadd.f32 %v650_v52, %v618_v60 }
 0x24d   :  { %v477_v61 = vsel %vm473_vm9, %v468_v54, -inf  ;;  %v673_v10 = vadd.f32 %v653_v55, %v621_v33 }
 0x24e   :  { %v485_v38 = vmax.f32 %v477_v61, %v484_v59  ;;  %v680_v12 = vadd.f32 %v1821_v46, %v672_v39 }
 0x24f   :  { %v656_v48 = vpop.xlane.xlu1 %655  ;;  %v681_v35 = vadd.f32 %v1821_v46, %v673_v10 }
 0x250   :  { %v487_v0 = vmax.f32 %v483_v50, %v485_v38  ;;  %v659_v11 = vpop.xlane.xlu0 %658  ;;  %v688_v47 = vmul.f32 %v680_v12, %v1445_v2  ;;  %v674_v31 = vadd.f32 %v656_v48, %v624_v16 }
 0x251   :  { %v689_v28 = vmul.f32 %v681_v35, %v1457_v5 }
 0x252   :  { %v488_v14 = vmax.f32 %v486_v63, %v487_v0  ;;  %vm696_vm11 = vcmp.eq.f32.partialorder %v688_v47, 0.0  ;;  %v682_v19 = vadd.f32 %v1821_v46, %v674_v31 }
 0x253   :  { %v662_v15 = vpop.xlane.xlu1 %661  ;;  %vm697_vm12 = vcmp.eq.f32.partialorder %v689_v28, 0.0 }
 0x254   :  { %v665_v41 = vpop.xlane.xlu0 %664  ;;  %v492_v56 = vsub.f32 %v468_v54, %v488_v14  ;;  %v676_v60 = vadd.f32 %v662_v15, %v1819_v22  ;;  %v489_v27 = vsub.f32 %v465_v43, %v488_v14  ;;  %v493_v59 = vsub.f32 %v1839_v23, %v488_v14 }
 0x255   :  { %v677_v33 = vadd.f32 %v665_v41, %v1831_v62  ;;  %v490_v54 = vsub.f32 %v466_v34, %v488_v14  ;;  %v491_v61 = vsub.f32 %v467_v57, %v488_v14  ;;  %v494_v62 = vsub.f32 %v1842_v40, %v488_v14 }
 0x256   :  { %v684_v52 = vadd.f32 %v1821_v46, %v676_v60  ;;  %v503_v2 = vmul.f32 1.442695, %v492_v56  ;;  %v497_v39 = vmul.f32 1.442695, %v489_v27  ;;  %v690_v43 = vmul.f32 %v682_v19, %v1440_v1 }
 0x257   :  { %v668_v49 = vpop.xlane.xlu1 %667  ;;  %v685_v16 = vadd.f32 %v1821_v46, %v677_v33  ;;  %v495_v34 = vsub.f32 %v1844_v30, %v488_v14  ;;  %v501_v38 = vmul.f32 1.442695, %v491_v61  ;;  %v507_v57 = vmul.f32 1.442695, %v494_v62 }
 0x258   :  { %v639_v53 = vpop.xlane.xlu0 %638  ;;  %v678_v55 = vadd.f32 %v668_v49, %v636_v13  ;;  %v692_v22 = vmul.f32 %v684_v52, %v1469_v7  ;;  %v499_v13 = vmul.f32 1.442695, %v490_v54  ;;  %1203 = vpow2.f32 %v497_v39 }
 0x259   :  { %v693_v32 = vmul.f32 %v685_v16, %v1464_v6  ;;  %v505_v7 = vmul.f32 1.442695, %v493_v59  ;;  %v496_v6 = vsub.f32 %v1849_v20, %v488_v14  ;;  %vm698_vm15 = vcmp.eq.f32.partialorder %v690_v43, 0.0 }
 0x25a   :  { %v686_v5 = vadd.f32 %v1821_v46, %v678_v55  ;;  %1205 = vpow2.f32 %v499_v13  ;;  %vm700_vm13 = vcmp.eq.f32.partialorder %v692_v22, 0.0  ;;  %v704_v30 = vsel %vm696_vm11, -inf, %v688_v47 }
 0x25b   :  { %1207 = vpow2.f32 %v503_v2  ;;  %vm701_vm14 = vcmp.eq.f32.partialorder %v693_v32, 0.0  ;;  %v705_v63 = vsel %vm697_vm12, -inf, %v689_v28  ;;  %v1883_v0 = vsel %vm700_vm13, -inf, %v692_v22 }
 0x25c   :  { %v627_v50 = vpop.xlane.xlu0 %626  ;;  %v694_v56 = vmul.f32 %v686_v5, %v1481_v9  ;;  %1209 = vpow2.f32 %v501_v38  ;;  %v1885_v10 = vsel %vm701_vm14, -inf, %v693_v32  ;;  %v511_v12 = vmul.f32 1.442695, %v496_v6 }
 0x25d   :  { %v675_v23 = vadd.f32 %v659_v11, %v627_v50  ;;  %v509_v11 = vmul.f32 1.442695, %v495_v34  ;;  %1211 = vpow2.f32 %v505_v7  ;;  %v706_v14 = vsel %vm698_vm15, -inf, %v690_v43 }
 0x25e   :  { %vm702_vm2 = vcmp.eq.f32.partialorder %v694_v56, 0.0  ;;  %1213 = vpow2.f32 %v507_v57  ;;  %v718_v35 = vsel %vm473_vm9, %v1885_v10, -inf  ;;  %v712_v47 = vsel %vm473_vm9, %v704_v30, -inf }
 0x25f   :  { %v683_v40 = vadd.f32 %v1821_v46, %v675_v23  ;;  %v1888_v15 = vsel %vm702_vm2, -inf, %v694_v56  ;;  %v713_v31 = vsel %vm473_vm9, %v705_v63, -inf  ;;  %1215 = vpow2.f32 %v509_v11 }
 0x260   :  { %v671_v48 = vpop.xlane.xlu0 %670  ;;  %v714_v49 = vsel %vm473_vm9, %v706_v14, -inf  ;;  %v720_v28 = vsel %vm473_vm9, %v1888_v15, -inf  ;;  %1217 = vpow2.f32 %v511_v12 }
 0x261   :  { %v691_v1 = vmul.f32 %v683_v40, %v1452_v4  ;;  %v679_v9 = vadd.f32 %v671_v48, %v639_v53  ;;  %v716_v4 = vsel %vm473_vm9, %v1883_v0, -inf  ;;  %v719_v53 = vmax.f32 %v713_v31, %v718_v35 }
 0x262   :  { %v717_v33 = vmax.f32 %v712_v47, %v716_v4  ;;  %v721_v54 = vmax.f32 %v714_v49, %v720_v28 }
 0x263   :  { %vm699_vm3 = vcmp.eq.f32.partialorder %v691_v1, 0.0  ;;  %v687_v20 = vadd.f32 %v1821_v46, %v679_v9  ;;  %v1897_v46 = vpop.eup %1203 }
 0x264   :  { %v707_v60 = vsel %vm699_vm3, -inf, %v691_v1  ;;  %v1902_v52 = vpop.eup %1205  ;;  %v724_v39 = vmax.f32 %v717_v33, %v719_v53 }
 0x265   :  { %v695_v41 = vmul.f32 %v687_v20, %v1476_v8  ;;  %v513_v8 = vsel %vm473_vm9, %v1897_v46, 0.0  ;;  %v1906_v55 = vpop.eup %1207  ;;  %v715_v27 = vsel %vm473_vm9, %v707_v60, -inf  ;;  %v514_v2 = vsel %vm473_vm9, %v1902_v52, 0.0 }
 0x266   :  { %v1210_v16 = vpop.eup %1209  ;;  %v515_v5 = vadd.f32 %v514_v2, %v513_v8  ;;  %v518_v13 = vsel %vm473_vm9, %v1906_v55, 0.0 }
 0x267   :  { %vm703_vm4 = vcmp.eq.f32.partialorder %v695_v41, 0.0  ;;  %v516_v61 = vsel %vm473_vm9, %v1210_v16, 0.0  ;;  %v1913_v50 = vpop.eup %1211 }
 0x268   :  { %v711_v19 = vsel %vm703_vm4, -inf, %v695_v41  ;;  %v517_v32 = vadd.f32 %v516_v61, %v515_v5  ;;  %v1917_v23 = vpop.eup %1213  ;;  %v520_v34 = vsel %vm473_vm9, %v1913_v50, 0.0 }
 0x269   :  { %v722_v59 = vsel %vm473_vm9, %v711_v19, -inf  ;;  %v1921_v7 = vpop.eup %1215  ;;  %v522_v57 = vsel %vm473_vm9, %v1917_v23, 0.0 }
 0x26a   :  { %v723_v22 = vmax.f32 %v715_v27, %v722_v59  ;;  %v519_v56 = vadd.f32 %v518_v13, %v517_v32  ;;  %v1925_v1 = vpop.eup %1217  ;;  %v524_v20 = vsel %vm473_vm9, %v1921_v7, 0.0 }
 0x26c   :  { %v725_v62 = vmax.f32 %v721_v54, %v723_v22  ;;  %v521_v38 = vadd.f32 %v520_v34, %v519_v56 }
 0x26e   :  { %v726_v43 = vmax.f32 %v724_v39, %v725_v62  ;;  %v523_v9 = vadd.f32 %v522_v57, %v521_v38 }
 0x270   :  { %v727_v40 = vsub.f32 %v704_v30, %v726_v43  ;;  %v728_v6 = vsub.f32 %v705_v63, %v726_v43  ;;  %v729_v48 = vsub.f32 %v706_v14, %v726_v43  ;;  %v730_v12 = vsub.f32 %v707_v60, %v726_v43 }
 0x271   :  { %v525_v35 = vadd.f32 %v524_v20, %v523_v9  ;;  %v731_v41 = vsub.f32 %v1883_v0, %v726_v43  ;;  %v526_v30 = vsel %vm473_vm9, %v1925_v1, 0.0  ;;  %v732_v14 = vsub.f32 %v1885_v10, %v726_v43 }
 0x272   :  { %v735_v11 = vmul.f32 1.442695, %v727_v40  ;;  %v737_v4 = vmul.f32 1.442695, %v728_v6  ;;  %v739_v63 = vmul.f32 1.442695, %v729_v48  ;;  %v733_v49 = vsub.f32 %v1888_v15, %v726_v43 }
 0x273   :  { %v527_v47 = vadd.f32 %v526_v30, %v525_v35  ;;  %v741_v31 = vmul.f32 1.442695, %v730_v12  ;;  %v743_v28 = vmul.f32 1.442695, %v731_v41  ;;  %v734_v60 = vsub.f32 %v711_v19, %v726_v43  ;;  %v838_v35 = vld [vmem:[%s2060_s7] sm:$0xff] }
 0x274   :  { %1219 = vpow2.f32 %v735_v11  ;;  %v745_v33 = vmul.f32 1.442695, %v732_v14  ;;  %v747_v53 = vmul.f32 1.442695, %v733_v49  ;;  %v1343_v30 = vmov 0.0|0.0  }
 0x275   :  { %1221 = vpow2.f32 %v737_v4  ;;  %v749_v0 = vmul.f32 1.442695, %v734_v60  ;;  %1168 = vmatprep.subr.bf16.mxu1 %v1343_v30  ;;  %1174 = vmatprep.subr.bf16.mxu0 %v1343_v30 }
 0x276   :  { %1223 = vrcp.f32 %v527_v47 }
 0x277   :  { %1225 = vpow2.f32 %v739_v63 }
 0x278   :  { %1227 = vpow2.f32 %v741_v31  ;;  %v1345_v31 = vmov 0.0  }
 0x279   :  { %1229 = vpow2.f32 %v743_v28  ;;  %1146 = vmatprep.mubr.msk.f32.mxu1 %vm1344_vm5, %v1345_v31  ;;  %1157 = vmatprep.mubr.msk.f32.mxu0 %vm1344_vm5, %v1345_v31 }
 0x27a   :  { %1231 = vpow2.f32 %v745_v33 }
 0x27b   :  { %1233 = vpow2.f32 %v747_v53 }
 0x27c   :  { %1235 = vpow2.f32 %v749_v0 }
 0x27e   :  { %v1220_v8 = vpop.eup %1219 }
 0x27f   :  { %v1222_v27 = vpop.eup %1221  ;;  %v751_v10 = vsel %vm473_vm9, %v1220_v8, 0.0 }
 0x280   :  { %v1224_v59 = vpop.eup %1223  ;;  %v752_v2 = vsel %vm473_vm9, %v1222_v27, 0.0 }
 0x281   :  { %v1226_v54 = vpop.eup %1225  ;;  %v530_v15 = vmul.f32 %v1224_v59, %v1902_v52  ;;  %v529_v19 = vmul.f32 %v1224_v59, %v1897_v46  ;;  %v753_v5 = vadd.f32 %v752_v2, %v751_v10  ;;  %v531_v62 = vmul.f32 %v1224_v59, %v1210_v16 }
 0x282   :  { %v1228_v22 = vpop.eup %1227  ;;  %v754_v61 = vsel %vm473_vm9, %v1226_v54, 0.0  ;;  %v532_v52 = vmul.f32 %v1224_v59, %v1906_v55  ;;  %v533_v16 = vmul.f32 %v1224_v59, %v1913_v50  ;;  %v534_v12 = vmul.f32 %v1224_v59, %v1917_v23  ;;  %v839_v50 = vld [vmem:[%s2060_s7 + $0x8] sm:$0xff] }
 0x283   :  { %544 = vperm.xlu0 %1193, %v530_v15   ;;  %539 = vperm.xlu1 %1194, %v529_v19   ;;  %v1230_v39 = vpop.eup %1229  ;;  %v755_v32 = vadd.f32 %v754_v61, %v753_v5  ;;  %v756_v13 = vsel %vm473_vm9, %v1228_v22, 0.0  ;;  %v535_v55 = vmul.f32 %v1224_v59, %v1921_v7  ;;  %v536_v4 = vmul.f32 %v1224_v59, %v1925_v1  ;;  %v840_v7 = vld [vmem:[%s2060_s7 + $0x10] sm:$0xff]  ;;  %v841_v1 = vld [vmem:[%s2060_s7 + $0x18] sm:$0xff] }
 0x284   :  { %v1232_v43 = vpop.eup %1231  ;;  %v758_v34 = vsel %vm473_vm9, %v1230_v39, 0.0  ;;  %v1169_v23 = vpack.c.bf16 %v839_v50, %v838_v35  ;;  %v1172_v47 = vpack.c.bf16 %v841_v1, %v840_v7 }
 0x285   :  { %v757_v56 = vadd.f32 %v756_v13, %v755_v32  ;;  %v1234_v38 = vpop.eup %1233  ;;  %v760_v40 = vsel %vm473_vm9, %v1232_v43, 0.0 }
 0x286   :  { %v1236_v6 = vpop.eup %1235  ;;  %v762_v48 = vsel %vm473_vm9, %v1234_v38, 0.0  ;;  %1170 = vmatpush3.bf16.msra.mxu1 %v1169_v23  ;;  %1176 = vmatpush3.bf16.msra.mxu0 %v1169_v23 }
 0x287   :  { %549 = vperm.xlu0 %1193, %v531_v62   ;;  %v759_v46 = vadd.f32 %v758_v34, %v757_v56  ;;  %v764_v11 = vsel %vm473_vm9, %v1236_v6, 0.0  ;;  %1171 = vmatprep.subr.bf16.mxu1 %v1343_v30 }
 0x288   :  { %1177 = vmatprep.subr.bf16.mxu0 %v1343_v30 }
 0x289   :  { %v761_v57 = vadd.f32 %v760_v40, %v759_v46 }
 0x28a   :  { %1173 = vmatpush3.bf16.msra.mxu1 %v1172_v47  ;;  %1179 = vmatpush3.bf16.msra.mxu0 %v1172_v47 }
 0x28b   :  { %554 = vperm.xlu0 %1193, %v532_v52   ;;  %v763_v9 = vadd.f32 %v762_v48, %v761_v57 }
 0x28d   :  { %v765_v20 = vadd.f32 %v764_v11, %v763_v9 }
 0x28f   :  { %559 = vperm.xlu0 %1193, %v533_v16   ;;  %1237 = vrcp.f32 %v765_v20 }
 0x293   :  { %564 = vperm.xlu0 %1193, %v534_v12  }
 0x297   :  { %569 = vperm.xlu0 %1193, %v535_v55  }
 0x299   :  { %v1238_v41 = vpop.eup %1237 }
 0x29a   :  { %v767_v63 = vmul.f32 %v1238_v41, %v1220_v8  ;;  %v768_v14 = vmul.f32 %v1238_v41, %v1222_v27  ;;  %v769_v49 = vmul.f32 %v1238_v41, %v1226_v54  ;;  %v770_v28 = vmul.f32 %v1238_v41, %v1228_v22  ;;  %v1109_v8 = vld [vmem:[%s2061_s8] ss:$0 sm:$0xff]  ;;  %s1348_s8 = smov 120  }
 0x29b   :  { %574 = vperm.xlu0 %1193, %v536_v4   ;;  %v771_v60 = vmul.f32 %v1238_v41, %v1230_v39  ;;  %v772_v33 = vmul.f32 %v1238_v41, %v1232_v43  ;;  %v773_v53 = vmul.f32 %v1238_v41, %v1234_v38  ;;  %v774_v0 = vmul.f32 %v1238_v41, %v1236_v6  ;;  %v1110_v27 = vld [vmem:[%s2062_s9] ss:$0 sm:$0xff]  ;;  %s1349_s9 = smov [#allocation5]  }
 0x29c   :  { %777 = vperm.xlu1 %1194, %v767_v63   ;;  %s1054_s4 = sshll.u32 %s1349_s9, 4  ;;  %s1055_s4 = int_to_ptr.vmem [resolvable:$true] %s1054_s4 }
 0x29d   :  { %s1247_s27 = scalar_lea.vmem %s1055_s4, 32  ;;  %p1252_p1 = scmp.lt.s32.totalorder %s1055_s4, %s1055_s4 }
 0x29e   :  { %p1248_p0 = scmp.ne.s32.totalorder %s1055_s4, %s1247_s27  ;;  %p1253_p2 = scmp.lt.s32.totalorder %s1247_s27, %s1247_s27 }
 0x29f   :  { %1009 = vrot.lane.b32.xlu0 %v1109_v8, %s1346_s25 }
 0x2a0   :  { %782 = vperm.xlu1 %1194, %v768_v14   ;;  %p1254_p3 = por %p1253_p2, %p1252_p1 }
 0x2a2   :  { %p1255_p4 = pnand %p1254_p3, %p1248_p0 }
 0x2a4   :  { %787 = vperm.xlu1 %1194, %v769_v49  }
 0x2a8   :  { %792 = vperm.xlu1 %1194, %v770_v28  }
 0x2ac   :  { %797 = vperm.xlu1 %1194, %v771_v60  }
 0x2b0   :  { %802 = vperm.xlu1 %1194, %v772_v33  }
 0x2b4   :  { %807 = vperm.xlu1 %1194, %v773_v53   ;;  %v2071_v53 = vld [vmem:[#allocation13_spill] sm:$0xff] }
 0x2b8   :  { %812 = vperm.xlu1 %1194, %v774_v0  }
 0x2bc   :  { %1025 = vrot.lane.b32.xlu1 %v1110_v27, %s1347_s26 }
 0x302   :  { %v545_v59 = vpop.permute.xlu0 %544  ;;  %v540_v2 = vpop.permute.xlu1 %539 }
 0x303   :  { %v577_v15 = vmul.f32 %v540_v2, %v1579_v24  ;;  %v578_v19 = vmul.f32 %v545_v59, %v1610_v45 }
 0x305   :  { %v585_v61 = vsel %vm323_vm1, %v577_v15, 0.0  ;;  %v586_v39 = vsel %vm323_vm1, %v578_v19, 0.0 }
 0x306   :  { %v550_v10 = vpop.permute.xlu0 %549  ;;  %v587_v43 = vadd.f32 %v586_v39, %v585_v61 }
 0x307   :  { %v579_v22 = vmul.f32 %v550_v10, %v1607_v44 }
 0x309   :  { %v588_v32 = vsel %vm323_vm1, %v579_v22, 0.0 }
 0x30a   :  { %v555_v54 = vpop.permute.xlu0 %554  ;;  %v589_v45 = vadd.f32 %v588_v32, %v587_v43 }
 0x30b   :  { %v580_v62 = vmul.f32 %v555_v54, %v1689_v25 }
 0x30d   :  { %v590_v34 = vsel %vm323_vm1, %v580_v62, 0.0 }
 0x30e   :  { %v560_v5 = vpop.permute.xlu0 %559  ;;  %v591_v38 = vadd.f32 %v590_v34, %v589_v45 }
 0x30f   :  { %v581_v13 = vmul.f32 %v560_v5, %v1576_v18 }
 0x311   :  { %v592_v44 = vsel %vm323_vm1, %v581_v13, 0.0 }
 0x312   :  { %v565_v56 = vpop.permute.xlu0 %564  ;;  %v593_v25 = vadd.f32 %v592_v44, %v591_v38 }
 0x313   :  { %v582_v24 = vmul.f32 %v565_v56, %v1592_v37 }
 0x315   :  { %v594_v46 = vsel %vm323_vm1, %v582_v24, 0.0 }
 0x316   :  { %v570_v52 = vpop.permute.xlu0 %569  ;;  %v595_v57 = vadd.f32 %v594_v46, %v593_v25 }
 0x317   :  { %v583_v40 = vmul.f32 %v570_v52, %v1589_v36 }
 0x319   :  { %v596_v6 = vsel %vm323_vm1, %v583_v40, 0.0 }
 0x31a   :  { %v575_v18 = vpop.permute.xlu0 %574  ;;  %v597_v16 = vadd.f32 %v596_v6, %v595_v57 }
 0x31b   :  { %v584_v48 = vmul.f32 %v575_v18, %v1671_v3  ;;  %v778_v37 = vpop.permute.xlu1 %777 }
 0x31c   :  { %v815_v36 = vmul.f32 %v778_v37, %v1597_v29 }
 0x31d   :  { %v598_v9 = vsel %vm323_vm1, %v584_v48, 0.0 }
 0x31e   :  { %v599_v11 = vadd.f32 %v598_v9, %v597_v16  ;;  %v823_v30 = vsel %vm323_vm1, %v815_v36, 0.0  ;;  %v1010_v59 = vpop.permute.xlu0 %1009 }
 0x31f   :  { %v783_v20 = vpop.permute.xlu1 %782 }
 0x320   :  { %1147 = vmatmul.mubr.msk.f32.vlgmr.msra.gmra.mrb[0].mxu1 %vm163_vm0, %v599_v11  ;;  %v816_v4 = vmul.f32 %v783_v20, %v1704_v51 }
 0x322   :  { %v824_v41 = vsel %vm323_vm1, %v816_v4, 0.0 }
 0x323   :  { %v788_v12 = vpop.permute.xlu1 %787  ;;  %v825_v7 = vadd.f32 %v824_v41, %v823_v30 }
 0x324   :  { %v817_v35 = vmul.f32 %v788_v12, %v1692_v26 }
 0x326   :  { %v826_v23 = vsel %vm323_vm1, %v817_v35, 0.0 }
 0x327   :  { %v793_v55 = vpop.permute.xlu1 %792  ;;  %v827_v29 = vadd.f32 %v826_v23, %v825_v7 }
 0x328   :  { %v818_v3 = vmul.f32 %v793_v55, %v1742_v58 }
 0x32a   :  { %v828_v47 = vsel %vm323_vm1, %v818_v3, 0.0 }
 0x32b   :  { %v798_v50 = vpop.permute.xlu1 %797  ;;  %v829_v14 = vadd.f32 %v828_v47, %v827_v29 }
 0x32c   :  { %v819_v63 = vmul.f32 %v798_v50, %v1594_v42 }
 0x32e   :  { %v830_v26 = vsel %vm323_vm1, %v819_v63, 0.0 }
 0x32f   :  { %v803_v1 = vpop.permute.xlu1 %802  ;;  %v831_v28 = vadd.f32 %v830_v26, %v829_v14 }
 0x330   :  { %v820_v51 = vmul.f32 %v803_v1, %v1681_v17 }
 0x332   :  { %v832_v49 = vsel %vm323_vm1, %v820_v51, 0.0 }
 0x333   :  { %v808_v31 = vpop.permute.xlu1 %807  ;;  %v833_v33 = vadd.f32 %v832_v49, %v831_v28 }
 0x334   :  { %v821_v58 = vmul.f32 %v808_v31, %v1686_v21 }
 0x336   :  { %v834_v60 = vsel %vm323_vm1, %v821_v58, 0.0 }
 0x337   :  { %v813_v42 = vpop.permute.xlu1 %812  ;;  %v835_v8 = vadd.f32 %v834_v60, %v833_v33 }
 0x338   :  { %v822_v0 = vmul.f32 %v813_v42, %v2071_v53 }
 0x33a   :  { %v836_v27 = vsel %vm323_vm1, %v822_v0, 0.0 }
 0x33b   :  { %v837_v17 = vadd.f32 %v836_v27, %v835_v8 }
 0x33d   :  { %1158 = vmatmul.mubr.msk.f32.vlgmr.msra.gmra.mrb[2].mxu0 %vm163_vm0, %v837_v17 }
 0x3f3   :  { %v911_v10 = vpop.f32.mrb[0].mxu1 }
 0x3f4   :  { %v1107_v2 = vmul.f32 -1.442695, %v911_v10  ;;  %v1012_v54 = vadd.f32 %v1010_v59, %v911_v10  ;;  %v1148_v15 = vpop.f32.mrb[1].mxu1 }
 0x3f6   :  { %1239 = vpow2.f32 %v1107_v2  ;;  %1014 = vrot.lane.b32.xlu0 %v1012_v54, %s1348_s8 }
 0x400   :  { %v1240_v21 = vpop.eup %1239 }
 0x401   :  { %v991_v19 = vadd.f32 1.0, %v1240_v21 }
 0x403   :  { %1241 = vrcp.f32 %v991_v19 }
 0x40d   :  { %v1242_v22 = vpop.eup %1241 }
 0x40e   :  { %995 = vst.msk [vmem:[#allocation5] sm:$0x3] %vm994_vm6, %v1242_v22 }
 0x40f   :  { %1258 = shalt.err (!%p1255_p4)
}
 0x410   :  { %s1259_s2 = scalar_lea.hbm %s2066_s13, 32 }
 0x411   :  { %p1260_p5 = scmp.ne.s32.totalorder %s2066_s13, %s1259_s2  ;;  %p1263_p6 = scmp.lt.u32.totalorder %s1259_s2, %s2066_s13 }
 0x413   :  { %p1265_p7 = pnand %p1263_p6, %p1260_p5 }
 0x415   :  { %1268 = shalt.err (!%p1265_p7)
}
 0x416   :  { %1057 = dma.vmem_to_hbm [thread:$0]  %s1055_s4, 32, %s2066_s13, [#allocation6]   ;;  %v1026_v5 = vpop.permute.xlu1 %1025  ;;  %v984_v61 = vpop.f32.mrb[2].mxu0 }
 0x417   :  { %v1108_v39 = vmul.f32 -1.442695, %v984_v61  ;;  %v1028_v62 = vadd.f32 %v1026_v5, %v984_v61  ;;  %v1159_v32 = vpop.f32.mrb[3].mxu0  ;;  %s1350_s10 = smov 118   ;;  %s1351_s20 = smov [#allocation3]  }
 0x418   :  { %s1044_s21 = sshll.u32 %s1351_s20, 4  ;;  %s1045_s21 = int_to_ptr.vmem [resolvable:$true] %s1044_s21 }
 0x419   :  { %1243 = vpow2.f32 %v1108_v39  ;;  %1030 = vrot.lane.b32.xlu1 %v1028_v62, %s1350_s10  ;;  %s1269_s22 = scalar_lea.vmem %s1045_s21, 32  ;;  %p1274_p9 = scmp.lt.s32.totalorder %s1045_s21, %s1045_s21 }
 0x41a   :  { %p1270_p8 = scmp.ne.s32.totalorder %s1045_s21, %s1269_s22  ;;  %p1275_p10 = scmp.lt.s32.totalorder %s1269_s22, %s1269_s22 }
 0x41c   :  { %p1276_p11 = por %p1275_p10, %p1274_p9 }
 0x41e   :  { %p1277_p12 = pnand %p1276_p11, %p1270_p8 }
 0x423   :  { %v1244_v13 = vpop.eup %1243 }
 0x424   :  { %v999_v43 = vadd.f32 1.0, %v1244_v13 }
 0x426   :  { %1245 = vrcp.f32 %v999_v43 }
 0x430   :  { %v1246_v56 = vpop.eup %1245 }
 0x431   :  { %1002 = vst.msk [vmem:[#allocation3] sm:$0x3] %vm994_vm6, %v1246_v56 }
 0x432   :  { %1280 = shalt.err (!%p1277_p12)
}
 0x433   :  { %s1281_s6 = scalar_lea.hbm %s2065_s12, 32 }
 0x434   :  { %p1282_p13 = scmp.ne.s32.totalorder %s2065_s12, %s1281_s6  ;;  %p1285_p0 = scmp.lt.u32.totalorder %s1281_s6, %s2065_s12 }
 0x436   :  { %p1287_p1 = pnand %p1285_p0, %p1282_p13 }
 0x438   :  { %1290 = shalt.err (!%p1287_p1)
}
 0x439   :  { %1047 = dma.vmem_to_hbm [thread:$0]  %s1045_s21, 32, %s2065_s12, [#allocation4]   ;;  %vm1017_vm0 = vcmask 9216  }
 0x43a   :  { %s1352_s25 = smov [#allocation8]  }
 0x43b   :  { %s1074_s26 = sshll.u32 %s1352_s25, 4  ;;  %s1075_s26 = int_to_ptr.vmem [resolvable:$true] %s1074_s26 }
 0x43c   :  { %s1291_s8 = scalar_lea.vmem %s1075_s26, 32  ;;  %p1296_p3 = scmp.lt.s32.totalorder %s1075_s26, %s1075_s26 }
 0x43d   :  { %p1292_p2 = scmp.ne.s32.totalorder %s1075_s26, %s1291_s8  ;;  %p1297_p4 = scmp.lt.s32.totalorder %s1291_s8, %s1291_s8 }
 0x43f   :  { %p1298_p5 = por %p1297_p4, %p1296_p3 }
 0x441   :  { %p1299_p6 = pnand %p1298_p5, %p1292_p2 }
 0x468   :  { %v1015_v34 = vpop.permute.xlu0 %1014 }
 0x469   :  { %1018 = vst.msk [vmem:[#allocation8] sm:$0x3] %vm1017_vm0, %v1015_v34 }
 0x46a   :  { %1302 = shalt.err (!%p1299_p6)
}
 0x46b   :  { %s1303_s27 = scalar_lea.hbm %s2068_s15, 32 }
 0x46c   :  { %p1304_p7 = scmp.ne.s32.totalorder %s2068_s15, %s1303_s27  ;;  %p1307_p8 = scmp.lt.u32.totalorder %s1303_s27, %s2068_s15 }
 0x46e   :  { %p1309_p9 = pnand %p1307_p8, %p1304_p7 }
 0x470   :  { %1312 = shalt.err (!%p1309_p9)
}
 0x471   :  { %1077 = dma.vmem_to_hbm [thread:$0]  %s1075_s26, 32, %s2068_s15, [#allocation9]  }
 0x472   :  { %s1353_s11 = smov [#allocation7]  }
 0x473   :  { %s1064_s17 = sshll.u32 %s1353_s11, 4  ;;  %s1065_s17 = int_to_ptr.vmem [resolvable:$true] %s1064_s17 }
 0x474   :  { %s1313_s18 = scalar_lea.vmem %s1065_s17, 32  ;;  %p1318_p11 = scmp.lt.s32.totalorder %s1065_s17, %s1065_s17 }
 0x475   :  { %p1314_p10 = scmp.ne.s32.totalorder %s1065_s17, %s1313_s18  ;;  %p1319_p12 = scmp.lt.s32.totalorder %s1313_s18, %s1313_s18 }
 0x477   :  { %p1320_p13 = por %p1319_p12, %p1318_p11 }
 0x479   :  { %p1321_p0 = pnand %p1320_p13, %p1314_p10 }
 0x48b   :  { %v1031_v24 = vpop.permute.xlu1 %1030 }
 0x48c   :  { %1033 = vst.msk [vmem:[#allocation7] sm:$0x3] %vm1017_vm0, %v1031_v24 }
 0x48d   :  { %1324 = shalt.err (!%p1321_p0)
}
 0x48e   :  { %s1325_s20 = scalar_lea.hbm %s2067_s14, 32 }
 0x48f   :  { %p1326_p1 = scmp.ne.s32.totalorder %s2067_s14, %s1325_s20  ;;  %p1329_p2 = scmp.lt.u32.totalorder %s1325_s20, %s2067_s14 }
 0x491   :  { %p1331_p3 = pnand %p1329_p2, %p1326_p1 }
 0x493   :  { %1334 = shalt.err (!%p1331_p3)
}
 0x494   :  { %1067 = dma.vmem_to_hbm [thread:$0]  %s1065_s17, 32, %s2067_s14, [#allocation6]  }
 0x495   :  { %1335 = dma.done.wait [#allocation4], 32  }
 0x496   :  { %1336 = vsyncadd [#allocation4], 4294967264 }
 0x497   :  { %1337 = dma.done.wait [#allocation6], 64  }
 0x498   :  { %1338 = vsyncadd [#allocation6], 4294967232 }
 0x499   :  { %1339 = dma.done.wait [#allocation9], 32  }
 0x49a   :  { %1340 = vsyncadd [#allocation9], 4294967264 }
 0x49b   :  { %1094 = vsyncpa [#allocation4], 1 }
 0x49c   :  { %1095 = vsyncpa [#allocation6], 1 }
 0x49d   :  { %1096 = vsyncpa [#allocation9], 1 }

// kernel: bigru_stymix_forward.5
= control target key start
LH: loop header
LB: loop body
LE: loop exit
PB: predicated region body
PF: predicated region fallthrough
CT: control target
= control target key end

     0   :  { %v83_v0 = vlaneseq  ;;  %v2063_v4 = vmov 0.0   ;;  %v2064_v5 = vmov 1983009808   ;;  %vm135_vm0 = vcmask 261120   ;;  %s2751_s1 = inlined_call_operand.vmem [shape: f32[32,256], index: 1, kind: input, shape index: {}]   ;;  %s2752_s7 = inlined_call_operand.vmem [shape: f32[1,32], index: 7, kind: input, shape index: {}]   ;;  %s2753_s8 = inlined_call_operand.vmem [shape: f32[1,32], index: 8, kind: input, shape index: {}]   ;;  %s2754_s9 = inlined_call_operand.vmem [shape: f32[32,256], index: 9, kind: input, shape index: {}]   ;;  %s2755_s10 = inlined_call_operand.vmem [shape: f32[32,96], index: 10, kind: input, shape index: {}]   ;;  %s2756_s11 = inlined_call_operand.vmem [shape: f32[32,96], index: 11, kind: input, shape index: {}]   ;;  %s2757_s12 = inlined_call_operand.vmem [shape: f32[1,256], index: 12, kind: input, shape index: {}]   ;;  %s2758_s13 = inlined_call_operand.vmem [shape: f32[1,32], index: 13, kind: input, shape index: {}]   ;;  %s2759_s14 = inlined_call_operand.vmem [shape: f32[1,32], index: 14, kind: input, shape index: {}]   ;;  %s2760_s15 = inlined_call_operand.vmem [shape: f32[1,32], index: 15, kind: input, shape index: {}]   ;;  %s2761_s16 = inlined_call_operand.vmem [shape: f32[1,32], index: 16, kind: input, shape index: {}]   ;;  %s2762_s17 = inlined_call_operand.vmem [shape: f32[8,2,1], index: 17, kind: input, shape index: {}]   ;;  %s2763_s18 = inlined_call_operand.vmem [shape: f32[32,16], index: 18, kind: input, shape index: {}]   ;;  %s2764_s19 = inlined_call_operand.vmem [shape: f32[1,16], index: 19, kind: input, shape index: {}]   ;;  %s2765_s20 = inlined_call_operand.vmem [shape: f32[8,2,16], index: 20, kind: output, shape index: {}]   ;;  %s2766_s0 = inlined_call_operand.vmem [shape: f32[8,2,32], index: 0, kind: input, shape index: {}]   ;;  %s2767_s2 = inlined_call_operand.vmem [shape: f32[32,96], index: 2, kind: input, shape index: {}]   ;;  %s2768_s3 = inlined_call_operand.vmem [shape: f32[32,96], index: 3, kind: input, shape index: {}]   ;;  %s2769_s5 = inlined_call_operand.vmem [shape: f32[1,32], index: 5, kind: input, shape index: {}]   ;;  %s2770_s6 = inlined_call_operand.vmem [shape: f32[1,32], index: 6, kind: input, shape index: {}]   ;;  %s2771_s4 = inlined_call_operand.vmem [shape: f32[1,256], index: 4, kind: input, shape index: {}]  }
   0x1   :  { %2775 = sst [smem:[#allocation7_spill]] %s2751_s1  ;;  %204 = vmatprep.mubr.f32.mxu0 %v2063_v4  ;;  %210 = vmatprep.mubr.f32.mxu1 %v2063_v4  ;;  %v104_v6 = vunpack.c.l.s4 %v2064_v5  ;;  %v65_v16 = vld [vmem:[%s2766_s0] sm:$0x3]  ;;  %v66_v19 = vld [vmem:[%s2766_s0 + $0x2] sm:$0x3]  ;;  %v2250_v38 = vld [vmem:[%s2767_s2 + $0x8] sm:$0xff] }
   0x2   :  { %2776 = sst [smem:[#allocation8_spill]] %s2752_s7  ;;  %s2780_s23 = sld [smem:[#allocation7_spill]]  ;;  %v2201_v11 = vshrl.u32 %v83_v0, 7  ;;  %v67_v20 = vld [vmem:[%s2766_s0 + $0x4] sm:$0x3]  ;;  %v101_v22 = vcombine.low %v65_v16, %v66_v19  ;;  %v2255_v39 = vld [vmem:[%s2767_s2 + $0x10] sm:$0xff] }
   0x3   :  { %2777 = sst [smem:[#allocation9_spill]] %s2753_s8  ;;  %v105_v17 = vunpack.c.0.s8 %v104_v6  ;;  %v68_v21 = vld [vmem:[%s2766_s0 + $0x6] sm:$0x3]  ;;  %v69_v25 = vld [vmem:[%s2766_s0 + $0x8] sm:$0x3]  ;;  %v2260_v40 = vld [vmem:[%s2767_s2 + $0x18] sm:$0xff] }
   0x4   :  { %2778 = sst [smem:[#allocation10_spill]] %s2754_s9  ;;  %v102_v23 = vcombine.low %v67_v20, %v68_v21  ;;  %v70_v26 = vld [vmem:[%s2766_s0 + $0xa] sm:$0x3]  ;;  %v71_v27 = vld [vmem:[%s2766_s0 + $0xc] sm:$0x3]  ;;  %v2245_v37 = vld [vmem:[%s2767_s2] sm:$0xff] }
   0x5   :  { %2779 = sst [smem:[#allocation11_spill]] %s2755_s10  ;;  %v2222_v24 = vsub.s32 %v105_v17, %v2201_v11  ;;  %v72_v28 = vld [vmem:[%s2766_s0 + $0xe] sm:$0x3]  ;;  %v118_v29 = vcombine.low %v69_v25, %v70_v26  ;;  %v2265_v41 = vld [vmem:[%s2768_s3] sm:$0xff]  ;;  %v2275_v43 = vld [vmem:[%s2768_s3 + $0x10] sm:$0xff]  ;;  %v85_v47 = vsub.s32 0, %v2201_v11 }
   0x6   :  { %v119_v32 = vcombine.low %v71_v27, %v72_v28  ;;  %v2270_v42 = vld [vmem:[%s2768_s3 + $0x8] sm:$0xff]  ;;  %v2280_v44 = vld [vmem:[%s2768_s3 + $0x18] sm:$0xff]  ;;  %v2285_v45 = vld [vmem:[%s2769_s5] ss:$0 sm:$0xff]  ;;  %v89_v49 = vsub.s32 1, %v2201_v11  ;;  %v2311_v19 = vmov 0.0  }
   0x7   :  { %v109_v30 = vrot.slane %v101_v22, %v2222_v24  ;;  %v116_v31 = vrot.slane %v102_v23, %v2222_v24  ;;  %v126_v33 = vrot.slane %v118_v29, %v2222_v24  ;;  %v2290_v46 = vld [vmem:[%s2770_s6] ss:$0 sm:$0xff]  ;;  %s2313_s3 = smov 0  }
   0x8   :  { %v74_v1 = vld [vmem:[%s2780_s23 + $0x8] sm:$0xff]  ;;  %v76_v2 = vld [vmem:[%s2780_s23 + $0x18] sm:$0xff]  ;;  %v73_v3 = vld [vmem:[%s2780_s23] sm:$0xff]  ;;  %v133_v35 = vrot.slane %v119_v32, %v2222_v24 }
   0x9   :  { %v1840_v7 = vpack.c.bf16 %v76_v2, %v74_v1  ;;  %v75_v8 = vld [vmem:[%s2780_s23 + $0x10] sm:$0xff]  ;;  %v78_v9 = vld [vmem:[%s2780_s23 + $0x28] sm:$0xff]  ;;  %v80_v10 = vld [vmem:[%s2780_s23 + $0x38] sm:$0xff]  ;;  %v117_v34 = vcombine.low %v109_v30, %v116_v31 }
   0xa   :  { %v1842_v12 = vpack.c.bf16 %v75_v8, %v73_v3  ;;  %v1844_v13 = vpack.c.bf16 %v80_v10, %v78_v9  ;;  %v77_v14 = vld [vmem:[%s2780_s23 + $0x20] sm:$0xff]  ;;  %v79_v15 = vld [vmem:[%s2780_s23 + $0x30] sm:$0xff]  ;;  %v134_v36 = vcombine.low %v126_v33, %v133_v35 }
   0xb   :  { %1841 = vmatprep.subr.bf16.mxu0 %v1840_v7  ;;  %1888 = vmatprep.subr.bf16.mxu1 %v1840_v7  ;;  %v1846_v18 = vpack.c.bf16 %v79_v15, %v77_v14  ;;  %v81_v48 = vld [vmem:[%s2771_s4] sm:$0x3] }
   0xc   :  { %1843 = vmatpush1.bf16.msra.mxu0 %v1842_v12  ;;  %1890 = vmatpush1.bf16.msra.mxu1 %v1842_v12  ;;  %v86_v50 = vrot.slane %v81_v48, %v85_v47  ;;  %v90_v51 = vrot.slane %v81_v48, %v89_v49 }
   0xd   :  { %1845 = vmatprep.subr.bf16.mxu0 %v1844_v13  ;;  %1889 = vmatprep.subr.bf16.mxu1 %v1844_v13 }
  0x10   :  { %1847 = vmatpush1.bf16.msra.mxu0 %v1846_v18  ;;  %1891 = vmatpush1.bf16.msra.mxu1 %v1846_v18  ;;  %v2309_v18 = vmov 0.0  }
  0x13   :  { %1716 = vmatmul.mubr.msk.f32.vlgmr.msra.gmra.mrb[0].mxu0 %vm135_vm0, %v117_v34  ;;  %1717 = vmatmul.mubr.msk.f32.vlgmr.msra.gmra.mrb[0].mxu1 %vm135_vm0, %v134_v36 }
  0xe6   :  { %v206_v52 = vpop.f32.mrb[0].mxu0  ;;  %v212_v54 = vpop.f32.mrb[0].mxu1 }
  0xe7   :  { %v207_v53 = vadd.f32 %v206_v52, %v86_v50  ;;  %v208_v55 = vpop.f32.mrb[1].mxu0  ;;  %v213_v56 = vadd.f32 %v212_v54, %v86_v50  ;;  %v214_v58 = vpop.f32.mrb[1].mxu1 }
  0xe8   :  { %v209_v57 = vadd.f32 %v208_v55, %v90_v51  ;;  %v215_v61 = vadd.f32 %v214_v58, %v90_v51 }
  0xe9   :  { %v219_v59 = vcombine.high %v207_v53, %v207_v53  ;;  %v226_v60 = vrot.slane %v207_v53, %v2222_v24  ;;  %1718 = vst.sshfl [vmem:[#allocation2] sm:$0x3 pattern:$0x76325410] %v207_v53  ;;  %v236_v62 = vcombine.high %v213_v56, %v213_v56  ;;  %v243_v63 = vrot.slane %v213_v56, %v2222_v24 }
  0xea   :  { %1720 = vst.sshfl [vmem:[#allocation2 + $0x8] sm:$0x3 pattern:$0x76325410] %v213_v56  ;;  %v271_v0 = vcombine.high %v209_v57, %v209_v57  ;;  %v278_v1 = vrot.slane %v209_v57, %v2222_v24  ;;  %v288_v5 = vcombine.high %v215_v61, %v215_v61  ;;  %v295_v6 = vrot.slane %v215_v61, %v2222_v24 }
  0xeb   :  { %1722 = vst.sshfl [vmem:[#allocation3] sm:$0x3 pattern:$0x76325410] %v209_v57  ;;  %v233_v2 = vrot.slane %v219_v59, %v2222_v24  ;;  %v234_v3 = vcombine.high %v226_v60, %v226_v60  ;;  %v250_v7 = vrot.slane %v236_v62, %v2222_v24  ;;  %v251_v8 = vcombine.high %v243_v63, %v243_v63 }
  0xec   :  { %1719 = vst.sshfl [vmem:[#allocation2 + $0x4] sm:$0x3 pattern:$0x76325410] %v219_v59  ;;  %v285_v9 = vrot.slane %v271_v0, %v2222_v24  ;;  %v286_v10 = vcombine.high %v278_v1, %v278_v1  ;;  %v302_v13 = vrot.slane %v288_v5, %v2222_v24  ;;  %v303_v14 = vcombine.high %v295_v6, %v295_v6 }
  0xed   :  { %1724 = vst.sshfl [vmem:[#allocation3 + $0x8] sm:$0x3 pattern:$0x76325410] %v215_v61  ;;  %v235_v12 = vcombine.high %v233_v2, %v233_v2  ;;  %262 = vst [vmem:[#allocation2 + $0x2] sm:$0x3] %v234_v3  ;;  %v252_v15 = vcombine.high %v250_v7, %v250_v7 }
  0xee   :  { %1721 = vst.sshfl [vmem:[#allocation2 + $0xc] sm:$0x3 pattern:$0x76325410] %v236_v62  ;;  %266 = vst [vmem:[#allocation2 + $0xa] sm:$0x3] %v251_v8  ;;  %v287_v16 = vcombine.high %v285_v9, %v285_v9  ;;  %v304_v17 = vcombine.high %v302_v13, %v302_v13 }
  0xef   :  { %1723 = vst.sshfl [vmem:[#allocation3 + $0x4] sm:$0x3 pattern:$0x76325410] %v271_v0  ;;  %314 = vst [vmem:[#allocation3 + $0x2] sm:$0x3] %v286_v10 }
  0xf0   :  { %1725 = vst.sshfl [vmem:[#allocation3 + $0xc] sm:$0x3 pattern:$0x76325410] %v288_v5  ;;  %264 = vst [vmem:[#allocation2 + $0x6] sm:$0x3] %v235_v12 }
  0xf1   :  { %318 = vst [vmem:[#allocation3 + $0xa] sm:$0x3] %v303_v14  ;;  %268 = vst [vmem:[#allocation2 + $0xe] sm:$0x3] %v252_v15 }
  0xf2   :  { %316 = vst [vmem:[#allocation3 + $0x6] sm:$0x3] %v287_v16  ;;  %320 = vst [vmem:[#allocation3 + $0xe] sm:$0x3] %v304_v17 }
  0xf3 LB: > { %v1849_v20 = vpack.c.bf16 %v2250_v38, %v2245_v37  ;;  %v2065_v21 = vmov 0.0|0.0   ;;  %v1855_v22 = vpack.c.bf16 %v2270_v42, %v2265_v41  ;;  %s2066_s4 = smov 96   ;;  %v1852_v23 = vpack.c.bf16 %v2260_v40, %v2255_v39  ;;  %s2069_s5 = smov 64   ;;  %s2049_s3 = sphi %s2313_s3, %s346_s3   ;;  %v2045_v19 = vphi %v2311_v19, %v532_v19   ;;  %v2041_v18 = vphi %v2309_v18, %v565_v18  }
  0xf4   : > { %1848 = vmatprep.subr.bf16.mxu0 %v2065_v21  ;;  %1854 = vmatprep.subr.bf16.mxu1 %v2065_v21  ;;  %v1858_v25 = vpack.c.bf16 %v2280_v44, %v2275_v43  ;;  %vm2067_vm1 = vmmov 0   ;;  %v2068_v26 = vmov 0.0   ;;  %s1730_s6 = sshll.u32 %s2049_s3, 1  ;;  %s349_s27 = ssub.s32 7, %s2049_s3  ;;  %vm571_vm2 = vcmask 254976  }
  0xf5   : > { %351 = vrot.lane.b32.xlu0 %v2045_v19, %s2066_s4  ;;  %1850 = vmatpush3.bf16.msra.mxu0 %v1849_v20  ;;  %s2346_s28 = sshll.u32 %s349_s27, 1  ;;  %s501_s10 = scalar_lea.vmem [#allocation2], %s1730_s6 }
  0xf6   : > { %1851 = vmatprep.subr.bf16.mxu0 %v2065_v21  ;;  %1856 = vmatpush3.bf16.msra.mxu1 %v1855_v22  ;;  %s534_s23 = scalar_lea.vmem [#allocation3], %s2346_s28  ;;  %s570_s29 = scalar_lea.vmem [#allocation4], %s1730_s6 }
  0xf7   : > { %1793 = vmatprep.mubr.msk.f32.mxu0 %vm2067_vm1, %v2068_v26  ;;  %1857 = vmatprep.subr.bf16.mxu1 %v2065_v21  ;;  %s577_s30 = scalar_lea.vmem [#allocation5], %s2346_s28  ;;  %s346_s3 = sadd.s32 1, %s2049_s3  }
  0xf8   : > { %1804 = vmatprep.mubr.msk.f32.mxu1 %vm2067_vm1, %v2068_v26  ;;  %510 = vrot.lane.b32.xlu1 %v2285_v45, %s2069_s5  ;;  %v502_v48 = vld [vmem:[%s501_s10] sm:$0x3]  ;;  %p343_p0 = scmp.ge.s32.totalorder %s346_s3, 8  }
  0xf9   : > { %426 = vrot.lane.b32.xlu0 %v2041_v18, %s2066_s4  ;;  %1853 = vmatpush3.bf16.msra.mxu0 %v1852_v23  ;;  %v535_v51 = vld [vmem:[%s534_s23] sm:$0x3]  ;;  %s2781_s7 = sld [smem:[#allocation10_spill]] (%p343_p0)  ;;  %s2783_s21 = sld [smem:[#allocation9_spill]] (%p343_p0) }
  0xfa   : > { %1859 = vmatpush3.bf16.msra.mxu1 %v1858_v25  ;;  %s2784_s24 = sld [smem:[#allocation11_spill]] (%p343_p0) }
  0xfc   : > { %543 = vrot.lane.b32.xlu1 %v2290_v46, %s2069_s5 }
 0x167   : > { %v352_v27 = vpop.permute.xlu0 %351 }
 0x168   : > { %1794 = vmatmul.mubr.msk.f32.vlgmr.msra.gmra.mrb[0].mxu0 %vm135_vm0, %v352_v27 }
 0x169   :  { %885 = vmatprep.mubr.f32.mxu0 (%p343_p0), %v2063_v4 }
 0x16a   : > { %v511_v29 = vpop.permute.xlu1 %510 }
 0x16b   : > { %v427_v28 = vpop.permute.xlu0 %426 }
 0x16c   : > { %1805 = vmatmul.mubr.msk.f32.vlgmr.msra.gmra.mrb[0].mxu1 %vm135_vm0, %v427_v28 }
 0x16d   :  { %891 = vmatprep.mubr.f32.mxu1 (%p343_p0), %v2063_v4 }
 0x16e   : > { %v544_v33 = vpop.permute.xlu1 %543 }
 0x23b   : > { %v421_v30 = vpop.f32.mrb[0].mxu0 }
 0x23c   : > { %v513_v31 = vadd.f32 %v511_v29, %v421_v30  ;;  %v1795_v32 = vpop.f32.mrb[1].mxu0  ;;  %v503_v50 = vadd.f32 %v502_v48, %v421_v30 }
 0x23e   : > { %515 = vrot.lane.b32.xlu0 %v513_v31, %s2069_s5  ;;  %v1731_v52 = vmul.f32 -1.442695, %v503_v50 }
 0x23f   : > { %v496_v34 = vpop.f32.mrb[0].mxu1 }
 0x240   : > { %v546_v35 = vadd.f32 %v544_v33, %v496_v34  ;;  %v1806_v36 = vpop.f32.mrb[1].mxu1  ;;  %v536_v53 = vadd.f32 %v535_v51, %v496_v34  ;;  %1957 = vpow2.f32 %v1731_v52 }
 0x242   : > { %548 = vrot.lane.b32.xlu1 %v546_v35, %s2069_s5  ;;  %v1733_v54 = vmul.f32 -1.442695, %v536_v53 }
 0x244   : > { %1959 = vpow2.f32 %v1733_v54 }
 0x24a   : > { %v1958_v55 = vpop.eup %1957 }
 0x24b   : > { %v507_v56 = vadd.f32 1.0, %v1958_v55 }
 0x24d   : > { %1961 = vrcp.f32 %v507_v56 }
 0x24e   : > { %v1960_v57 = vpop.eup %1959 }
 0x24f   : > { %v540_v58 = vadd.f32 1.0, %v1960_v57 }
 0x251   : > { %1963 = vrcp.f32 %v540_v58 }
 0x257   : > { %v1962_v59 = vpop.eup %1961 }
 0x258   : > { %v525_v8 = vsub.f32 1.0, %v1962_v59  ;;  %v531_v10 = vmul.f32 %v2045_v19, %v1962_v59 }
 0x25b   : > { %v1964_v62 = vpop.eup %1963 }
 0x25c   : > { %v558_v13 = vsub.f32 1.0, %v1964_v62  ;;  %v564_v15 = vmul.f32 %v2041_v18, %v1964_v62 }
 0x2b0   : > { %v516_v60 = vpop.permute.xlu0 %515 }
 0x2b1   : > { %v518_v61 = vmul.f32 %v1962_v59, %v516_v60 }
 0x2b3   : > { %520 = vrot.lane.b32.xlu0 %v518_v61, %s2069_s5 }
 0x2b4   : > { %v549_v63 = vpop.permute.xlu1 %548 }
 0x2b5   : > { %v551_v0 = vmul.f32 %v1964_v62, %v549_v63 }
 0x2b7   : > { %553 = vrot.lane.b32.xlu1 %v551_v0, %s2069_s5 }
 0x325   : > { %v521_v1 = vpop.permute.xlu0 %520 }
 0x326   : > { %v523_v2 = vadd.f32 %v521_v1, %v502_v48 }
 0x328   : > { %1965 = vtanh.f32 %v523_v2 }
 0x329   : > { %v554_v3 = vpop.permute.xlu1 %553 }
 0x32a   : > { %v556_v5 = vadd.f32 %v554_v3, %v535_v51 }
 0x32c   : > { %1967 = vtanh.f32 %v556_v5 }
 0x332   : > { %v1966_v6 = vpop.eup %1965 }
 0x333   : > { %527 = vrot.lane.b32.xlu0 %v1966_v6, %s2066_s4 }
 0x336   : > { %v1968_v7 = vpop.eup %1967 }
 0x337   : > { %560 = vrot.lane.b32.xlu1 %v1968_v7, %s2066_s4 }
 0x3a5   : > { %v528_v9 = vpop.permute.xlu0 %527 }
 0x3a6   : > { %v530_v12 = vmul.f32 %v528_v9, %v525_v8 }
 0x3a8   : > { %v532_v19 = vadd.f32 %v531_v10, %v530_v12  }
 0x3a9   : > { %v561_v14 = vpop.permute.xlu1 %560 }
 0x3aa   : > { %v563_v16 = vmul.f32 %v561_v14, %v558_v13  ;;  %567 = vrot.lane.b32.xlu0 %v532_v19, %s2066_s4 }
 0x3ac   : > { %v565_v18 = vadd.f32 %v564_v15, %v563_v16  }
 0x3ae   : > { %574 = vrot.lane.b32.xlu1 %v565_v18, %s2066_s4 }
 0x41b   :  { %345 = sbr.rel (!%p343_p0) target bundleno = 243 (0xf3), region = 122 }
 0x41c   : > { %v568_v17 = vpop.permute.xlu0 %567 }
 0x41d   : > { %572 = vst.msk [vmem:[%s570_s29] sm:$0x3] %vm571_vm2, %v568_v17  ;;  %s2782_s29 = sld [smem:[#allocation8_spill]] (%p343_p0) }
 0x420   : > { %v575_v20 = vpop.permute.xlu1 %574 }
 0x421   : > { %578 = vst.msk [vmem:[%s577_s30] sm:$0x3] %vm571_vm2, %v575_v20 }
 0x424   :  { %v579_v21 = vld [vmem:[#allocation4] sm:$0x3]  ;;  %v581_v23 = vld [vmem:[#allocation4 + $0x4] sm:$0x3]  ;;  %v580_v27 = vld [vmem:[#allocation4 + $0x2] sm:$0x3] }
 0x425   :  { %v582_v31 = vld [vmem:[#allocation4 + $0x6] sm:$0x3]  ;;  %v583_v33 = vld [vmem:[#allocation4 + $0x8] sm:$0x3]  ;;  %v584_v37 = vld [vmem:[#allocation4 + $0xa] sm:$0x3] }
 0x426   :  { %v585_v43 = vld [vmem:[#allocation4 + $0xc] sm:$0x3]  ;;  %v586_v45 = vld [vmem:[#allocation4 + $0xe] sm:$0x3] }
 0x428   :  { %v587_v22 = vld [vmem:[#allocation5] sm:$0x3]  ;;  %v589_v26 = vld [vmem:[#allocation5 + $0x4] sm:$0x3]  ;;  %v588_v28 = vld [vmem:[#allocation5 + $0x2] sm:$0x3] }
 0x429   :  { %v595_v25 = vadd.f32 %v587_v22, %v579_v21  ;;  %v597_v29 = vadd.f32 %v589_v26, %v581_v23  ;;  %v596_v30 = vadd.f32 %v588_v28, %v580_v27  ;;  %v590_v32 = vld [vmem:[#allocation5 + $0x6] sm:$0x3]  ;;  %v591_v35 = vld [vmem:[#allocation5 + $0x8] sm:$0x3]  ;;  %v592_v39 = vld [vmem:[#allocation5 + $0xa] sm:$0x3] }
 0x42a   :  { %v598_v34 = vadd.f32 %v590_v32, %v582_v31  ;;  %v599_v40 = vadd.f32 %v591_v35, %v583_v33  ;;  %v600_v42 = vadd.f32 %v592_v39, %v584_v37  ;;  %v593_v44 = vld [vmem:[#allocation5 + $0xc] sm:$0x3]  ;;  %v594_v46 = vld [vmem:[#allocation5 + $0xe] sm:$0x3]  ;;  %v755_v37 = vld [vmem:[%s2781_s7] sm:$0xff] }
 0x42b   :  { %v604_v19 = vsel %vm571_vm2, %v595_v25, 0.0  ;;  %v610_v38 = vsel %vm571_vm2, %v597_v29, 0.0  ;;  %v607_v4 = vsel %vm571_vm2, %v596_v30, 0.0  ;;  %v601_v36 = vadd.f32 %v593_v44, %v585_v43  ;;  %v761_v43 = vld [vmem:[%s2781_s7 + $0x30] sm:$0xff] }
 0x42c   :  { %605 = vadd.xlane.f32.xlu0 %v604_v19  ;;  %611 = vadd.xlane.f32.xlu1 %v610_v38  ;;  %v613_v41 = vsel %vm571_vm2, %v598_v34, 0.0  ;;  %v616_v18 = vsel %vm571_vm2, %v599_v40, 0.0  ;;  %v619_v48 = vsel %vm571_vm2, %v600_v42, 0.0  ;;  %v602_v50 = vadd.f32 %v594_v46, %v586_v45  ;;  %v756_v19 = vld [vmem:[%s2781_s7 + $0x8] sm:$0xff]  ;;  %v757_v38 = vld [vmem:[%s2781_s7 + $0x10] sm:$0xff] }
 0x42d   :  { %v622_v51 = vsel %vm571_vm2, %v601_v36, 0.0  ;;  %v1862_v39 = vpack.c.bf16 %v757_v38, %v755_v37 }
 0x42e   :  { %v625_v52 = vsel %vm571_vm2, %v602_v50, 0.0 }
 0x430   :  { %608 = vadd.xlane.f32.xlu0 %v607_v4  ;;  %614 = vadd.xlane.f32.xlu1 %v613_v41  ;;  %v760_v4 = vld [vmem:[%s2781_s7 + $0x28] sm:$0xff]  ;;  %v759_v41 = vld [vmem:[%s2781_s7 + $0x20] sm:$0xff] }
 0x431   :  { %v1866_v44 = vpack.c.bf16 %v761_v43, %v759_v41 }
 0x434   :  { %617 = vadd.xlane.f32.xlu0 %v616_v18  ;;  %620 = vadd.xlane.f32.xlu1 %v619_v48 }
 0x438   :  { %623 = vadd.xlane.f32.xlu0 %v622_v51  ;;  %626 = vadd.xlane.f32.xlu1 %v625_v52 }
 0x4b9   :  { %v606_v53 = vpop.xlane.xlu0 %605  ;;  %v612_v55 = vpop.xlane.xlu1 %611 }
 0x4ba   :  { %v629_v54 = vmul.f32 0.03125, %v606_v53  ;;  %v631_v56 = vmul.f32 0.03125, %v612_v55 }
 0x4bc   :  { %v2381_v57 = vsub.f32 %v595_v25, %v629_v54  ;;  %v2383_v58 = vsub.f32 %v597_v29, %v631_v56 }
 0x4bd   :  { %v609_v59 = vpop.xlane.xlu0 %608  ;;  %v615_v61 = vpop.xlane.xlu1 %614 }
 0x4be   :  { %v630_v60 = vmul.f32 0.03125, %v609_v59  ;;  %v645_v62 = vmul.f32 %v2381_v57, %v2381_v57  ;;  %v632_v63 = vmul.f32 0.03125, %v615_v61  ;;  %v647_v0 = vmul.f32 %v2383_v58, %v2383_v58 }
 0x4c0   :  { %v2389_v1 = vsub.f32 %v596_v30, %v630_v60  ;;  %v653_v2 = vsel %vm571_vm2, %v645_v62, 0.0  ;;  %v2392_v3 = vsub.f32 %v598_v34, %v632_v63  ;;  %v659_v8 = vsel %vm571_vm2, %v647_v0, 0.0  ;;  %v758_v34 = vld [vmem:[%s2781_s7 + $0x18] sm:$0xff] }
 0x4c1   :  { %654 = vadd.xlane.f32.xlu0 %v653_v2  ;;  %v618_v5 = vpop.xlane.xlu0 %617  ;;  %v621_v7 = vpop.xlane.xlu1 %620  ;;  %v1860_v35 = vpack.c.bf16 %v758_v34, %v756_v19 }
 0x4c2   :  { %v633_v6 = vmul.f32 0.03125, %v618_v5  ;;  %v646_v9 = vmul.f32 %v2389_v1, %v2389_v1  ;;  %v634_v10 = vmul.f32 0.03125, %v621_v7  ;;  %v648_v12 = vmul.f32 %v2392_v3, %v2392_v3 }
 0x4c3   :  { %1861 = vmatprep.subr.bf16.mxu0 %v1860_v35  ;;  %1892 = vmatprep.subr.bf16.mxu1 %v1860_v35 }
 0x4c4   :  { %v2399_v13 = vsub.f32 %v599_v40, %v633_v6  ;;  %v656_v14 = vsel %vm571_vm2, %v646_v9, 0.0  ;;  %v2402_v15 = vsub.f32 %v600_v42, %v634_v10  ;;  %v662_v21 = vsel %vm571_vm2, %v648_v12, 0.0  ;;  %1863 = vmatpush1.bf16.msra.mxu0 %v1862_v39  ;;  %v762_v40 = vld [vmem:[%s2781_s7 + $0x38] sm:$0xff]  ;;  %1894 = vmatpush1.bf16.msra.mxu1 %v1862_v39  ;;  %v1734_v6 = vld [vmem:[%s2782_s29] ss:$0 sm:$0xff] }
 0x4c5   :  { %660 = vadd.xlane.f32.xlu0 %v659_v8  ;;  %657 = vadd.xlane.f32.xlu1 %v656_v14  ;;  %v624_v16 = vpop.xlane.xlu0 %623  ;;  %v627_v20 = vpop.xlane.xlu1 %626  ;;  %v1864_v42 = vpack.c.bf16 %v762_v40, %v760_v4  ;;  %v1735_v12 = vld [vmem:[%s2783_s21] ss:$0 sm:$0xff] }
 0x4c6   :  { %v635_v17 = vmul.f32 0.03125, %v624_v16  ;;  %v649_v22 = vmul.f32 %v2399_v13, %v2399_v13  ;;  %v636_v23 = vmul.f32 0.03125, %v627_v20  ;;  %v650_v25 = vmul.f32 %v2402_v15, %v2402_v15 }
 0x4c7   :  { %1865 = vmatprep.subr.bf16.mxu0 %v1864_v42  ;;  %1893 = vmatprep.subr.bf16.mxu1 %v1864_v42 }
 0x4c8   :  { %v2409_v26 = vsub.f32 %v601_v36, %v635_v17  ;;  %v665_v27 = vsel %vm571_vm2, %v649_v22, 0.0  ;;  %v2412_v28 = vsub.f32 %v602_v50, %v636_v23  ;;  %v668_v29 = vsel %vm571_vm2, %v650_v25, 0.0  ;;  %1867 = vmatpush1.bf16.msra.mxu0 %v1866_v44  ;;  %1895 = vmatpush1.bf16.msra.mxu1 %v1866_v44 }
 0x4c9   :  { %663 = vadd.xlane.f32.xlu1 %v662_v21  ;;  %666 = vadd.xlane.f32.xlu0 %v665_v27 }
 0x4ca   :  { %v651_v30 = vmul.f32 %v2409_v26, %v2409_v26  ;;  %v652_v31 = vmul.f32 %v2412_v28, %v2412_v28 }
 0x4cc   :  { %v671_v32 = vsel %vm571_vm2, %v651_v30, 0.0  ;;  %v674_v33 = vsel %vm571_vm2, %v652_v31, 0.0 }
 0x4cd   :  { %669 = vadd.xlane.f32.xlu1 %v668_v29  ;;  %672 = vadd.xlane.f32.xlu0 %v671_v32 }
 0x4d1   :  { %675 = vadd.xlane.f32.xlu1 %v674_v33 }
 0x54e   :  { %v655_v45 = vpop.xlane.xlu0 %654 }
 0x54f   :  { %v677_v46 = vmul.f32 0.03125, %v655_v45 }
 0x551   :  { %v685_v18 = vadd.f32 1e-05, %v677_v46 }
 0x552   :  { %v658_v36 = vpop.xlane.xlu1 %657  ;;  %v661_v48 = vpop.xlane.xlu0 %660 }
 0x553   :  { %1969 = vrsqrt.f32 %v685_v18  ;;  %v678_v50 = vmul.f32 0.03125, %v658_v36  ;;  %v679_v51 = vmul.f32 0.03125, %v661_v48 }
 0x555   :  { %v686_v52 = vadd.f32 1e-05, %v678_v50  ;;  %v687_v53 = vadd.f32 1e-05, %v679_v51 }
 0x556   :  { %v664_v54 = vpop.xlane.xlu1 %663  ;;  %v667_v55 = vpop.xlane.xlu0 %666 }
 0x557   :  { %1971 = vrsqrt.f32 %v686_v52  ;;  %v680_v56 = vmul.f32 0.03125, %v664_v54  ;;  %v681_v59 = vmul.f32 0.03125, %v667_v55 }
 0x558   :  { %1973 = vrsqrt.f32 %v687_v53 }
 0x559   :  { %v688_v60 = vadd.f32 1e-05, %v680_v56  ;;  %v689_v61 = vadd.f32 1e-05, %v681_v59 }
 0x55a   :  { %v670_v62 = vpop.xlane.xlu1 %669  ;;  %v673_v63 = vpop.xlane.xlu0 %672 }
 0x55b   :  { %1975 = vrsqrt.f32 %v688_v60  ;;  %v682_v0 = vmul.f32 0.03125, %v670_v62  ;;  %v683_v2 = vmul.f32 0.03125, %v673_v63  ;;  %v2476_v63 = vld [vmem:[%s2784_s24] sm:$0xff] }
 0x55c   :  { %1977 = vrsqrt.f32 %v689_v61 }
 0x55d   :  { %v1970_v5 = vpop.eup %1969  ;;  %v690_v7 = vadd.f32 1e-05, %v682_v0  ;;  %v691_v8 = vadd.f32 1e-05, %v683_v2  ;;  %v2481_v0 = vld [vmem:[%s2784_s24 + $0x8] sm:$0xff]  ;;  %v2486_v2 = vld [vmem:[%s2784_s24 + $0x10] sm:$0xff] }
 0x55e   :  { %v701_v9 = vmul.f32 %v1970_v5, %v2381_v57  ;;  %v676_v10 = vpop.xlane.xlu1 %675  ;;  %v2491_v5 = vld [vmem:[%s2784_s24 + $0x18] sm:$0xff] }
 0x55f   :  { %1979 = vrsqrt.f32 %v690_v7  ;;  %v684_v14 = vmul.f32 0.03125, %v676_v10  ;;  %v2501_v7 = vld [vmem:[%s2756_s11 + $0x8] sm:$0xff]  ;;  %v2516_v10 = vld [vmem:[%s2758_s13] ss:$0 sm:$0xff] }
 0x560   :  { %v716_v16 = vmul.f32 %v1734_v6, %v701_v9  ;;  %1981 = vrsqrt.f32 %v691_v8  ;;  %v2506_v8 = vld [vmem:[%s2756_s11 + $0x10] sm:$0xff]  ;;  %v2511_v9 = vld [vmem:[%s2756_s11 + $0x18] sm:$0xff] }
 0x561   :  { %v1972_v17 = vpop.eup %1971  ;;  %v692_v20 = vadd.f32 1e-05, %v684_v14  ;;  %v763_v14 = vld [vmem:[%s2757_s12] sm:$0x3] }
 0x562   :  { %v1974_v21 = vpop.eup %1973  ;;  %v731_v22 = vadd.f32 %v1735_v12, %v716_v16  ;;  %v702_v23 = vmul.f32 %v1972_v17, %v2389_v1  ;;  %v768_v16 = vrot.slane %v763_v14, %v85_v47  ;;  %v772_v17 = vrot.slane %v763_v14, %v89_v49 }
 0x563   :  { %v703_v25 = vmul.f32 %v1974_v21, %v2383_v58  ;;  %1983 = vrsqrt.f32 %v692_v20 }
 0x564   :  { %739 = vst.msk [vmem:[#allocation6] sm:$0x3] %vm571_vm2, %v731_v22  ;;  %v717_v57 = vmul.f32 %v1734_v6, %v702_v23 }
 0x565   :  { %v1976_v27 = vpop.eup %1975  ;;  %v718_v29 = vmul.f32 %v1734_v6, %v703_v25 }
 0x566   :  { %v1978_v30 = vpop.eup %1977  ;;  %v732_v31 = vadd.f32 %v1735_v12, %v717_v57  ;;  %v704_v32 = vmul.f32 %v1976_v27, %v2392_v3 }
 0x567   :  { %v733_v33 = vadd.f32 %v1735_v12, %v718_v29  ;;  %v705_v19 = vmul.f32 %v1978_v30, %v2399_v13 }
 0x568   :  { %740 = vst.msk [vmem:[#allocation6 + $0x2] sm:$0x3] %vm571_vm2, %v732_v31  ;;  %v719_v34 = vmul.f32 %v1734_v6, %v704_v32 }
 0x569   :  { %v1980_v35 = vpop.eup %1979  ;;  %741 = vst.msk [vmem:[#allocation6 + $0x4] sm:$0x3] %vm571_vm2, %v733_v33  ;;  %v720_v58 = vmul.f32 %v1734_v6, %v705_v19 }
 0x56a   :  { %v1982_v1 = vpop.eup %1981  ;;  %v734_v37 = vadd.f32 %v1735_v12, %v719_v34  ;;  %v706_v38 = vmul.f32 %v1980_v35, %v2402_v15 }
 0x56b   :  { %v735_v39 = vadd.f32 %v1735_v12, %v720_v58  ;;  %v707_v4 = vmul.f32 %v1982_v1, %v2409_v26  ;;  %v747_v15 = vld [vmem:[#allocation6] sm:$0x3] }
 0x56c   :  { %742 = vst.msk [vmem:[#allocation6 + $0x6] sm:$0x3] %vm571_vm2, %v734_v37  ;;  %v721_v3 = vmul.f32 %v1734_v6, %v706_v38 }
 0x56d   :  { %v1984_v40 = vpop.eup %1983  ;;  %743 = vst.msk [vmem:[#allocation6 + $0x8] sm:$0x3] %vm571_vm2, %v735_v39  ;;  %v722_v13 = vmul.f32 %v1734_v6, %v707_v4 }
 0x56e   :  { %v736_v41 = vadd.f32 %v1735_v12, %v721_v3  ;;  %v708_v42 = vmul.f32 %v1984_v40, %v2412_v28 }
 0x56f   :  { %v737_v43 = vadd.f32 %v1735_v12, %v722_v13  ;;  %v748_v44 = vld [vmem:[#allocation6 + $0x2] sm:$0x3] }
 0x570   :  { %744 = vst.msk [vmem:[#allocation6 + $0xa] sm:$0x3] %vm571_vm2, %v736_v41  ;;  %v723_v45 = vmul.f32 %v1734_v6, %v708_v42  ;;  %v783_v26 = vcombine.low %v747_v15, %v748_v44  ;;  %v749_v18 = vld [vmem:[#allocation6 + $0x4] sm:$0x3]  ;;  %v2538_v42 = vmov 0.0  }
 0x571   :  { %745 = vst.msk [vmem:[#allocation6 + $0xc] sm:$0x3] %vm571_vm2, %v737_v43  ;;  %v2496_v6 = vld [vmem:[%s2756_s11] sm:$0xff]  ;;  %v2540_v43 = vmov 0.0   ;;  %s2542_s11 = smov 0  }
 0x572   :  { %v738_v46 = vadd.f32 %v1735_v12, %v723_v45  ;;  %v791_v50 = vrot.slane %v783_v26, %v2222_v24  ;;  %v2521_v12 = vld [vmem:[%s2759_s14] ss:$0 sm:$0xff] }
 0x573   :  { %v750_v36 = vld [vmem:[#allocation6 + $0x6] sm:$0x3] }
 0x574   :  { %746 = vst.msk [vmem:[#allocation6 + $0xe] sm:$0x3] %vm571_vm2, %v738_v46  ;;  %v784_v48 = vcombine.low %v749_v18, %v750_v36  ;;  %v751_v53 = vld [vmem:[#allocation6 + $0x8] sm:$0x3] }
 0x576   :  { %v798_v51 = vrot.slane %v784_v48, %v2222_v24 }
 0x577   :  { %v752_v28 = vld [vmem:[#allocation6 + $0xa] sm:$0x3] }
 0x578   :  { %v799_v52 = vcombine.low %v791_v50, %v798_v51  ;;  %v800_v54 = vcombine.low %v751_v53, %v752_v28  ;;  %v753_v55 = vld [vmem:[#allocation6 + $0xc] sm:$0x3] }
 0x57a   :  { %1736 = vmatmul.mubr.msk.f32.vlgmr.msra.gmra.mrb[0].mxu0 %vm135_vm0, %v799_v52  ;;  %v808_v60 = vrot.slane %v800_v54, %v2222_v24 }
 0x57b   :  { %v754_v56 = vld [vmem:[#allocation6 + $0xe] sm:$0x3] }
 0x57c   :  { %v801_v59 = vcombine.low %v753_v55, %v754_v56 }
 0x57e   :  { %v815_v61 = vrot.slane %v801_v59, %v2222_v24 }
 0x580   :  { %v816_v62 = vcombine.low %v808_v60, %v815_v61 }
 0x582   :  { %1737 = vmatmul.mubr.msk.f32.vlgmr.msra.gmra.mrb[0].mxu1 %vm135_vm0, %v816_v62 }
 0x64d   :  { %v887_v20 = vpop.f32.mrb[0].mxu0 }
 0x64e   :  { %v888_v21 = vadd.f32 %v887_v20, %v768_v16  ;;  %v889_v22 = vpop.f32.mrb[1].mxu0 }
 0x64f   :  { %v890_v23 = vadd.f32 %v889_v22, %v772_v17 }
 0x650   :  { %v900_v25 = vcombine.high %v888_v21, %v888_v21  ;;  %v907_v57 = vrot.slane %v888_v21, %v2222_v24  ;;  %1738 = vst.sshfl [vmem:[#allocation2] sm:$0x3 pattern:$0x76325410] %v888_v21 }
 0x651   :  { %v952_v27 = vcombine.high %v890_v23, %v890_v23  ;;  %v959_v29 = vrot.slane %v890_v23, %v2222_v24  ;;  %1742 = vst.sshfl [vmem:[#allocation3] sm:$0x3 pattern:$0x76325410] %v890_v23 }
 0x652   :  { %v914_v30 = vrot.slane %v900_v25, %v2222_v24  ;;  %v915_v31 = vcombine.high %v907_v57, %v907_v57  ;;  %1739 = vst.sshfl [vmem:[#allocation2 + $0x4] sm:$0x3 pattern:$0x76325410] %v900_v25 }
 0x653   :  { %v966_v47 = vrot.slane %v952_v27, %v2222_v24  ;;  %v967_v11 = vcombine.high %v959_v29, %v959_v29  ;;  %1743 = vst.sshfl [vmem:[#allocation3 + $0x4] sm:$0x3 pattern:$0x76325410] %v952_v27 }
 0x654   :  { %v916_v49 = vcombine.high %v914_v30, %v914_v30  ;;  %943 = vst [vmem:[#allocation2 + $0x2] sm:$0x3] %v915_v31 }
 0x655   :  { %v968_v32 = vcombine.high %v966_v47, %v966_v47  ;;  %995 = vst [vmem:[#allocation3 + $0x2] sm:$0x3] %v967_v11  ;;  %v893_v33 = vpop.f32.mrb[0].mxu1 }
 0x656   :  { %945 = vst [vmem:[#allocation2 + $0x6] sm:$0x3] %v916_v49  ;;  %v894_v19 = vadd.f32 %v893_v33, %v768_v16  ;;  %v895_v34 = vpop.f32.mrb[1].mxu1 }
 0x657   :  { %997 = vst [vmem:[#allocation3 + $0x6] sm:$0x3] %v968_v32  ;;  %v896_v35 = vadd.f32 %v895_v34, %v772_v17 }
 0x658   :  { %v917_v58 = vcombine.high %v894_v19, %v894_v19  ;;  %v924_v1 = vrot.slane %v894_v19, %v2222_v24  ;;  %1740 = vst.sshfl [vmem:[#allocation2 + $0x8] sm:$0x3 pattern:$0x76325410] %v894_v19 }
 0x659   :  { %v969_v37 = vcombine.high %v896_v35, %v896_v35  ;;  %v976_v38 = vrot.slane %v896_v35, %v2222_v24  ;;  %1744 = vst.sshfl [vmem:[#allocation3 + $0x8] sm:$0x3 pattern:$0x76325410] %v896_v35 }
 0x65a   :  { %v931_v39 = vrot.slane %v917_v58, %v2222_v24  ;;  %v932_v4 = vcombine.high %v924_v1, %v924_v1  ;;  %1741 = vst.sshfl [vmem:[#allocation2 + $0xc] sm:$0x3 pattern:$0x76325410] %v917_v58 }
 0x65b   :  { %v983_v3 = vrot.slane %v969_v37, %v2222_v24  ;;  %v984_v40 = vcombine.high %v976_v38, %v976_v38  ;;  %1745 = vst.sshfl [vmem:[#allocation3 + $0xc] sm:$0x3 pattern:$0x76325410] %v969_v37 }
 0x65c   :  { %v933_v13 = vcombine.high %v931_v39, %v931_v39  ;;  %947 = vst [vmem:[#allocation2 + $0xa] sm:$0x3] %v932_v4 }
 0x65d   :  { %v985_v41 = vcombine.high %v983_v3, %v983_v3  ;;  %999 = vst [vmem:[#allocation3 + $0xa] sm:$0x3] %v984_v40 }
 0x65e   :  { %949 = vst [vmem:[#allocation2 + $0xe] sm:$0x3] %v933_v13 }
 0x65f   :  { %1001 = vst [vmem:[#allocation3 + $0xe] sm:$0x3] %v985_v41 }
 0x660 LB: > { %v1869_v44 = vpack.c.bf16 %v2481_v0, %v2476_v63  ;;  %v2070_v45 = vmov 0.0|0.0   ;;  %v1875_v15 = vpack.c.bf16 %v2501_v7, %v2496_v6  ;;  %s2071_s12 = smov 96   ;;  %v1872_v46 = vpack.c.bf16 %v2491_v5, %v2486_v2  ;;  %s2074_s13 = smov 64   ;;  %s2061_s11 = sphi %s2542_s11, %s1027_s11   ;;  %v2057_v43 = vphi %v2540_v43, %v1213_v43   ;;  %v2053_v42 = vphi %v2538_v42, %v1246_v42  }
 0x661   : > { %1868 = vmatprep.subr.bf16.mxu0 %v2070_v45  ;;  %1874 = vmatprep.subr.bf16.mxu1 %v2070_v45  ;;  %v1878_v26 = vpack.c.bf16 %v2511_v9, %v2506_v8  ;;  %vm2072_vm3 = vmmov 0   ;;  %v2073_v18 = vmov 0.0   ;;  %s1750_s14 = sshll.u32 %s2061_s11, 1  ;;  %s1030_s24 = ssub.s32 7, %s2061_s11 }
 0x662   : > { %1032 = vrot.lane.b32.xlu0 %v2057_v43, %s2071_s12  ;;  %1870 = vmatpush3.bf16.msra.mxu0 %v1869_v44  ;;  %s2575_s2 = sshll.u32 %s1030_s24, 1  ;;  %s1182_s0 = scalar_lea.vmem [#allocation2], %s1750_s14 }
 0x663   : > { %1871 = vmatprep.subr.bf16.mxu0 %v2070_v45  ;;  %1876 = vmatpush3.bf16.msra.mxu1 %v1875_v15  ;;  %s1215_s8 = scalar_lea.vmem [#allocation3], %s2575_s2  ;;  %s1251_s25 = scalar_lea.vmem [#allocation4], %s1750_s14 }
 0x664   : > { %1815 = vmatprep.mubr.msk.f32.mxu0 %vm2072_vm3, %v2073_v18  ;;  %1877 = vmatprep.subr.bf16.mxu1 %v2070_v45  ;;  %s1257_s9 = scalar_lea.vmem [#allocation5], %s2575_s2  ;;  %s1027_s11 = sadd.s32 1, %s2061_s11  }
 0x665   : > { %1826 = vmatprep.mubr.msk.f32.mxu1 %vm2072_vm3, %v2073_v18  ;;  %1191 = vrot.lane.b32.xlu1 %v2516_v10, %s2074_s13  ;;  %v1183_v59 = vld [vmem:[%s1182_s0] sm:$0x3]  ;;  %p1024_p1 = scmp.ge.s32.totalorder %s1027_s11, 8  }
 0x666   : > { %1107 = vrot.lane.b32.xlu0 %v2053_v42, %s2071_s12  ;;  %1873 = vmatpush3.bf16.msra.mxu0 %v1872_v46  ;;  %v1216_v61 = vld [vmem:[%s1215_s8] sm:$0x3]  ;;  %vm1665_vm4 = vcmask (%p1024_p1), 123904  }
 0x667   : > { %1879 = vmatpush3.bf16.msra.mxu1 %v1878_v26 }
 0x669   : > { %1224 = vrot.lane.b32.xlu1 %v2521_v12, %s2074_s13 }
 0x6d4   : > { %v1033_v36 = vpop.permute.xlu0 %1032 }
 0x6d5   : > { %1816 = vmatmul.mubr.msk.f32.vlgmr.msra.gmra.mrb[0].mxu0 %vm135_vm0, %v1033_v36 }
 0x6d7   : > { %v1192_v50 = vpop.permute.xlu1 %1191 }
 0x6d8   : > { %v1108_v48 = vpop.permute.xlu0 %1107 }
 0x6d9   : > { %1827 = vmatmul.mubr.msk.f32.vlgmr.msra.gmra.mrb[0].mxu1 %vm135_vm0, %v1108_v48 }
 0x6db   : > { %v1225_v53 = vpop.permute.xlu1 %1224 }
 0x7a8   : > { %v1102_v51 = vpop.f32.mrb[0].mxu0 }
 0x7a9   : > { %v1194_v28 = vadd.f32 %v1192_v50, %v1102_v51  ;;  %v1817_v52 = vpop.f32.mrb[1].mxu0  ;;  %v1184_v60 = vadd.f32 %v1183_v59, %v1102_v51 }
 0x7ab   : > { %1196 = vrot.lane.b32.xlu0 %v1194_v28, %s2074_s13  ;;  %v1751_v62 = vmul.f32 -1.442695, %v1184_v60 }
 0x7ac   : > { %v1177_v54 = vpop.f32.mrb[0].mxu1 }
 0x7ad   : > { %v1227_v55 = vadd.f32 %v1225_v53, %v1177_v54  ;;  %v1828_v56 = vpop.f32.mrb[1].mxu1  ;;  %v1217_v14 = vadd.f32 %v1216_v61, %v1177_v54  ;;  %1985 = vpow2.f32 %v1751_v62 }
 0x7af   : > { %1229 = vrot.lane.b32.xlu1 %v1227_v55, %s2074_s13  ;;  %v1753_v16 = vmul.f32 -1.442695, %v1217_v14 }
 0x7b1   : > { %1987 = vpow2.f32 %v1753_v16 }
 0x7b7   : > { %v1986_v17 = vpop.eup %1985 }
 0x7b8   : > { %v1188_v20 = vadd.f32 1.0, %v1986_v17 }
 0x7ba   : > { %1989 = vrcp.f32 %v1188_v20 }
 0x7bb   : > { %v1988_v21 = vpop.eup %1987 }
 0x7bc   : > { %v1221_v22 = vadd.f32 1.0, %v1988_v21 }
 0x7be   : > { %1991 = vrcp.f32 %v1221_v22 }
 0x7c4   : > { %v1990_v23 = vpop.eup %1989 }
 0x7c5   : > { %v1206_v19 = vsub.f32 1.0, %v1990_v23  ;;  %v1212_v35 = vmul.f32 %v2057_v43, %v1990_v23 }
 0x7c8   : > { %v1992_v27 = vpop.eup %1991 }
 0x7c9   : > { %v1239_v1 = vsub.f32 1.0, %v1992_v27  ;;  %v1245_v38 = vmul.f32 %v2053_v42, %v1992_v27 }
 0x81d   : > { %v1197_v25 = vpop.permute.xlu0 %1196 }
 0x81e   : > { %v1199_v57 = vmul.f32 %v1990_v23, %v1197_v25 }
 0x820   : > { %1201 = vrot.lane.b32.xlu0 %v1199_v57, %s2074_s13 }
 0x821   : > { %v1230_v29 = vpop.permute.xlu1 %1229 }
 0x822   : > { %v1232_v30 = vmul.f32 %v1992_v27, %v1230_v29 }
 0x824   : > { %1234 = vrot.lane.b32.xlu1 %v1232_v30, %s2074_s13 }
 0x892   : > { %v1202_v31 = vpop.permute.xlu0 %1201 }
 0x893   : > { %v1204_v47 = vadd.f32 %v1202_v31, %v1183_v59 }
 0x895   : > { %1993 = vtanh.f32 %v1204_v47 }
 0x896   : > { %v1235_v11 = vpop.permute.xlu1 %1234 }
 0x897   : > { %v1237_v49 = vadd.f32 %v1235_v11, %v1216_v61 }
 0x899   : > { %1995 = vtanh.f32 %v1237_v49 }
 0x89f   : > { %v1994_v32 = vpop.eup %1993 }
 0x8a0   : > { %1208 = vrot.lane.b32.xlu0 %v1994_v32, %s2071_s12 }
 0x8a3   : > { %v1996_v33 = vpop.eup %1995 }
 0x8a4   : > { %1241 = vrot.lane.b32.xlu1 %v1996_v33, %s2071_s12 }
 0x912   : > { %v1209_v34 = vpop.permute.xlu0 %1208 }
 0x913   : > { %v1211_v58 = vmul.f32 %v1209_v34, %v1206_v19 }
 0x915   : > { %v1213_v43 = vadd.f32 %v1212_v35, %v1211_v58  }
 0x916   : > { %v1242_v37 = vpop.permute.xlu1 %1241 }
 0x917   : > { %v1244_v39 = vmul.f32 %v1242_v37, %v1239_v1  ;;  %1248 = vrot.lane.b32.xlu0 %v1213_v43, %s2071_s12 }
 0x919   : > { %v1246_v42 = vadd.f32 %v1245_v38, %v1244_v39  }
 0x91b   : > { %1254 = vrot.lane.b32.xlu1 %v1246_v42, %s2071_s12 }
 0x988   :  { %1026 = sbr.rel (!%p1024_p1) target bundleno = 1632 (0x660), region = 133 }
 0x989   : > { %v1249_v4 = vpop.permute.xlu0 %1248 }
 0x98a   : > { %1252 = vst.msk [vmem:[%s1251_s25] sm:$0x3] %vm571_vm2, %v1249_v4 }
 0x98d   : > { %v1255_v3 = vpop.permute.xlu1 %1254 }
 0x98e   : > { %1258 = vst.msk [vmem:[%s1257_s9] sm:$0x3] %vm571_vm2, %v1255_v3 }
 0x991   :  { %v1259_v40 = vld [vmem:[#allocation4] sm:$0x3]  ;;  %v1261_v41 = vld [vmem:[#allocation4 + $0x4] sm:$0x3]  ;;  %v1260_v15 = vld [vmem:[#allocation4 + $0x2] sm:$0x3] }
 0x992   :  { %v1262_v36 = vld [vmem:[#allocation4 + $0x6] sm:$0x3]  ;;  %v1263_v50 = vld [vmem:[#allocation4 + $0x8] sm:$0x3]  ;;  %v1264_v43 = vld [vmem:[#allocation4 + $0xa] sm:$0x3] }
 0x993   :  { %v1265_v7 = vld [vmem:[#allocation4 + $0xc] sm:$0x3]  ;;  %v1266_v9 = vld [vmem:[#allocation4 + $0xe] sm:$0x3] }
 0x995   :  { %v1267_v13 = vld [vmem:[#allocation5] sm:$0x3]  ;;  %v1269_v45 = vld [vmem:[#allocation5 + $0x4] sm:$0x3]  ;;  %v1268_v46 = vld [vmem:[#allocation5 + $0x2] sm:$0x3] }
 0x996   :  { %v1275_v44 = vadd.f32 %v1267_v13, %v1259_v40  ;;  %v1277_v26 = vadd.f32 %v1269_v45, %v1261_v41  ;;  %v1276_v18 = vadd.f32 %v1268_v46, %v1260_v15  ;;  %v1270_v48 = vld [vmem:[#allocation5 + $0x6] sm:$0x3]  ;;  %v1271_v52 = vld [vmem:[#allocation5 + $0x8] sm:$0x3]  ;;  %v1272_v63 = vld [vmem:[#allocation5 + $0xa] sm:$0x3] }
 0x997   :  { %v1278_v28 = vadd.f32 %v1270_v48, %v1262_v36  ;;  %v1279_v2 = vadd.f32 %v1271_v52, %v1263_v50  ;;  %v1280_v6 = vadd.f32 %v1272_v63, %v1264_v43  ;;  %v1273_v8 = vld [vmem:[#allocation5 + $0xc] sm:$0x3]  ;;  %v1274_v10 = vld [vmem:[#allocation5 + $0xe] sm:$0x3]  ;;  %v1433_v36 = vld [vmem:[%s2763_s18] sm:$0xff] }
 0x998   :  { %v1283_v51 = vsel %vm571_vm2, %v1275_v44, 0.0  ;;  %v1289_v53 = vsel %vm571_vm2, %v1277_v26, 0.0  ;;  %v1286_v0 = vsel %vm571_vm2, %v1276_v18, 0.0  ;;  %v1281_v42 = vadd.f32 %v1273_v8, %v1265_v7  ;;  %v1434_v48 = vld [vmem:[%s2763_s18 + $0x8] sm:$0xff]  ;;  %v1610_v43 = vld [vmem:[%s2762_s17 + $0x2] sm:$0x3] }
 0x999   :  { %1284 = vadd.xlane.f32.xlu0 %v1283_v51  ;;  %1290 = vadd.xlane.f32.xlu1 %v1289_v53  ;;  %v1292_v5 = vsel %vm571_vm2, %v1278_v28, 0.0  ;;  %v1295_v12 = vsel %vm571_vm2, %v1279_v2, 0.0  ;;  %v1298_v54 = vsel %vm571_vm2, %v1280_v6, 0.0  ;;  %v1282_v55 = vadd.f32 %v1274_v10, %v1266_v9  ;;  %v1435_v51 = vld [vmem:[%s2763_s18 + $0x10] sm:$0xff]  ;;  %v1609_v63 = vld [vmem:[%s2762_s17] sm:$0x3] }
 0x99a   :  { %v1301_v56 = vsel %vm571_vm2, %v1281_v42, 0.0  ;;  %v1880_v50 = vpack.c.bf16 %v1434_v48, %v1433_v36  ;;  %v2075_v53 = vmov 0   ;;  %v1615_v7 = vld [vmem:[%s2762_s17 + $0xc] sm:$0x3]  ;;  %v1616_v8 = vld [vmem:[%s2762_s17 + $0xe] sm:$0x3] }
 0x99b   :  { %v1304_v59 = vsel %vm571_vm2, %v1282_v55, 0.0  ;;  %1998 = vset.pattern.permute.xlu1 %v2075_v53  ;;  %1997 = vset.pattern.permute.xlu0 %v2075_v53 }
 0x99c   :  { %1881 = vmatprep.subr.bf16.mxu0 %v1880_v50 }
 0x99d   :  { %1287 = vadd.xlane.f32.xlu0 %v1286_v0  ;;  %1293 = vadd.xlane.f32.xlu1 %v1292_v5  ;;  %v1611_v0 = vld [vmem:[%s2762_s17 + $0x4] sm:$0x3]  ;;  %v1613_v5 = vld [vmem:[%s2762_s17 + $0x8] sm:$0x3] }
 0x99e   :  { %1883 = vmatpush3.bf16.msra.mxu0 %v1880_v50 }
 0x9a1   :  { %1296 = vadd.xlane.f32.xlu0 %v1295_v12  ;;  %1299 = vadd.xlane.f32.xlu1 %v1298_v54 }
 0x9a5   :  { %1302 = vadd.xlane.f32.xlu0 %v1301_v56  ;;  %1305 = vadd.xlane.f32.xlu1 %v1304_v59 }
 0xa26   :  { %v1285_v60 = vpop.xlane.xlu0 %1284  ;;  %v1291_v62 = vpop.xlane.xlu1 %1290 }
 0xa27   :  { %v1307_v61 = vmul.f32 0.03125, %v1285_v60  ;;  %v1309_v14 = vmul.f32 0.03125, %v1291_v62 }
 0xa29   :  { %v2608_v16 = vsub.f32 %v1275_v44, %v1307_v61  ;;  %v2610_v17 = vsub.f32 %v1277_v26, %v1309_v14 }
 0xa2a   :  { %v1288_v20 = vpop.xlane.xlu0 %1287  ;;  %v1294_v22 = vpop.xlane.xlu1 %1293 }
 0xa2b   :  { %v1308_v21 = vmul.f32 0.03125, %v1288_v20  ;;  %v1323_v23 = vmul.f32 %v2608_v16, %v2608_v16  ;;  %v1310_v25 = vmul.f32 0.03125, %v1294_v22  ;;  %v1325_v57 = vmul.f32 %v2610_v17, %v2610_v17 }
 0xa2d   :  { %v2616_v27 = vsub.f32 %v1276_v18, %v1308_v21  ;;  %v1331_v29 = vsel %vm571_vm2, %v1323_v23, 0.0  ;;  %v2619_v30 = vsub.f32 %v1278_v28, %v1310_v25  ;;  %v1337_v49 = vsel %vm571_vm2, %v1325_v57, 0.0  ;;  %v1436_v28 = vld [vmem:[%s2763_s18 + $0x18] sm:$0xff] }
 0xa2e   :  { %1332 = vadd.xlane.f32.xlu0 %v1331_v29  ;;  %v1297_v31 = vpop.xlane.xlu0 %1296  ;;  %v1300_v11 = vpop.xlane.xlu1 %1299  ;;  %v1884_v52 = vpack.c.bf16 %v1436_v28, %v1435_v51 }
 0xa2f   :  { %v1311_v47 = vmul.f32 0.03125, %v1297_v31  ;;  %v1324_v32 = vmul.f32 %v2616_v27, %v2616_v27  ;;  %v1312_v33 = vmul.f32 0.03125, %v1300_v11  ;;  %v1326_v19 = vmul.f32 %v2619_v30, %v2619_v30 }
 0xa30   :  { %1885 = vmatprep.subr.bf16.mxu0 %v1884_v52 }
 0xa31   :  { %v2626_v34 = vsub.f32 %v1279_v2, %v1311_v47  ;;  %v1334_v35 = vsel %vm571_vm2, %v1324_v32, 0.0  ;;  %v2629_v58 = vsub.f32 %v1280_v6, %v1312_v33  ;;  %v1340_v39 = vsel %vm571_vm2, %v1326_v19, 0.0  ;;  %1887 = vmatpush3.bf16.msra.mxu0 %v1884_v52  ;;  %v1612_v2 = vld [vmem:[%s2762_s17 + $0x6] sm:$0x3]  ;;  %v1614_v6 = vld [vmem:[%s2762_s17 + $0xa] sm:$0x3] }
 0xa32   :  { %1338 = vadd.xlane.f32.xlu0 %v1337_v49  ;;  %1335 = vadd.xlane.f32.xlu1 %v1334_v35  ;;  %v1303_v1 = vpop.xlane.xlu0 %1302  ;;  %v1306_v38 = vpop.xlane.xlu1 %1305  ;;  %v1754_v47 = vld [vmem:[%s2760_s15] ss:$0 sm:$0xff] }
 0xa33   :  { %v1313_v37 = vmul.f32 0.03125, %v1303_v1  ;;  %v1327_v4 = vmul.f32 %v2626_v34, %v2626_v34  ;;  %v1314_v3 = vmul.f32 0.03125, %v1306_v38  ;;  %v1328_v40 = vmul.f32 %v2629_v58, %v2629_v58  ;;  %v1755_v19 = vld [vmem:[%s2761_s16] ss:$0 sm:$0xff] }
 0xa35   :  { %v2636_v13 = vsub.f32 %v1281_v42, %v1313_v37  ;;  %v1343_v41 = vsel %vm571_vm2, %v1327_v4, 0.0  ;;  %v2639_v44 = vsub.f32 %v1282_v55, %v1314_v3  ;;  %v1346_v45 = vsel %vm571_vm2, %v1328_v40, 0.0 }
 0xa36   :  { %1341 = vadd.xlane.f32.xlu1 %v1340_v39  ;;  %1344 = vadd.xlane.f32.xlu0 %v1343_v41 }
 0xa37   :  { %v1329_v15 = vmul.f32 %v2636_v13, %v2636_v13  ;;  %v1330_v46 = vmul.f32 %v2639_v44, %v2639_v44 }
 0xa39   :  { %v1349_v26 = vsel %vm571_vm2, %v1329_v15, 0.0  ;;  %v1352_v18 = vsel %vm571_vm2, %v1330_v46, 0.0 }
 0xa3a   :  { %1347 = vadd.xlane.f32.xlu1 %v1346_v45  ;;  %1350 = vadd.xlane.f32.xlu0 %v1349_v26 }
 0xa3e   :  { %1353 = vadd.xlane.f32.xlu1 %v1352_v18 }
 0xa4f   :  { %1624 = vperm.xlu1 %1998, %v1610_v43  }
 0xa50   :  { %1619 = vperm.xlu0 %1997, %v1609_v63  }
 0xa53   :  { %1629 = vperm.xlu1 %1998, %v1611_v0  }
 0xa57   :  { %1634 = vperm.xlu1 %1998, %v1612_v2  }
 0xa5b   :  { %1639 = vperm.xlu1 %1998, %v1613_v5  }
 0xa5f   :  { %1644 = vperm.xlu1 %1998, %v1614_v6  }
 0xa63   :  { %1649 = vperm.xlu1 %1998, %v1615_v7  }
 0xa67   :  { %1654 = vperm.xlu1 %1998, %v1616_v8  }
 0xabb   :  { %v1333_v9 = vpop.xlane.xlu0 %1332 }
 0xabc   :  { %v1355_v10 = vmul.f32 0.03125, %v1333_v9 }
 0xabe   :  { %v1363_v12 = vadd.f32 1e-05, %v1355_v10 }
 0xabf   :  { %v1336_v42 = vpop.xlane.xlu1 %1335  ;;  %v1339_v54 = vpop.xlane.xlu0 %1338 }
 0xac0   :  { %1999 = vrsqrt.f32 %v1363_v12  ;;  %v1356_v55 = vmul.f32 0.03125, %v1336_v42  ;;  %v1357_v56 = vmul.f32 0.03125, %v1339_v54 }
 0xac2   :  { %v1364_v59 = vadd.f32 1e-05, %v1356_v55  ;;  %v1365_v60 = vadd.f32 1e-05, %v1357_v56 }
 0xac3   :  { %v1342_v61 = vpop.xlane.xlu1 %1341  ;;  %v1345_v62 = vpop.xlane.xlu0 %1344 }
 0xac4   :  { %2001 = vrsqrt.f32 %v1364_v59  ;;  %v1358_v14 = vmul.f32 0.03125, %v1342_v61  ;;  %v1359_v20 = vmul.f32 0.03125, %v1345_v62 }
 0xac5   :  { %2003 = vrsqrt.f32 %v1365_v60 }
 0xac6   :  { %v1366_v21 = vadd.f32 1e-05, %v1358_v14  ;;  %v1367_v22 = vadd.f32 1e-05, %v1359_v20 }
 0xac7   :  { %v1348_v23 = vpop.xlane.xlu1 %1347  ;;  %v1351_v25 = vpop.xlane.xlu0 %1350 }
 0xac8   :  { %2005 = vrsqrt.f32 %v1366_v21  ;;  %v1360_v57 = vmul.f32 0.03125, %v1348_v23  ;;  %v1361_v29 = vmul.f32 0.03125, %v1351_v25 }
 0xac9   :  { %2007 = vrsqrt.f32 %v1367_v22 }
 0xaca   :  { %v2000_v31 = vpop.eup %1999  ;;  %v1368_v11 = vadd.f32 1e-05, %v1360_v57  ;;  %v1369_v49 = vadd.f32 1e-05, %v1361_v29  ;;  %v1756_v29 = vld [vmem:[%s2764_s19] ss:$0 sm:$0xff] }
 0xacb   :  { %v1379_v32 = vmul.f32 %v2000_v31, %v2608_v16  ;;  %v1354_v33 = vpop.xlane.xlu1 %1353 }
 0xacc   :  { %2009 = vrsqrt.f32 %v1368_v11  ;;  %v1362_v35 = vmul.f32 0.03125, %v1354_v33 }
 0xacd   :  { %v1394_v1 = vmul.f32 %v1754_v47, %v1379_v32  ;;  %2011 = vrsqrt.f32 %v1369_v49 }
 0xace   :  { %v2002_v37 = vpop.eup %2001  ;;  %v1370_v38 = vadd.f32 1e-05, %v1362_v35 }
 0xacf   :  { %v2004_v39 = vpop.eup %2003  ;;  %v1409_v4 = vadd.f32 %v1755_v19, %v1394_v1  ;;  %v1380_v3 = vmul.f32 %v2002_v37, %v2616_v27  ;;  %v1625_v21 = vpop.permute.xlu1 %1624 }
 0xad0   :  { %v1381_v40 = vmul.f32 %v2004_v39, %v2610_v17  ;;  %2013 = vrsqrt.f32 %v1370_v38  ;;  %v1620_v35 = vpop.permute.xlu0 %1619 }
 0xad1   :  { %1417 = vst.msk [vmem:[#allocation6] sm:$0x3] %vm571_vm2, %v1409_v4  ;;  %v1395_v16 = vmul.f32 %v1754_v47, %v1380_v3 }
 0xad2   :  { %v2006_v41 = vpop.eup %2005  ;;  %v1396_v45 = vmul.f32 %v1754_v47, %v1381_v40 }
 0xad3   :  { %v2008_v15 = vpop.eup %2007  ;;  %v1410_v46 = vadd.f32 %v1755_v19, %v1395_v16  ;;  %v1382_v26 = vmul.f32 %v2006_v41, %v2619_v30  ;;  %v1630_v22 = vpop.permute.xlu1 %1629 }
 0xad4   :  { %v1411_v18 = vadd.f32 %v1755_v19, %v1396_v45  ;;  %v1383_v36 = vmul.f32 %v2008_v15, %v2626_v34 }
 0xad5   :  { %1418 = vst.msk [vmem:[#allocation6 + $0x2] sm:$0x3] %vm571_vm2, %v1410_v46  ;;  %v1397_v48 = vmul.f32 %v1754_v47, %v1382_v26 }
 0xad6   :  { %v2010_v50 = vpop.eup %2009  ;;  %1419 = vst.msk [vmem:[#allocation6 + $0x4] sm:$0x3] %vm571_vm2, %v1411_v18  ;;  %v1398_v17 = vmul.f32 %v1754_v47, %v1383_v36 }
 0xad7   :  { %v2012_v27 = vpop.eup %2011  ;;  %v1412_v51 = vadd.f32 %v1755_v19, %v1397_v48  ;;  %v1384_v28 = vmul.f32 %v2010_v50, %v2629_v58  ;;  %v1635_v23 = vpop.permute.xlu1 %1634 }
 0xad8   :  { %v1413_v52 = vadd.f32 %v1755_v19, %v1398_v17  ;;  %v1385_v43 = vmul.f32 %v2012_v27, %v2636_v13  ;;  %v1425_v58 = vld [vmem:[#allocation6] sm:$0x3] }
 0xad9   :  { %1420 = vst.msk [vmem:[#allocation6 + $0x6] sm:$0x3] %vm571_vm2, %v1412_v51  ;;  %v1399_v30 = vmul.f32 %v1754_v47, %v1384_v28 }
 0xada   :  { %v2014_v53 = vpop.eup %2013  ;;  %1421 = vst.msk [vmem:[#allocation6 + $0x8] sm:$0x3] %vm571_vm2, %v1413_v52  ;;  %v1400_v34 = vmul.f32 %v1754_v47, %v1385_v43 }
 0xadb   :  { %v1414_v63 = vadd.f32 %v1755_v19, %v1399_v30  ;;  %v1386_v0 = vmul.f32 %v2014_v53, %v2639_v44  ;;  %v1640_v25 = vpop.permute.xlu1 %1639 }
 0xadc   :  { %v1415_v2 = vadd.f32 %v1755_v19, %v1400_v34  ;;  %v1426_v5 = vld [vmem:[#allocation6 + $0x2] sm:$0x3] }
 0xadd   :  { %1422 = vst.msk [vmem:[#allocation6 + $0xa] sm:$0x3] %vm571_vm2, %v1414_v63  ;;  %v1401_v6 = vmul.f32 %v1754_v47, %v1386_v0  ;;  %v1452_v13 = vcombine.low %v1425_v58, %v1426_v5  ;;  %v1427_v8 = vld [vmem:[#allocation6 + $0x4] sm:$0x3] }
 0xade   :  { %1423 = vst.msk [vmem:[#allocation6 + $0xc] sm:$0x3] %vm571_vm2, %v1415_v2 }
 0xadf   :  { %v1416_v7 = vadd.f32 %v1755_v19, %v1401_v6  ;;  %v1460_v12 = vrot.slane %v1452_v13, %v2222_v24  ;;  %v1645_v57 = vpop.permute.xlu1 %1644 }
 0xae0   :  { %v1428_v9 = vld [vmem:[#allocation6 + $0x6] sm:$0x3] }
 0xae1   :  { %1424 = vst.msk [vmem:[#allocation6 + $0xe] sm:$0x3] %vm571_vm2, %v1416_v7  ;;  %v1453_v10 = vcombine.low %v1427_v8, %v1428_v9  ;;  %v1429_v55 = vld [vmem:[#allocation6 + $0x8] sm:$0x3] }
 0xae3   :  { %v1467_v42 = vrot.slane %v1453_v10, %v2222_v24  ;;  %v1650_v49 = vpop.permute.xlu1 %1649 }
 0xae4   :  { %v1430_v44 = vld [vmem:[#allocation6 + $0xa] sm:$0x3] }
 0xae5   :  { %v1468_v54 = vcombine.low %v1460_v12, %v1467_v42  ;;  %v1469_v56 = vcombine.low %v1429_v55, %v1430_v44  ;;  %v1431_v59 = vld [vmem:[#allocation6 + $0xc] sm:$0x3] }
 0xae7   :  { %1837 = vmatprep.mubr.msk.f32.mxu0 %vm135_vm0, %v1468_v54  ;;  %v1477_v62 = vrot.slane %v1469_v56, %v2222_v24  ;;  %v1655_v46 = vpop.permute.xlu1 %1654 }
 0xae8   :  { %v1432_v60 = vld [vmem:[#allocation6 + $0xe] sm:$0x3] }
 0xae9   :  { %v1470_v61 = vcombine.low %v1431_v59, %v1432_v60 }
 0xaeb   :  { %v1484_v14 = vrot.slane %v1470_v61, %v2222_v24 }
 0xaed   :  { %v1485_v20 = vcombine.low %v1477_v62, %v1484_v14 }
 0xaef   :  { %1838 = vmatmul.mubr.msk.f32.vlgmr.msra.gmra.mrb[0].mxu0 %vm135_vm0, %v1485_v20 }
 0xbc2   :  { %v1839_v31 = vpop.f32.mrb[0].mxu0 }
 0xbc3   :  { %v1562_v47 = vadd.f32 %v1839_v31, %v1756_v29  ;;  %v1556_v11 = vpop.f32.mrb[1].mxu0 }
 0xbc4   :  { %v1557_v32 = vadd.f32 %v1756_v29, %v1556_v11 }
 0xbc5   :  { %v1584_v33 = vcombine.high %v1562_v47, %v1562_v47  ;;  %v1591_v19 = vrot.slane %v1562_v47, %v2222_v24 }
 0xbc6   :  { %v1567_v1 = vcombine.high %v1557_v32, %v1557_v32  ;;  %v1574_v37 = vrot.slane %v1557_v32, %v2222_v24 }
 0xbc7   :  { %v1598_v38 = vrot.slane %v1584_v33, %v2222_v24  ;;  %v1599_v39 = vcombine.high %v1591_v19, %v1591_v19  ;;  %v1661_v4 = vmul.f32 %v1640_v25, %v1591_v19 }
 0xbc8   :  { %v1581_v3 = vrot.slane %v1567_v1, %v2222_v24  ;;  %v1582_v40 = vcombine.high %v1574_v37, %v1574_v37  ;;  %v1657_v16 = vmul.f32 %v1620_v35, %v1574_v37 }
 0xbc9   :  { %v1600_v41 = vcombine.high %v1598_v38, %v1598_v38  ;;  %v1662_v45 = vmul.f32 %v1645_v57, %v1599_v39  ;;  %v1663_v15 = vmul.f32 %v1650_v49, %v1598_v38  ;;  %1670 = vst.msk [vmem:[%s2765_s20 + $0x8] sm:$0x3] %vm1665_vm4, %v1661_v4 }
 0xbca   :  { %v1583_v26 = vcombine.high %v1581_v3, %v1581_v3  ;;  %v1659_v18 = vmul.f32 %v1630_v22, %v1581_v3  ;;  %v1658_v36 = vmul.f32 %v1625_v21, %v1582_v40  ;;  %1666 = vst.msk [vmem:[%s2765_s20] sm:$0x3] %vm1665_vm4, %v1657_v16 }
 0xbcb   :  { %v1664_v24 = vmul.f32 %v1655_v46, %v1600_v41  ;;  %1671 = vst.msk [vmem:[%s2765_s20 + $0xa] sm:$0x3] %vm1665_vm4, %v1662_v45  ;;  %1672 = vst.msk [vmem:[%s2765_s20 + $0xc] sm:$0x3] %vm1665_vm4, %v1663_v15 }
 0xbcc   :  { %v1660_v48 = vmul.f32 %v1635_v23, %v1583_v26  ;;  %1668 = vst.msk [vmem:[%s2765_s20 + $0x4] sm:$0x3] %vm1665_vm4, %v1659_v18  ;;  %1667 = vst.msk [vmem:[%s2765_s20 + $0x2] sm:$0x3] %vm1665_vm4, %v1658_v36 }
 0xbcd   :  { %1673 = vst.msk [vmem:[%s2765_s20 + $0xe] sm:$0x3] %vm1665_vm4, %v1664_v24 }
 0xbce   :  { %1669 = vst.msk [vmem:[%s2765_s20 + $0x6] sm:$0x3] %vm1665_vm4, %v1660_v48 }

</bundles_post_ra>
